<compile_context>
chip_gen: v7x
topology: tpu7x:2x2x1
jax: 0.10.0
libtpu: 0.0.40
codegen_flags: <defaults>
</compile_context>

<pallas_src>
import math
import functools

import jax
import jax.numpy as jnp
from jax.experimental import pallas as pl
from jax.experimental.pallas import tpu as pltpu

_LANE = 128      # lane width (last-dim granularity)
_SUBLANE = 8     # sublane granularity (second-to-last dim)


def _round_up(x, m):
    return ((x + m - 1) // m) * m


# ----------------------------------------------------------------------------
# Fused kernel: whole layer stack in one pallas_call.
# ----------------------------------------------------------------------------
def _make_fused_siren_kernel(n_layers):
    def kernel(*refs):
        x_ref = refs[0]
        o_ref = refs[-1]
        wb = refs[1:-1]                      # [w0, b0, w1, b1, ...]
        h = x_ref[...]                       # (tb, in_f) f32
        # Static Python loop over a fixed layer count -> fully unrolled;
        # intermediates stay in vregs/VMEM, never round-trip through HBM.
        for l in range(n_layers):
            w = wb[2 * l][...]               # (in_dim, out_pad), VMEM-resident
            b = wb[2 * l + 1][...]           # (1, out_pad), broadcast over rows
            acc = jnp.dot(h, w,
                          preferred_element_type=jnp.float32,
                          precision=jax.lax.Precision.HIGHEST)
            h = jnp.sin(acc + b)
        o_ref[...] = h.astype(o_ref.dtype)
    return kernel


# ----------------------------------------------------------------------------
# Parameter init (matches SIRENLayer.__init__ semantics) + one-time prep.
# ----------------------------------------------------------------------------
def init_siren_params(key, features_of_layers):
    """weight ~ U(-1/in_f, 1/in_f) (init_weights); bias ~ U(-1/sqrt(in_f), ...)
    (nn.Linear default, never overwritten). PyTorch layout: w is (out_f, in_f)."""
    params = []
    for i in range(len(features_of_layers) - 1):
        in_f = features_of_layers[i]
        out_f = features_of_layers[i + 1]
        key, kw, kb = jax.random.split(key, 3)
        w_bound = 1.0 / in_f
        b_bound = 1.0 / math.sqrt(in_f)
        w = jax.random.uniform(kw, (out_f, in_f), jnp.float32, -w_bound, w_bound)
        b = jax.random.uniform(kb, (out_f,), jnp.float32, -b_bound, b_bound)
        params.append((w, b))
    return params


def prepare_siren_params(params):
    """One-time prep (off the hot path): transpose to (in, out) and zero-pad.
    Output feature dims are padded to 128 lanes (lane-dense stores/matmuls);
    the FIRST layer's input dim is kept unpadded (x is fed unpadded), later
    layers' input dims match the previous layer's padded output (128-mult).
    Zero padding is self-consistent: padded bias = 0 -> padded activation
    columns are sin(0) = 0 layer after layer."""
    prepared = []
    for i, (w, b) in enumerate(params):
        out_f, in_f = w.shape
        in_dim = in_f if i == 0 else _round_up(in_f, _LANE)
        out_pad = _round_up(out_f, _LANE)
        wt = jnp.zeros((in_dim, out_pad), w.dtype).at[:in_f, :out_f].set(w.T)
        bp = jnp.zeros((1, out_pad), b.dtype).at[0, :out_f].set(b)
        prepared.append((wt, bp))
    return prepared


# ----------------------------------------------------------------------------
# VMEM budget: size it from the actual tiles instead of asking for 64 MiB
# (which is the ENTIRE physical VMEM of a v7x TensorCore).
# ----------------------------------------------------------------------------
def _vmem_limit_bytes(tb, in_f, prepared_params, out_pad_last):
    bpe = 4  # f32
    max_feat = max([w.shape[1] for (w, _) in prepared_params] + [in_f])
    need = (
        2 * tb * in_f * bpe                                         # x tile, double-buffered
        + 2 * tb * out_pad_last * bpe                               # out tile, double-buffered
        + 2 * sum((w.size + b.size) * bpe for (w, b) in prepared_params)  # resident weights/biases
        + 4 * tb * max_feat * bpe                                   # live intermediates / spill slack
    )
    # 2x headroom + clamp: >=16 MiB so the compiler has scratch, <=48 MiB so we
    # never request v7x's whole 64 MiB (128 MiB on v5e/v6e is mere slack).
    return int(min(max(2 * need, 16 << 20), 48 << 20))


# ----------------------------------------------------------------------------
# Fused forward pass.
# ----------------------------------------------------------------------------
def _siren_pallas(x_pad, prepared_params, tb):
    """x_pad: (B_pad, in_f) f32 with B_pad % tb == 0. Returns (B_pad, out_pad)."""
    B_pad, in_f = x_pad.shape
    n_layers = len(prepared_params)
    out_pad_last = prepared_params[-1][0].shape[1]

    flat_wb = []
    in_specs = [pl.BlockSpec((tb, in_f), lambda i: (i, 0))]
    for (wt, bp) in prepared_params:
        flat_wb.append(wt)
        flat_wb.append(bp)
        # Constant index_map -> fetched once, VMEM-resident across grid steps.
        # TODO(synk): on v7x with large hidden dims add
        # pipeline_mode=pl.Buffered(1) here to halve the resident-weight VMEM
        # footprint (negligible at hidden<=128, so left at the default).
        in_specs.append(pl.BlockSpec(wt.shape, lambda i: (0, 0)))
        in_specs.append(pl.BlockSpec(bp.shape, lambda i: (0, 0)))

    return pl.pallas_call(
        _make_fused_siren_kernel(n_layers),
        out_shape=jax.ShapeDtypeStruct((B_pad, out_pad_last), x_pad.dtype),
        grid=(B_pad // tb,),
        in_specs=in_specs,
        out_specs=pl.BlockSpec((tb, out_pad_last), lambda i: (i, 0)),
        compiler_params=pltpu.CompilerParams(
            dimension_semantics=("parallel",),          # shard batch across TCs
            vmem_limit_bytes=_vmem_limit_bytes(tb, in_f, prepared_params,
                                               out_pad_last),
        ),
    )(x_pad, *flat_wb)


@functools.partial(jax.jit, static_argnames=("batch_tile",))
def siren_forward_padded(x, prepared_params, batch_tile=256):
    """Runs the fused SIREN stack; returns the PADDED output (B_pad, out_pad).
    Columns >= out_features are zero; rows >= B are garbage (sin of biases) —
    mask them if you reduce over this output downstream."""
    B, in_f = x.shape

    # Batch tiling policy:
    #  * cap the tile at batch_tile, but never above ~B/2 so the grid has
    #    >= 2 steps whenever B > 8 (both v7x TensorCores get work);
    #  * then split B as evenly as possible in sublane multiples, so padding
    #    waste is bounded to < 8 rows per tile.
    cap = max(_SUBLANE, min(batch_tile, _round_up(pl.cdiv(B, 2), _SUBLANE)))
    grid = pl.cdiv(B, cap)
    tb = _round_up(pl.cdiv(B, grid), _SUBLANE)
    B_pad = grid * tb

    if B_pad == B:
        x_pad = x                       # no extra HBM pass for aligned batches
    else:
        x_pad = jnp.zeros((B_pad, in_f), x.dtype).at[:B, :].set(x)

    return _siren_pallas(x_pad, prepared_params, tb)


def siren_forward(x, prepared_params, out_features, batch_tile=256):
    """Convenience wrapper returning the exact (B, out_features) result.
    For large B / shallow nets prefer siren_forward_padded and fuse the slice
    into the consumer instead of materializing this sliced copy."""
    out_pad = siren_forward_padded(x, prepared_params, batch_tile=batch_tile)
    return out_pad[:x.shape[0], :out_features]


def siren_forward_ref(x, params):
    # Pure-JAX reference (PyTorch semantics) for correctness checking.
    out = x
    for (w, b) in params:
        out = jnp.sin(out @ w.T + b)
    return out


if __name__ == "__main__":
    key = jax.random.PRNGKey(0)

    # Small SIREN: 16 -> 32 -> 32 -> 8, batch of 64 coordinate rows.
    features_of_layers = [16, 32, 32, 8]
    batch = 64

    key, kx = jax.random.split(key)
    x = jax.random.uniform(kx, (batch, features_of_layers[0]), jnp.float32,
                           -1.0, 1.0)
    params = init_siren_params(key, features_of_layers)
    prepared = prepare_siren_params(params)   # transpose + pad ONCE, off hot path

    out = siren_forward(x, prepared, features_of_layers[-1])
    out = jax.block_until_ready(out)

    ref = siren_forward_ref(x, params)
    assert out.shape == (batch, features_of_layers[-1])
    assert jnp.allclose(out, ref, atol=1e-5, rtol=1e-5), "mismatch vs reference"

    print("KERNEL_OK")
</pallas_src>

<mosaic_0001>
module attributes {stable_mosaic.version = 11 : i64} {
  func.func @kernel(%arg0: i32, %arg1: memref<32x16xf32, #tpu.memory_space<vmem>>, %arg2: memref<16x128xf32, #tpu.memory_space<vmem>>, %arg3: memref<1x128xf32, #tpu.memory_space<vmem>>, %arg4: memref<128x128xf32, #tpu.memory_space<vmem>>, %arg5: memref<1x128xf32, #tpu.memory_space<vmem>>, %arg6: memref<128x128xf32, #tpu.memory_space<vmem>>, %arg7: memref<1x128xf32, #tpu.memory_space<vmem>>, %arg8: memref<32x128xf32, #tpu.memory_space<vmem>>) attributes {dimension_semantics = [#tpu.dimension_semantics<parallel>], iteration_bounds = array<i64: 2>, scalar_prefetch = 0 : i64, scratch_operands = 0 : i64, tpu.core_type = #tpu.core_type<tc>, window_params = [{transform_indices = @transform_0, window_bounds = array<i64: 32, 16>}, {pipeline_mode = #tpu.pipeline_mode<synchronous>, transform_indices = @transform_1, window_bounds = array<i64: 16, 128>}, {pipeline_mode = #tpu.pipeline_mode<synchronous>, transform_indices = @transform_2, window_bounds = array<i64: 1, 128>}, {pipeline_mode = #tpu.pipeline_mode<synchronous>, transform_indices = @transform_3, window_bounds = array<i64: 128, 128>}, {pipeline_mode = #tpu.pipeline_mode<synchronous>, transform_indices = @transform_4, window_bounds = array<i64: 1, 128>}, {pipeline_mode = #tpu.pipeline_mode<synchronous>, transform_indices = @transform_5, window_bounds = array<i64: 128, 128>}, {pipeline_mode = #tpu.pipeline_mode<synchronous>, transform_indices = @transform_6, window_bounds = array<i64: 1, 128>}, {transform_indices = @transform_7, window_bounds = array<i64: 32, 128>}]} {
    %c0 = arith.constant 0 : index
    %c0_0 = arith.constant 0 : index
    %0 = vector.load %arg1[%c0, %c0_0] : memref<32x16xf32, #tpu.memory_space<vmem>>, vector<32x16xf32>
    %c0_1 = arith.constant 0 : index
    %c0_2 = arith.constant 0 : index
    %1 = vector.load %arg2[%c0_1, %c0_2] : memref<16x128xf32, #tpu.memory_space<vmem>>, vector<16x128xf32>
    %c0_3 = arith.constant 0 : index
    %c0_4 = arith.constant 0 : index
    %2 = vector.load %arg3[%c0_3, %c0_4] : memref<1x128xf32, #tpu.memory_space<vmem>>, vector<1x128xf32>
    %cst = arith.constant dense<0.000000e+00> : vector<32x128xf32>
    %3 = tpu.matmul %0, %1, %cst {dimension_numbers = #tpu.dot_dimension_numbers<[1], [0], [0], [1], [0, 0, 1, 1], [], []>, precision = #tpu.contract_precision<fp32>} : vector<32x16xf32>, vector<16x128xf32>, vector<32x128xf32> -> vector<32x128xf32>
    %4 = vector.broadcast %2 : vector<1x128xf32> to vector<32x128xf32>
    %5 = arith.addf %3, %4 : vector<32x128xf32>
    %6 = math.sin %5 : vector<32x128xf32>
    %c0_5 = arith.constant 0 : index
    %c0_6 = arith.constant 0 : index
    %7 = vector.load %arg4[%c0_5, %c0_6] : memref<128x128xf32, #tpu.memory_space<vmem>>, vector<128x128xf32>
    %c0_7 = arith.constant 0 : index
    %c0_8 = arith.constant 0 : index
    %8 = vector.load %arg5[%c0_7, %c0_8] : memref<1x128xf32, #tpu.memory_space<vmem>>, vector<1x128xf32>
    %cst_9 = arith.constant dense<0.000000e+00> : vector<32x128xf32>
    %9 = tpu.matmul %6, %7, %cst_9 {dimension_numbers = #tpu.dot_dimension_numbers<[1], [0], [0], [1], [0, 0, 1, 1], [], []>, precision = #tpu.contract_precision<fp32>} : vector<32x128xf32>, vector<128x128xf32>, vector<32x128xf32> -> vector<32x128xf32>
    %10 = vector.broadcast %8 : vector<1x128xf32> to vector<32x128xf32>
    %11 = arith.addf %9, %10 : vector<32x128xf32>
    %12 = math.sin %11 : vector<32x128xf32>
    %c0_10 = arith.constant 0 : index
    %c0_11 = arith.constant 0 : index
    %13 = vector.load %arg6[%c0_10, %c0_11] : memref<128x128xf32, #tpu.memory_space<vmem>>, vector<128x128xf32>
    %c0_12 = arith.constant 0 : index
    %c0_13 = arith.constant 0 : index
    %14 = vector.load %arg7[%c0_12, %c0_13] : memref<1x128xf32, #tpu.memory_space<vmem>>, vector<1x128xf32>
    %cst_14 = arith.constant dense<0.000000e+00> : vector<32x128xf32>
    %15 = tpu.matmul %12, %13, %cst_14 {dimension_numbers = #tpu.dot_dimension_numbers<[1], [0], [0], [1], [0, 0, 1, 1], [], []>, precision = #tpu.contract_precision<fp32>} : vector<32x128xf32>, vector<128x128xf32>, vector<32x128xf32> -> vector<32x128xf32>
    %16 = vector.broadcast %14 : vector<1x128xf32> to vector<32x128xf32>
    %17 = arith.addf %15, %16 : vector<32x128xf32>
    %18 = math.sin %17 : vector<32x128xf32>
    %c0_15 = arith.constant 0 : index
    %c0_16 = arith.constant 0 : index
    %19 = vector.load %arg8[%c0_15, %c0_16] : memref<32x128xf32, #tpu.memory_space<vmem>>, vector<32x128xf32>
    tpu.vector_store %arg8[%c0_15, %c0_16], %18 {strides = array<i32>} : memref<32x128xf32, #tpu.memory_space<vmem>>, vector<32x128xf32>,
    return
  }
  func.func @transform_0(%arg0: i32) -> (i32, i32) {
    %c0_i32 = arith.constant 0 : i32
    %c0_i32_0 = arith.constant 0 : i32
    return %arg0, %c0_i32 : i32, i32
  }
  func.func @transform_1(%arg0: i32) -> (i32, i32) {
    %c0_i32 = arith.constant 0 : i32
    %c0_i32_0 = arith.constant 0 : i32
    %c0_i32_1 = arith.constant 0 : i32
    return %c0_i32, %c0_i32_0 : i32, i32
  }
  func.func @transform_2(%arg0: i32) -> (i32, i32) {
    %c0_i32 = arith.constant 0 : i32
    %c0_i32_0 = arith.constant 0 : i32
    %c0_i32_1 = arith.constant 0 : i32
    return %c0_i32, %c0_i32_0 : i32, i32
  }
  func.func @transform_3(%arg0: i32) -> (i32, i32) {
    %c0_i32 = arith.constant 0 : i32
    %c0_i32_0 = arith.constant 0 : i32
    %c0_i32_1 = arith.constant 0 : i32
    return %c0_i32, %c0_i32_0 : i32, i32
  }
  func.func @transform_4(%arg0: i32) -> (i32, i32) {
    %c0_i32 = arith.constant 0 : i32
    %c0_i32_0 = arith.constant 0 : i32
    %c0_i32_1 = arith.constant 0 : i32
    return %c0_i32, %c0_i32_0 : i32, i32
  }
  func.func @transform_5(%arg0: i32) -> (i32, i32) {
    %c0_i32 = arith.constant 0 : i32
    %c0_i32_0 = arith.constant 0 : i32
    %c0_i32_1 = arith.constant 0 : i32
    return %c0_i32, %c0_i32_0 : i32, i32
  }
  func.func @transform_6(%arg0: i32) -> (i32, i32) {
    %c0_i32 = arith.constant 0 : i32
    %c0_i32_0 = arith.constant 0 : i32
    %c0_i32_1 = arith.constant 0 : i32
    return %c0_i32, %c0_i32_0 : i32, i32
  }
  func.func @transform_7(%arg0: i32) -> (i32, i32) {
    %c0_i32 = arith.constant 0 : i32
    %c0_i32_0 = arith.constant 0 : i32
    return %arg0, %c0_i32 : i32, i32
  }
}

</mosaic_0001>

<bundles_post_ra>
// kernel: siren_forward_padded.1
= control target key start
LH: loop header
LB: loop body
LE: loop exit
PB: predicated region body
PF: predicated region fallthrough
CT: control target
= control target key end

     0   :  { %12 = vsyncpa [#allocation3], 0  ;;  %s7330_s0 = inlined_call_operand.vmem [shape: f32[64,16], index: 0, kind: input, shape index: {}]   ;;  %s7331_s1 = inlined_call_operand.vmem [shape: f32[16,128], index: 1, kind: input, shape index: {}]   ;;  %s7332_s2 = inlined_call_operand.vmem [shape: f32[1,128], index: 2, kind: input, shape index: {}]   ;;  %s7333_s3 = inlined_call_operand.hbm [shape: f32[128,128], index: 3, kind: input, shape index: {}]   ;;  %s7334_s4 = inlined_call_operand.vmem [shape: f32[1,128], index: 4, kind: input, shape index: {}]   ;;  %s7335_s5 = inlined_call_operand.hbm [shape: f32[128,128], index: 5, kind: input, shape index: {}]   ;;  %s7336_s6 = inlined_call_operand.vmem [shape: f32[1,128], index: 6, kind: input, shape index: {}]   ;;  %s7337_s7 = inlined_call_operand.hbm [shape: f32[64,128], index: 7, kind: output, shape index: {}]  }
   0x1   :  { %13 = vsyncpa [#allocation6], 0 }
   0x2   :  { %14 = vsyncpa [#allocation4], 0 }
   0x3   :  { %16 = vsyncpa [#allocation4 + $0x1], 0  ;;  %s5547_s24 = smov 0   ;;  %s5549_s25 = smov 0  }
   0x4   :  { %s5551_s26 = smov 0   ;;  %s5553_s27 = smov 0  }
   0x5 LB: > { %s5568_s28 = sadd.s32 4294967295, %s5492_s27   ;;  %s3860_s29 = sadd.s32 4294967294, %s5492_s27   ;;  %s5492_s27 = sphi %s5553_s27, %s7559_s27   ;;  %s5488_s26 = sphi %s5551_s26, %s7558_s26   ;;  %s5484_s25 = sphi %s5549_s25, %s7557_s25   ;;  %s5480_s24 = sphi %s5547_s24, %s7556_s24  }
   0x6   : > { %s5572_s30 = sadd.s32 1, %s5492_s27   ;;  %s181_s8 = sadd.s32 1, %s5488_s26 }
   0x7   : > { %s178_s9 = ssub.s32 %s5492_s27, %s5572_s30  ;;  %p191_p0 = scmp.ne.s32.totalorder %s5488_s26, %s5484_s25 }
   0x8   : > { %p179_p1 = scmp.eq.s32.totalorder %s178_s9, 0  ;;  %p192_p2 = scmp.eq.s32.totalorder %s5568_s28, 1 }
   0x9   : > { %p197_p3 = scmp.ne.s32.totalorder %s5484_s25, %s5480_s24  ;;  %p198_p4 = scmp.eq.s32.totalorder %s3860_s29, 1 }
   0xa   : > { %s5583_s10 = scalar_select %p179_p1, %s5488_s26, %s181_s8  }
   0xb   : > { %p5585_p5 = por %p192_p2, %p191_p0  ;;  %p5589_p6 = por %p198_p4, %p197_p3 }
   0xc   : > { %7428 = sst [smem:[#allocation11_spill]] %s5583_s10  ;;  %p3861_p7 = scmp.ge.s32.totalorder %s5492_s27, 1 }
   0xd   : > { %s7429_s11 = scalar_select %p5585_p5, 1, 0 }
   0xe   : > { %s7430_s12 = scalar_select %p5589_p6, 1, 0 }
   0xf   : > { %p205_p8 = scmp.lt.s32.totalorder %s5492_s27, 3  ;;  %p7338_p9 = scmp.eq.s32.totalorder %s5568_s28, 0 }
  0x10   : > { %s5494_s14 = smov [#allocation2]   ;;  %s5495_s17 = smov [#allocation5]  }
  0x11   : > { %p5596_p10 = pnand %p3861_p7, %p205_p8  ;;  %s223_s15 = sshll.u32 %s5494_s14, 4  ;;  %s224_s15 = int_to_ptr.vmem [resolvable:$true] %s223_s15 }
  0x12   : > { %s239_s18 = sshll.u32 %s5495_s17, 4  ;;  %s5366_s21 = scalar_lea.hbm %s7333_s3, 2048  ;;  %s5608_s18 = int_to_ptr.vmem [resolvable:$true] %s239_s18 }
  0x13   : > { %s7431_s13 = scalar_select %p5596_p10, 1, 0 }
  0x14   : > { %p5258_p11 = pneg %p5596_p10  ;;  %p5367_p13 = scmp.ne.s32.totalorder %s7333_s3, %s5366_s21 }
  0x15   : > { %p5373_p3 = scmp.lt.u32.totalorder %s5366_s21, %s7333_s3 }
  0x16   : > { %p5604_p12 = pnand %p7338_p9, %p5258_p11 }
  0x18   : > { %p5368_p0 = pneg %p5604_p12 }
  0x1a   : > { %p5369_p1 = pnand %p5368_p0, %p5367_p13 }
  0x1c   : > { %p5370_p2 = pneg %p5369_p1 }
  0x1e   : > { %p5375_p4 = pnand %p5373_p3, %p5370_p2 }
  0x20   : > { %5378 = shalt.err (!%p5375_p4)
}
  0x21   : > { %s5379_s9 = scalar_lea.vmem %s224_s15, 2048  ;;  %p5387_p9 = scmp.lt.s32.totalorder %s224_s15, %s224_s15 }
  0x22   : > { %p5380_p7 = scmp.ne.s32.totalorder %s224_s15, %s5379_s9  ;;  %p5388_p6 = scmp.lt.s32.totalorder %s5379_s9, %s5379_s9 }
  0x24   : > { %p5382_p8 = pnand %p5380_p7, %p5368_p0  ;;  %p5389_p5 = por %p5388_p6, %p5387_p9 }
  0x26   : > { %p5383_p11 = pneg %p5382_p8 }
  0x28   : > { %p5390_p10 = pnand %p5389_p5, %p5383_p11 }
  0x2a   : > { %5393 = shalt.err (!%p5390_p10)
}
  0x2b   : > { %s5496_s14 = smov 128   ;;  %s5497_s17 = smov 8  }
  0x2c   : > { %5261 = dma.hbm_to_vmem [thread:$0]  (!%p5604_p12), %s7333_s3, 2048, %s224_s15, [#allocation3], %s5496_s14, %s5496_s14, %s5497_s17  }
  0x2d   : > { %s5394_s23 = scalar_lea.hbm %s7335_s5, 2048 }
  0x2e   : > { %p5395_p13 = scmp.ne.s32.totalorder %s7335_s5, %s5394_s23  ;;  %p5401_p9 = scmp.lt.u32.totalorder %s5394_s23, %s7335_s5 }
  0x30   : > { %p5397_p5 = pnand %p5395_p13, %p5368_p0 }
  0x32   : > { %p5398_p6 = pneg %p5397_p5 }
  0x34   : > { %p5403_p10 = pnand %p5401_p9, %p5398_p6 }
  0x36   : > { %5406 = shalt.err (!%p5403_p10)
}
  0x37   : > { %s5407_s15 = scalar_lea.vmem %s5608_s18, 2048  ;;  %p5415_p4 = scmp.lt.s32.totalorder %s5608_s18, %s5608_s18 }
  0x38   : > { %p5408_p1 = scmp.ne.s32.totalorder %s5608_s18, %s5407_s15  ;;  %p5416_p7 = scmp.lt.s32.totalorder %s5407_s15, %s5407_s15 }
  0x3a   : > { %p5410_p2 = pnand %p5408_p1, %p5368_p0  ;;  %p5417_p8 = por %p5416_p7, %p5415_p4 }
  0x3c   : > { %p5411_p3 = pneg %p5410_p2 }
  0x3e   : > { %p5418_p11 = pnand %p5417_p8, %p5411_p3 }
  0x40   : > { %5421 = shalt.err (!%p5418_p11)
}
  0x41   : > { %5264 = dma.hbm_to_vmem [thread:$0]  (!%p5604_p12), %s7335_s5, 2048, %s5608_s18, [#allocation6], %s5496_s14, %s5496_s14, %s5497_s17  }
  0x42   : > { %p7433_p13 = scmp.ne.s32.totalorder %s7431_s13, 0 }
  0x44   : > { %267 = sbr.rel (%p7433_p13) target bundleno = 1457 (0x5b1), region = 48 }
  0x4b   : > { %p7434_p5 = scmp.eq.s32.totalorder %s5568_s28, 0 }
  0x4d   : > { %5467 = dma.done.wait (%p7434_p5), [#allocation3], 2048   ;;  %p7435_p0 = pmov %p7434_p5 }
  0x4f   : > { %5469 = vsyncadd (%p7435_p0), [#allocation3], 4294965248  ;;  %p7436_p6 = pmov %p7435_p0 }
  0x50   : > { %p7437_p9 = pmov %p7435_p0 }
  0x51   : > { %5471 = dma.done.wait (%p7436_p6), [#allocation6], 2048  }
  0x52   : > { %5473 = vsyncadd (%p7437_p9), [#allocation6], 4294965248  ;;  %s3869_s16 = sshll.u32 %s5568_s28, 2  ;;  %vm323_vm0 = vcmask 130048   ;;  %v314_v0 = vld [vmem:[%s7331_s1] sm:$0xff]  ;;  %v315_v1 = vld [vmem:[%s7331_s1 + $0x8] sm:$0xff] }
  0x53   : > { %p304_p10 = scmp.lt.s32.totalorder %s3869_s16, 7  ;;  %v337_v3 = vand.u32 4294901760, %v314_v0  ;;  %v340_v4 = vand.u32 4294901760, %v315_v1  ;;  %v1340_v44 = vld [vmem:[#allocation2] sm:$0xff]  ;;  %v1341_v45 = vld [vmem:[#allocation2 + $0x8] sm:$0xff]  ;;  %v5685_v49 = vld [vmem:[#allocation2 + $0x10] sm:$0xff] }
  0x54   : > { %v1364_v46 = vand.u32 4294901760, %v1340_v44  ;;  %v1367_v47 = vand.u32 4294901760, %v1341_v45  ;;  %v5687_v50 = vld [vmem:[#allocation2 + $0x18] sm:$0xff]  ;;  %v7357_v51 = vand.u32 4294901760, %v5685_v49  ;;  %v5699_v54 = vld [vmem:[#allocation2 + $0x20] sm:$0xff]  ;;  %v5701_v55 = vld [vmem:[#allocation2 + $0x28] sm:$0xff] }
  0x55   : > { %s7561_s16 = smov (!%p304_p10, %s3869_s16), 7  ;;  %v4720_v13 = vpack.c.bf16 %v340_v4, %v337_v3  ;;  %v445_v15 = vsub.f32 %v314_v0, %v337_v3  ;;  %v452_v16 = vsub.f32 %v315_v1, %v340_v4  ;;  %v7356_v52 = vand.u32 4294901760, %v5687_v50  ;;  %v5713_v59 = vld [vmem:[#allocation2 + $0x30] sm:$0xff]  ;;  %v5715_v60 = vld [vmem:[#allocation2 + $0x38] sm:$0xff]  ;;  %v5721_v63 = vld [vmem:[#allocation2 + $0x40] sm:$0xff]  ;;  %s3927_s14 = sshll.u32 %s5568_s28, 9 }
  0x56   : > { %s3870_s18 = sshll.u32 %s7561_s16, 3  ;;  %v5683_v48 = vpack.c.bf16 %v1367_v47, %v1364_v46  ;;  %v7355_v56 = vand.u32 4294901760, %v5699_v54  ;;  %v7354_v57 = vand.u32 4294901760, %v5701_v55  ;;  %v7352_v61 = vand.u32 4294901760, %v5713_v59  ;;  %v5723_v0 = vld [vmem:[#allocation2 + $0x48] sm:$0xff]  ;;  %v5725_v1 = vld [vmem:[#allocation2 + $0x50] sm:$0xff]  ;;  %s7281_s22 = scalar_lea.hbm %s7337_s7, %s3927_s14 }
  0x57   : > { %s307_s17 = scalar_lea.vmem %s7330_s0, %s3870_s18  ;;  %4721 = vmatprep.subr.bf16.mxu0 %v4720_v13  ;;  %v446_v21 = vand.u32 4294901760, %v445_v15  ;;  %v453_v22 = vand.u32 4294901760, %v452_v16  ;;  %v4728_v40 = vpack.c.bf16 %v452_v16, %v445_v15  ;;  %v5697_v53 = vpack.c.bf16 %v7356_v52, %v7357_v51  ;;  %s300_s16 = sand.u32 1, %s5484_s25  }
  0x58   : > { %v310_v2 = vld [vmem:[%s307_s17] sm:$0xff]  ;;  %v311_v6 = vld [vmem:[%s307_s17 + $0x8] sm:$0xff]  ;;  %v312_v7 = vld [vmem:[%s307_s17 + $0x10] sm:$0xff]  ;;  %4723 = vmatpush3.bf16.msra.mxu0 %v4720_v13  ;;  %4745 = vmatprep.subr.bf16.mxu1 %v5683_v48  ;;  %v5711_v58 = vpack.c.bf16 %v7354_v57, %v7355_v56  ;;  %v7351_v62 = vand.u32 4294901760, %v5715_v60  ;;  %v7350_v3 = vand.u32 4294901760, %v5721_v63  ;;  %v7349_v4 = vand.u32 4294901760, %v5723_v0 }
  0x59   : > { %v325_v5 = vsel %vm323_vm0, %v310_v2, 0  ;;  %v313_v8 = vld [vmem:[%s307_s17 + $0x18] sm:$0xff]  ;;  %v328_v10 = vsel %vm323_vm0, %v311_v6, 0  ;;  %v331_v11 = vsel %vm323_vm0, %v312_v7, 0  ;;  %v447_v27 = vsub.f32 %v445_v15, %v446_v21  ;;  %4747 = vmatpush3.bf16.msra.mxu1 %v5683_v48  ;;  %v3871_v7 = vld [vmem:[%s7332_s2] ss:$0 sm:$0xff] }
  0x5a   : > { %v5677_v9 = vand.u32 4294901760, %v325_v5  ;;  %v334_v12 = vsel %vm323_vm0, %v313_v8, 0  ;;  %v413_v14 = vand.u32 4294901760, %v328_v10  ;;  %v423_v18 = vand.u32 4294901760, %v331_v11  ;;  %4749 = vmatprep.subr.bf16.mxu1 %v5697_v53  ;;  %s3868_s18 = sshll.u32 %s300_s16, 5  ;;  %s7289_s28 = scalar_lea.sflag [#allocation4], %s300_s16 }
  0x5b   : > { %v433_v19 = vand.u32 4294901760, %v334_v12  ;;  %v454_v28 = vsub.f32 %v452_v16, %v453_v22  ;;  %v448_v33 = vand.u32 4294901760, %v447_v27  ;;  %v4736_v43 = vpack.c.bf16 %v453_v22, %v446_v21  ;;  %v5771_v21 = vld [vmem:[#allocation2 + $0x78] sm:$0xff]  ;;  %s7243_s13 = scalar_lea.vmem [#allocation7], %s3868_s18  ;;  %p7553_p1 = scmp.ne.s32.totalorder %s7429_s11, 0 }
  0x5c   : > { %v404_v17 = vsub.f32 %v325_v5, %v5677_v9  ;;  %v414_v20 = vsub.f32 %v328_v10, %v413_v14  ;;  %v424_v24 = vsub.f32 %v331_v11, %v423_v18  ;;  %v5731_v2 = vpack.c.bf16 %v7351_v62, %v7352_v61  ;;  %v5735_v5 = vld [vmem:[#allocation2 + $0x58] sm:$0xff]  ;;  %v5744_v10 = vld [vmem:[#allocation2 + $0x68] sm:$0xff]  ;;  %s3776_s17 = sshll.u32 %s7243_s13, 4  ;;  %s5504_s29 = smov [#allocation7]   ;;  %s7283_s17 = int_to_ptr.vmem [resolvable:$true] %s3776_s17 }
  0x5d   : > { %v434_v25 = vsub.f32 %v334_v12, %v433_v19  ;;  %v455_v34 = vand.u32 4294901760, %v454_v28  ;;  %4751 = vmatpush3.bf16.msra.mxu1 %v5697_v53  ;;  %v7348_v6 = vand.u32 4294901760, %v5725_v1  ;;  %v7347_v8 = vand.u32 4294901760, %v5735_v5  ;;  %s5422_s23 = scalar_lea.vmem %s7283_s17, 512  ;;  %s5426_s8 = sshll.u32 %s5504_s29, 4  ;;  %s5427_s8 = int_to_ptr.vmem [resolvable:$false] %s5426_s8 }
  0x5e   : > { %v405_v23 = vand.u32 4294901760, %v404_v17  ;;  %v415_v26 = vand.u32 4294901760, %v414_v20  ;;  %v425_v30 = vand.u32 4294901760, %v424_v24  ;;  %4753 = vmatprep.subr.bf16.mxu1 %v5711_v58  ;;  %v5751_v11 = vpack.c.bf16 %v7349_v4, %v7350_v3  ;;  %p5423_p12 = scmp.ne.s32.totalorder %s7283_s17, %s5422_s23  ;;  %s5428_s9 = scalar_lea.vmem %s5427_s8, 1024 }
  0x5f   : > { %v435_v31 = vand.u32 4294901760, %v434_v25  ;;  %v4724_v39 = vpack.c.bf16 %v455_v34, %v448_v33  ;;  %v5753_v12 = vsub.f32 %v1340_v44, %v1364_v46  ;;  %v5758_v15 = vsub.f32 %v1341_v45, %v1367_v47  ;;  %p5429_p4 = scmp.lt.s32.totalorder %s7283_s17, %s5427_s8  ;;  %p5430_p7 = scmp.lt.s32.totalorder %s5428_s9, %s5422_s23 }
  0x60   : > { %v406_v29 = vsub.f32 %v404_v17, %v405_v23  ;;  %v416_v32 = vsub.f32 %v414_v20, %v415_v26  ;;  %v426_v36 = vsub.f32 %v424_v24, %v425_v30  ;;  %7438 = vst [vmem:[#allocation12_spill] sm:$0xff] %v5751_v11  ;;  %v7368_v57 = vmov 1326507024   ;;  %p5424_p2 = pnand %p5423_p12, %p7553_p1 }
  0x61   : > { %v436_v37 = vsub.f32 %v434_v25, %v435_v31  ;;  %4725 = vmatprep.subr.bf16.mxu0 %v4724_v39  ;;  %4755 = vmatpush3.bf16.msra.mxu1 %v5711_v58  ;;  %p5431_p8 = por %p5430_p7, %p5429_p4 }
  0x62   : > { %v407_v35 = vand.u32 4294901760, %v406_v29  ;;  %v417_v38 = vand.u32 4294901760, %v416_v32  ;;  %v427_v41 = vand.u32 4294901760, %v426_v36  ;;  %4757 = vmatprep.subr.bf16.mxu1 %v5731_v2  ;;  %p5425_p3 = pneg %p5424_p2 }
  0x63   : > { %v437_v42 = vand.u32 4294901760, %v436_v37 }
  0x64   : > { %4208 = vmatprep.mubr.f32.mxu0 %v407_v35  ;;  %p5432_p11 = pnand %p5431_p8, %p5425_p3 }
  0x65   : > { %4209 = vmatmul.mubr.f32.vlgmr.msra.gmra.mrb[0].mxu0 %v417_v38  ;;  %4759 = vmatpush3.bf16.msra.mxu1 %v5731_v2 }
  0x66   : > { %4727 = vmatpush3.bf16.msra.mxu0 %v4724_v39  ;;  %4211 = vmatprep.mubr.f32.mxu0 %v427_v41 }
  0x67   : > { %4729 = vmatprep.subr.bf16.mxu0 %v4728_v40  ;;  %4761 = vmatprep.subr.bf16.mxu1 %v5751_v11 }
  0x69   : > { %4212 = vmatmul.mubr.f32.gmra.mrb[2].mxu0 %v437_v42  ;;  %4763 = vmatpush3.bf16.msra.mxu1 %v5751_v11 }
  0x6a   : > { %4218 = vmatprep.mubr.f32.mxu0 %v5677_v9 }
  0x6d   : > { %4219 = vmatmul.mubr.f32.vlgmr.msra.gmra.mrb[0].mxu0 %v413_v14 }
  0x6e   : > { %4731 = vmatpush3.bf16.msra.mxu0 %v4728_v40  ;;  %4221 = vmatprep.mubr.f32.mxu0 %v423_v18 }
  0x6f   : > { %4733 = vmatprep.subr.bf16.mxu0 %v4720_v13 }
  0x71   : > { %4222 = vmatmul.mubr.f32.gmra.mrb[2].mxu0 %v433_v19 }
  0x72   : > { %4228 = vmatprep.mubr.f32.mxu0 %v404_v17 }
  0x75   : > { %4229 = vmatmul.mubr.f32.vlgmr.msra.gmra.mrb[0].mxu0 %v414_v20  ;;  %v7345_v20 = vand.u32 4294901760, %v5744_v10 }
  0x76   : > { %4735 = vmatpush3.bf16.msra.mxu0 %v4720_v13  ;;  %4231 = vmatprep.mubr.f32.mxu0 %v424_v24 }
  0x77   : > { %4737 = vmatprep.subr.bf16.mxu0 %v4736_v43 }
  0x79   : > { %4232 = vmatmul.mubr.f32.gmra.mrb[2].mxu0 %v434_v25 }
  0x7a   : > { %4238 = vmatprep.mubr.f32.mxu0 %v405_v23 }
  0x7d   : > { %4239 = vmatmul.mubr.f32.vlgmr.msra.gmra.mrb[0].mxu0 %v415_v26  ;;  %v7342_v26 = vand.u32 4294901760, %v5753_v12 }
  0x7e   : > { %4739 = vmatpush3.bf16.msra.mxu0 %v4736_v43  ;;  %4241 = vmatprep.mubr.f32.mxu0 %v425_v30  ;;  %v7343_v30 = vand.u32 4294901760, %v5771_v21 }
  0x7f   : > { %4741 = vmatprep.subr.bf16.mxu0 %v4720_v13  ;;  %v5801_v41 = vsub.f32 %v5753_v12, %v7342_v26 }
  0x81   : > { %4242 = vmatmul.mubr.f32.gmra.mrb[2].mxu0 %v435_v31  ;;  %v7341_v31 = vand.u32 4294901760, %v5758_v15 }
  0x82   : > { %4248 = vmatprep.mubr.f32.mxu0 %v5677_v9 }
  0x83   : > { %v5808_v44 = vsub.f32 %v5758_v15, %v7341_v31 }
  0x85   : > { %4249 = vmatmul.mubr.f32.vlgmr.msra.gmra.mrb[0].mxu0 %v413_v14 }
  0x86   : > { %4743 = vmatpush3.bf16.msra.mxu0 %v4720_v13  ;;  %4251 = vmatprep.mubr.f32.mxu0 %v423_v18 }
  0x89   : > { %4252 = vmatmul.mubr.f32.gmra.mrb[2].mxu0 %v433_v19 }
  0x8a   : > { %4258 = vmatprep.mubr.f32.mxu0 %v5677_v9  ;;  %v5742_v9 = vld [vmem:[#allocation2 + $0x60] sm:$0xff] }
  0x8d   : > { %4259 = vmatmul.mubr.f32.vlgmr.msra.gmra.mrb[0].mxu0 %v413_v14  ;;  %v5756_v14 = vld [vmem:[#allocation2 + $0x70] sm:$0xff] }
  0x8e   : > { %4261 = vmatprep.mubr.f32.mxu0 %v423_v18  ;;  %v5767_v18 = vpack.c.bf16 %v7347_v8, %v7348_v6  ;;  %v7344_v25 = vand.u32 4294901760, %v5756_v14  ;;  %v7364_v8 = vmov 2131351028   ;;  %v7360_v6 = vmov 2102212464  }
  0x90   : > { %7439 = vst [vmem:[#allocation13_spill] sm:$0xff] %v5767_v18  ;;  %4765 = vmatprep.subr.bf16.mxu1 %v5767_v18 }
  0x91   : > { %4262 = vmatmul.mubr.f32.gmra.mrb[2].mxu0 %v433_v19  ;;  %v7346_v19 = vand.u32 4294901760, %v5742_v9  ;;  %4767 = vmatpush3.bf16.msra.mxu1 %v5767_v18 }
  0x93   : > { %v5793_v36 = vpack.c.bf16 %v7345_v20, %v7346_v19 }
  0x95   : > { %7440 = vst [vmem:[#allocation14_spill] sm:$0xff] %v5793_v36  ;;  %4769 = vmatprep.subr.bf16.mxu1 %v5793_v36 }
  0x96   : > { %4771 = vmatpush3.bf16.msra.mxu1 %v5793_v36 }
 0x160   : > { %v4260_v13 = vpop.f32.mrb[0].mxu0 }
 0x161   : > { %v5760_v16 = vadd.f32 %v4260_v13, %v3871_v7  ;;  %v902_v17 = vpop.f32.mrb[1].mxu0  ;;  %v5817_v13 = vpack.c.bf16 %v7343_v30, %v7344_v25  ;;  %v7370_v30 = vmov 683565275  }
 0x162   : > { %v5773_v22 = vadd.f32 %v3871_v7, %v902_v17 }
 0x163   : > { %v7359_v23 = vand.u32 2147483647, %v5760_v16  ;;  %v1031_v24 = vand.u32 2139095040, %v5760_v16  ;;  %7441 = vst [vmem:[#allocation15_spill] sm:$0xff] %v5817_v13  ;;  %4773 = vmatprep.subr.bf16.mxu1 %v5817_v13  ;;  %vm1030_vm13 = vcmp.lt.s32.totalorder %v5760_v16, 0 }
 0x164   : > { %v7358_v27 = vand.u32 2147483647, %v5773_v22  ;;  %v927_v28 = vand.u32 2139095040, %v5773_v22  ;;  %v4263_v29 = vpop.f32.mrb[2].mxu0  ;;  %4775 = vmatpush3.bf16.msra.mxu1 %v5817_v13 }
 0x165   : > { %v1032_v32 = vshrl.u32 %v1031_v24, 23  ;;  %v1035_v33 = vand.u32 8388607, %v7359_v23  ;;  %v5786_v34 = vadd.f32 %v4263_v29, %v3871_v7  ;;  %v914_v35 = vpop.f32.mrb[3].mxu0 }
 0x166   : > { %v928_v37 = vshrl.u32 %v927_v28, 23  ;;  %v931_v38 = vand.u32 8388607, %v7358_v27  ;;  %v5810_v47 = vadd.f32 %v3871_v7, %v914_v35 }
 0x167   : > { %v3876_v39 = vadd.s32 4294967169, %v1032_v32  ;;  %v7353_v40 = vand.u32 2147483647, %v5786_v34  ;;  %v1239_v43 = vand.u32 2139095040, %v5786_v34  ;;  %v1036_v45 = vor.u32 8388608, %v1035_v33 }
 0x168   : > { %v3872_v42 = vadd.s32 4294967169, %v928_v37  ;;  %v932_v17 = vor.u32 8388608, %v931_v38 }
 0x169   : > { %v1038_v46 = vadd.s32 1, %v3876_v39  ;;  %v1240_v28 = vshrl.u32 %v1239_v43, 23  ;;  %v5821_v29 = vand.u32 8388607, %v7353_v40 }
 0x16a   : > { %v934_v24 = vadd.s32 1, %v3872_v42  ;;  %v5828_v42 = vshll.u32 %v1036_v45, 8  ;;  %v5832_v26 = vshll.u32 %v932_v17, 8  ;;  %v7362_v17 = vmov 920167782  }
 0x16b   : > { %vm1039_vm1 = vcmp.gt.s32.totalorder %v1038_v46, 0  ;;  %v3884_v33 = vadd.s32 4294967169, %v1240_v28 }
 0x16c   : > { %v1040_v7 = vsel %vm1039_vm1, %v1038_v46, 0  ;;  %vm935_vm2 = vcmp.gt.s32.totalorder %v934_v24, 0 }
 0x16d   : > { %v1041_v37 = vshrl.u32 %v1040_v7, 5  ;;  %v1042_v39 = vand.u32 31, %v1040_v7  ;;  %v936_v31 = vsel %vm935_vm2, %v934_v24, 0  ;;  %v5836_v19 = vadd.s32 1, %v3884_v33 }
 0x16e   : > { %v5830_v43 = vshrl.u32 %v936_v31, 5  ;;  %v938_v20 = vand.u32 31, %v936_v31  ;;  %v7366_v24 = vmov 2475754826  }
 0x16f   : > { %v1043_v28 = vsub.s32 32, %v1042_v39  ;;  %v1045_v25 = vshll.u32 %v7370_v30, %v1042_v39  ;;  %v1048_v7 = vshll.u32 %v7366_v24, %v1042_v39  ;;  %v1051_v45 = vshll.u32 %v7364_v8, %v1042_v39 }
 0x170   : > { %v1054_v4 = vshll.u32 %v7360_v6, %v1042_v39  ;;  %v1057_v3 = vshll.u32 %v7362_v17, %v1042_v39  ;;  %vm1060_vm3 = vcmp.lt.s32.totalorder %v1041_v37, 1  ;;  %vm1061_vm4 = vcmp.lt.s32.totalorder %v1041_v37, 2 }
 0x171   : > { %v1046_v62 = vshrl.u32 %v7366_v24, %v1043_v28  ;;  %v1049_v31 = vshrl.u32 %v7364_v8, %v1043_v28  ;;  %v1052_v33 = vshrl.u32 %v7360_v6, %v1043_v28  ;;  %v1044_v61 = vshrl.u32 %v7370_v30, %v1043_v28 }
 0x172   : > { %v1055_v40 = vshrl.u32 %v7362_v17, %v1043_v28  ;;  %v1058_v56 = vshrl.u32 %v7368_v57, %v1043_v28  ;;  %v939_v27 = vsub.s32 32, %v938_v20  ;;  %vm1062_vm5 = vcmp.lt.s32.totalorder %v1041_v37, 3 }
 0x173   : > { %v1047_v52 = vor.u32 %v1046_v62, %v1045_v25  ;;  %v1050_v51 = vor.u32 %v1049_v31, %v1048_v7  ;;  %v1053_v39 = vor.u32 %v1052_v33, %v1051_v45  ;;  %vm1063_vm6 = vcmp.lt.s32.totalorder %v1041_v37, 4 }
 0x174   : > { %v1056_v23 = vor.u32 %v1055_v40, %v1054_v4  ;;  %v1059_v46 = vor.u32 %v1058_v56, %v1057_v3  ;;  %v941_v28 = vshll.u32 %v7370_v30, %v938_v20  ;;  %v7442_v7 = vmov 2475754826  }
 0x175   : > { %v1064_v38 = vsel %vm1060_vm3, %v1044_v61, %v1047_v52  ;;  %v1065_v35 = vsel %vm1063_vm6, %v1053_v39, 2102212464  ;;  %v1068_v32 = vsel %vm1060_vm3, %v1047_v52, %v1050_v51  ;;  %v1072_v6 = vsel %vm1060_vm3, %v1050_v51, %v1053_v39 }
 0x176   : > { %v1066_v17 = vsel %vm1062_vm5, %v1050_v51, %v1065_v35  ;;  %v1069_v8 = vsel %vm1063_vm6, %v1056_v23, 920167782  ;;  %v1073_v24 = vsel %vm1063_vm6, %v1059_v46, 1326507024  ;;  %v942_v45 = vshrl.u32 %v7442_v7, %v939_v27 }
 0x177   : > { %v1070_v62 = vsel %vm1062_vm5, %v1053_v39, %v1069_v8  ;;  %v1074_v25 = vsel %vm1062_vm5, %v1056_v23, %v1073_v24  ;;  %v944_v56 = vshll.u32 %v7442_v7, %v938_v20  ;;  %v1067_v3 = vsel %vm1061_vm4, %v1064_v38, %v1066_v17 }
 0x178   : > { %v1071_v61 = vsel %vm1061_vm4, %v1068_v32, %v1070_v62  ;;  %v1075_v4 = vsel %vm1061_vm4, %v1072_v6, %v1074_v25  ;;  %v7443_v52 = vmov 2131351028   ;;  %v943_v23 = vor.u32 %v942_v45, %v941_v28 }
 0x179   : > { %v945_v40 = vshrl.u32 %v7443_v52, %v939_v27  ;;  %v5860_v51 = vmul.u32.u64.low %v5828_v42, %v1075_v4  ;;  %v5861_v35 = vmul.u32.u64.high %v5828_v42, %v1075_v4, %v5860_v51  ;;  %v947_v31 = vshll.u32 %v7443_v52, %v938_v20 }
 0x17a   : > { %v5864_v46 = vmul.u32.u64.low %v5828_v42, %v1071_v61  ;;  %v5865_v8 = vmul.u32.u64.high %v5828_v42, %v1071_v61, %v5864_v46  ;;  %v7444_v33 = vmov 2102212464   ;;  %v940_v32 = vshrl.u32 %v7370_v30, %v939_v27 }
 0x17b   : > { %v946_v24 = vor.u32 %v945_v40, %v944_v56  ;;  %v948_v38 = vshrl.u32 %v7444_v33, %v939_v27  ;;  %v950_v6 = vshll.u32 %v7444_v33, %v938_v20  ;;  %v7445_v37 = vmov 920167782  }
 0x17c   : > { %v951_v17 = vshrl.u32 %v7445_v37, %v939_v27  ;;  %v954_v39 = vshrl.u32 %v7368_v57, %v939_v27  ;;  %v1083_v62 = vmul.u32 %v5828_v42, %v1067_v3  ;;  %v953_v61 = vshll.u32 %v7445_v37, %v938_v20 }
 0x17d   : > { %v949_v25 = vor.u32 %v948_v38, %v947_v31  ;;  %vm956_vm7 = vcmp.lt.s32.totalorder %v5830_v43, 1  ;;  %vm1085_vm8 = vc.u32 %v5861_v35, %v5864_v46  ;;  %v1086_v28 = vadd.s32 1, %v5865_v8 }
 0x17e   : > { %v952_v45 = vor.u32 %v951_v17, %v950_v6  ;;  %vm957_vm9 = vcmp.lt.s32.totalorder %v5830_v43, 2  ;;  %v955_v56 = vor.u32 %v954_v39, %v953_v61  ;;  %vm958_vm10 = vcmp.lt.s32.totalorder %v5830_v43, 3 }
 0x17f   : > { %vm959_vm11 = vcmp.lt.s32.totalorder %v5830_v43, 4  ;;  %v964_v27 = vsel %vm956_vm7, %v943_v23, %v946_v24  ;;  %v1087_v42 = vsel %vm1085_vm8, %v1086_v28, %v5865_v8  ;;  %v968_v20 = vsel %vm956_vm7, %v946_v24, %v949_v25 }
 0x180   : > { %v961_v3 = vsel %vm959_vm11, %v949_v25, 2102212464  ;;  %v965_v4 = vsel %vm959_vm11, %v952_v45, 920167782  ;;  %v1088_v40 = vadd.s32 %v1087_v42, %v1083_v62  ;;  %v960_v51 = vsel %vm956_vm7, %v940_v32, %v943_v23 }
 0x181   : > { %v966_v31 = vsel %vm958_vm10, %v949_v25, %v965_v4  ;;  %v969_v38 = vsel %vm959_vm11, %v955_v56, 1326507024  ;;  %v962_v57 = vsel %vm958_vm10, %v946_v24, %v961_v3  ;;  %vm1247_vm12 = vcmp.gt.s32.totalorder %v5836_v19, 0 }
 0x182   : > { %v967_v6 = vsel %vm957_vm9, %v964_v27, %v966_v31  ;;  %v970_v17 = vsel %vm958_vm10, %v952_v45, %v969_v38  ;;  %v1089_v39 = vadd.s32 536870912, %v1088_v40  ;;  %v1248_v24 = vsel %vm1247_vm12, %v5836_v19, 0 }
 0x183   : > { %v971_v61 = vsel %vm957_vm9, %v968_v20, %v970_v17  ;;  %v5888_v8 = vmul.u32.u64.low %v5832_v26, %v967_v6  ;;  %v5889_v28 = vmul.u32.u64.high %v5832_v26, %v967_v6, %v5888_v8  ;;  %v1135_v62 = vand.u32 2139095040, %v5810_v47 }
 0x184   : > { %v5893_v23 = vmul.u32.u64.low %v5832_v26, %v971_v61  ;;  %v5894_v32 = vmul.u32.u64.high %v5832_v26, %v971_v61, %v5893_v23  ;;  %v1090_v25 = vshrl.u32 %v1089_v39, 30  ;;  %v963_v45 = vsel %vm957_vm9, %v960_v51, %v962_v57 }
 0x185   : > { %v1250_v56 = vand.u32 31, %v1248_v24  ;;  %v7446_v27 = vand.u32 4294901760, %v5801_v41  ;;  %v7447_v42 = vand.u32 4294901760, %v5808_v44  ;;  %v982_v20 = vadd.s32 1, %v5889_v28 }
 0x186   : > { %v1091_v4 = vshll.u32 %v1090_v25, 30  ;;  %v7448_v19 = vand.u32 2147483647, %v5810_v47  ;;  %v979_v43 = vmul.u32 %v5832_v26, %v963_v45  ;;  %vm981_vm14 = vc.u32 %v5894_v32, %v5888_v8 }
 0x187   : > { %v5905_v3 = vpack.c.bf16 %v7447_v42, %v7446_v27  ;;  %v1251_v31 = vsub.s32 32, %v1250_v56  ;;  %v7449_v57 = vor.u32 8388608, %v5821_v29  ;;  %v1136_v44 = vshrl.u32 %v1135_v62, 23 }
 0x188   : > { %v5910_v38 = vand.u32 8388607, %v7448_v19  ;;  %v1084_v51 = vadd.s32 %v5864_v46, %v5861_v35  ;;  %v5921_v6 = vsub.s32 %v1088_v40, %v1091_v4  ;;  %v983_v17 = vsel %vm981_vm14, %v982_v20, %v5889_v28 }
 0x189   : > { %v5917_v41 = vshll.u32 %v7449_v57, 8  ;;  %4777 = vmatprep.subr.bf16.mxu1 %v5905_v3  ;;  %v1253_v39 = vshll.u32 %v7370_v30, %v1250_v56  ;;  %v984_v61 = vadd.s32 %v983_v17, %v979_v43  ;;  %v1254_v26 = vshrl.u32 %v7442_v7, %v1251_v31 }
 0x18a   : > { %v1256_v23 = vshll.u32 %v7442_v7, %v1250_v56  ;;  %v1257_v29 = vshrl.u32 %v7443_v52, %v1251_v31  ;;  %v1094_v45 = vsub.s32 0, %v5921_v6  ;;  %v1114_v62 = vsub.s32 4, %v1090_v25 }
 0x18b   : > { %v1259_v27 = vshll.u32 %v7443_v52, %v1250_v56  ;;  %v1260_v35 = vshrl.u32 %v7444_v33, %v1251_v31  ;;  %v985_v46 = vadd.s32 536870912, %v984_v61  ;;  %v1249_v40 = vshrl.u32 %v1248_v24, 5 }
 0x18c   : > { %v1255_v42 = vor.u32 %v1254_v26, %v1253_v39  ;;  %v1258_v28 = vor.u32 %v1257_v29, %v1256_v23  ;;  %v3877_v4 = vmin.u32 %v1094_v45, %v5921_v6  ;;  %v1262_v19 = vshll.u32 %v7444_v33, %v1250_v56 }
 0x18d   : > { %v1261_v20 = vor.u32 %v1260_v35, %v1259_v27  ;;  %v1263_v43 = vshrl.u32 %v7445_v37, %v1251_v31  ;;  %v5934_v57 = vshrl.u32 %v985_v46, 30  ;;  %v1265_v17 = vshll.u32 %v7445_v37, %v1250_v56 }
 0x18e   : > { %v7450_v30 = vmov 1326507024   ;;  %v3880_v36 = vadd.s32 4294967169, %v1136_v44  ;;  %v1096_v18 = vclz %v3877_v4  ;;  %v1115_v24 = vsel %vm1030_vm13, %v1114_v62, %v1090_v25 }
 0x18f   : > { %v1266_v13 = vshrl.u32 %v7450_v30, %v1251_v31  ;;  %v7451_v39 = vmov 683565275   ;;  %v1264_v23 = vor.u32 %v1263_v43, %v1262_v19  ;;  %v987_v29 = vshll.u32 %v5934_v57, 30 }
 0x190   : > { %v1252_v26 = vshrl.u32 %v7451_v39, %v1251_v31  ;;  %vm1268_vm15 = vcmp.lt.s32.totalorder %v1249_v40, 1  ;;  %vm1271_vm0 = vcmp.lt.s32.totalorder %v1249_v40, 4  ;;  %v3878_v27 = vadd.s32 4294967294, %v1096_v18 }
 0x191   : > { %v1267_v45 = vor.u32 %v1266_v13, %v1265_v17  ;;  %vm1269_vm1 = vcmp.lt.s32.totalorder %v1249_v40, 2  ;;  %v1273_v35 = vsel %vm1271_vm0, %v1261_v20, 2102212464  ;;  %v1276_v56 = vsel %vm1268_vm15, %v1255_v42, %v1258_v28 }
 0x192   : > { %v5943_v46 = vsub.s32 %v984_v61, %v987_v29  ;;  %vm1270_vm2 = vcmp.lt.s32.totalorder %v1249_v40, 3  ;;  %v1272_v44 = vsel %vm1268_vm15, %v1252_v26, %v1255_v42  ;;  %v1277_v4 = vsel %vm1271_vm0, %v1264_v23, 920167782 }
 0x193   : > { %vm3879_vm3 = vcmp.lt.s32.totalorder %v3878_v27, 0  ;;  %v1274_v25 = vsel %vm1270_vm2, %v1258_v28, %v1273_v35  ;;  %v1278_v31 = vsel %vm1270_vm2, %v1261_v20, %v1277_v4  ;;  %v1280_v62 = vsel %vm1268_vm15, %v1258_v28, %v1261_v20 }
 0x194   : > { %v1099_v19 = vsel %vm3879_vm3, 0, %v3878_v27  ;;  %v990_v13 = vsub.s32 0, %v5943_v46  ;;  %v1279_v43 = vsel %vm1269_vm1, %v1276_v56, %v1278_v31  ;;  %v1281_v18 = vsel %vm1271_vm0, %v1267_v45, 1326507024 }
 0x195   : > { %v1100_v17 = vsub.s32 32, %v1099_v19  ;;  %v1101_v11 = vshll.u32 %v5921_v6, %v1099_v19  ;;  %v1104_v61 = vsub.s32 4294967266, %v1099_v19  ;;  %v1282_v29 = vsel %vm1270_vm2, %v1264_v23, %v1281_v18 }
 0x196   : > { %v3873_v42 = vmin.u32 %v990_v13, %v5943_v46  ;;  %v1283_v26 = vsel %vm1269_vm1, %v1280_v62, %v1282_v29  ;;  %v5953_v35 = vmul.u32.u64.low %v5917_v41, %v1279_v43  ;;  %v5954_v4 = vmul.u32.u64.high %v5917_v41, %v1279_v43, %v5953_v35 }
 0x197   : > { %v1102_v28 = vshrl.u32 %v1084_v51, %v1100_v17  ;;  %v1105_v20 = vadd.s32 127, %v1104_v61  ;;  %v5958_v27 = vmul.u32.u64.low %v5917_v41, %v1283_v26  ;;  %v5959_v56 = vmul.u32.u64.high %v5917_v41, %v1283_v26, %v5958_v27 }
 0x198   : > { %v7452_v45 = vand.u32 2147483647, %v5760_v16  ;;  %v992_v23 = vclz %v3873_v42  ;;  %v1275_v31 = vsel %vm1269_vm1, %v1272_v44, %v1274_v25  ;;  %v1142_v62 = vadd.s32 1, %v3880_v36 }
 0x199   : > { %v1103_v19 = vor.u32 %v1102_v28, %v1101_v11  ;;  %v1106_v13 = vshll.u32 %v1105_v20, 23  ;;  %vm926_vm5 = vcmp.lt.s32.totalorder %v5773_v22, 0  ;;  %v1294_v18 = vadd.s32 1, %v5954_v4 }
 0x19a   : > { %vm5963_vm4 = vcmp.le.f32.partialorder %v7452_v45, 0.7853982  ;;  %v3874_v43 = vadd.s32 4294967294, %v992_v23  ;;  %v1140_v17 = vor.u32 8388608, %v5910_v38  ;;  %vm1143_vm6 = vcmp.gt.s32.totalorder %v1142_v62, 0 }
 0x19b   : > { %v1117_v51 = vsel %vm5963_vm4, 0, %v1115_v24  ;;  %v1107_v61 = vor.u32 4788187, %v1106_v13  ;;  %v1010_v29 = vsub.s32 4, %v5934_v57  ;;  %v1291_v40 = vmul.u32 %v5917_v41, %v1275_v31 }
 0x19c   : > { %vm1293_vm7 = vc.u32 %v5959_v56, %v5953_v35  ;;  %v1121_v11 = vadd.s32 3, %v1117_v51  ;;  %vm3875_vm8 = vcmp.lt.s32.totalorder %v3874_v43, 0  ;;  %v1144_v24 = vsel %vm1143_vm6, %v1142_v62, 0 }
 0x19d   : > { %v1295_v36 = vsel %vm1293_vm7, %v1294_v18, %v5954_v4  ;;  %v1108_v44 = vand.u32 2147483647, %v1107_v61  ;;  %v1110_v25 = vcvt.s32.f32 %v1103_v19  ;;  %v995_v42 = vsel %vm3875_vm8, 0, %v3874_v43 }
 0x19e   : > { %v1296_v26 = vadd.s32 %v1295_v36, %v1291_v40  ;;  %v980_v38 = vadd.s32 %v5888_v8, %v5894_v32  ;;  %v996_v28 = vsub.s32 32, %v995_v42  ;;  %v1000_v20 = vsub.s32 4294967266, %v995_v42 }
 0x19f   : > { %v1146_v27 = vand.u32 31, %v1144_v24  ;;  %v1111_v45 = vmul.f32 %v1110_v25, %v1108_v44  ;;  %v7455_v41 = vand.u32 2147483647, %v5773_v22  ;;  %v5989_v4 = vsel %vm926_vm5, %v1010_v29, %v5934_v57 }
 0x1a0   : > { %v1297_v31 = vadd.s32 536870912, %v1296_v26  ;;  %v997_v62 = vshll.u32 %v5943_v46, %v995_v42  ;;  %v998_v19 = vshrl.u32 %v980_v38, %v996_v28  ;;  %v1001_v8 = vadd.s32 127, %v1000_v20 }
 0x1a1   : > { %vm5982_vm9 = vcmp.le.f32.partialorder %v7455_v41, 0.7853982  ;;  %v1147_v32 = vsub.s32 32, %v1146_v27  ;;  %v1112_v13 = vxor.u32 2147483648, %v1111_v45  ;;  %v5992_v51 = vand.u32 3, %v1121_v11 }
 0x1a2   : > { %v5994_v43 = vshrl.u32 %v1297_v31, 30  ;;  %v5996_v18 = vshll.u32 %v1140_v17, 8  ;;  %v999_v61 = vor.u32 %v998_v19, %v997_v62  ;;  %v1002_v40 = vshll.u32 %v1001_v8, 23 }
 0x1a3   : > { %v1150_v36 = vshrl.u32 %v7442_v7, %v1147_v32  ;;  %v1013_v57 = vsel %vm5982_vm9, 0, %v5989_v4  ;;  %v1113_v46 = vsel %vm1030_vm13, %v1112_v13, %v1111_v45  ;;  %v1145_v44 = vshrl.u32 %v1144_v24, 5 }
 0x1a4   : > { %v1299_v29 = vshll.u32 %v5994_v43, 30  ;;  %v1153_v11 = vshrl.u32 %v7443_v52, %v1147_v32  ;;  %v1116_v17 = vsel %vm5963_vm4, %v5760_v16, %v1113_v46  ;;  %v1003_v25 = vor.u32 4788187, %v1002_v40 }
 0x1a5   : > { %v1149_v42 = vshll.u32 %v7451_v39, %v1146_v27  ;;  %v1152_v38 = vshll.u32 %v7442_v7, %v1146_v27  ;;  %5318 = vcosq.f32 %v1116_v17  ;;  %v1006_v28 = vcvt.s32.f32 %v999_v61 }
 0x1a6   : > { %v6011_v20 = vsub.s32 %v1296_v26, %v1299_v29  ;;  %v1155_v45 = vshll.u32 %v7443_v52, %v1146_v27  ;;  %5320 = vsinq.f32 %v1116_v17  ;;  %v1004_v41 = vand.u32 2147483647, %v1003_v25 }
 0x1a7   : > { %v1151_v24 = vor.u32 %v1150_v36, %v1149_v42  ;;  %v1156_v4 = vshrl.u32 %v7444_v33, %v1147_v32  ;;  %v1154_v6 = vor.u32 %v1153_v11, %v1152_v38  ;;  %v1158_v62 = vshll.u32 %v7444_v33, %v1146_v27 }
 0x1a8   : > { %v1302_v31 = vsub.s32 0, %v6011_v20  ;;  %v1159_v19 = vshrl.u32 %v7445_v37, %v1147_v32  ;;  %v1007_v8 = vmul.f32 %v1006_v28, %v1004_v41  ;;  %v1161_v61 = vshll.u32 %v7445_v37, %v1146_v27 }
 0x1a9   : > { %v1157_v13 = vor.u32 %v1156_v4, %v1155_v45  ;;  %v1162_v26 = vshrl.u32 %v7450_v30, %v1147_v32  ;;  %vm1164_vm10 = vcmp.lt.s32.totalorder %v1145_v44, 1  ;;  %vm1165_vm11 = vcmp.lt.s32.totalorder %v1145_v44, 2 }
 0x1aa   : > { %v3885_v40 = vmin.u32 %v1302_v31, %v6011_v20  ;;  %v1160_v46 = vor.u32 %v1159_v19, %v1158_v62  ;;  %v1008_v36 = vxor.u32 2147483648, %v1007_v8  ;;  %v1148_v29 = vshrl.u32 %v7451_v39, %v1147_v32 }
 0x1ab   : > { %v1163_v17 = vor.u32 %v1162_v26, %v1161_v61  ;;  %vm1167_vm12 = vcmp.lt.s32.totalorder %v1145_v44, 4  ;;  %vm1166_vm13 = vcmp.lt.s32.totalorder %v1145_v44, 3  ;;  %v1172_v25 = vsel %vm1164_vm10, %v1151_v24, %v1154_v6 }
 0x1ac   : > { %v1304_v11 = vclz %v3885_v40  ;;  %v1173_v42 = vsel %vm1167_vm12, %v1160_v46, 920167782  ;;  %v1009_v27 = vsel %vm926_vm5, %v1008_v36, %v1007_v8  ;;  %v1168_v38 = vsel %vm1164_vm10, %v1148_v29, %v1151_v24 }
 0x1ad   : > { %v1169_v28 = vsel %vm1167_vm12, %v1157_v13, 2102212464  ;;  %v1174_v45 = vsel %vm1166_vm13, %v1157_v13, %v1173_v42  ;;  %v1012_v41 = vsel %vm5982_vm9, %v5773_v22, %v1009_v27  ;;  %v1176_v31 = vsel %vm1164_vm10, %v1154_v6, %v1157_v13 }
 0x1ae   : > { %v3886_v32 = vadd.s32 4294967294, %v1304_v11  ;;  %v1175_v4 = vsel %vm1165_vm11, %v1172_v25, %v1174_v45  ;;  %5322 = vcosq.f32 %v1012_v41  ;;  %v1177_v62 = vsel %vm1167_vm12, %v1163_v17, 1326507024 }
 0x1af   : > { %v6033_v19 = vmul.u32.u64.low %v5996_v18, %v1175_v4  ;;  %v6034_v61 = vmul.u32.u64.high %v5996_v18, %v1175_v4, %v6033_v19  ;;  %v5319_v24 = vpop.eup %5318  ;;  %5324 = vsinq.f32 %v1012_v41  ;;  %v1170_v8 = vsel %vm1166_vm13, %v1154_v6, %v1169_v28 }
 0x1b0   : > { %vm3887_vm14 = vcmp.lt.s32.totalorder %v3886_v32, 0  ;;  %v1178_v23 = vsel %vm1166_vm13, %v1160_v46, %v1177_v62  ;;  %v5321_v26 = vpop.eup %5320  ;;  %vm1123_vm15 = vcmp.lt.s32.totalorder %v5992_v51, 2  ;;  %v1292_v13 = vadd.s32 %v5953_v35, %v5959_v56 }
 0x1b1   : > { %v1307_v40 = vsel %vm3887_vm14, 0, %v3886_v32  ;;  %v1179_v36 = vsel %vm1165_vm11, %v1176_v31, %v1178_v23  ;;  %v1017_v11 = vadd.s32 3, %v1013_v57  ;;  %v1171_v42 = vsel %vm1165_vm11, %v1168_v38, %v1170_v8 }
 0x1b2   : > { %v1308_v29 = vsub.s32 32, %v1307_v40  ;;  %v1312_v17 = vsub.s32 4294967266, %v1307_v40  ;;  %v1309_v25 = vshll.u32 %v6011_v20, %v1307_v40  ;;  %v1190_v45 = vadd.s32 1, %v6034_v61 }
 0x1b3   : > { %v6046_v6 = vmul.u32.u64.low %v5996_v18, %v1179_v36  ;;  %v6047_v27 = vmul.u32.u64.high %v5996_v18, %v1179_v36, %v6046_v6  ;;  %v1125_v41 = vxor.u32 2147483648, %v5321_v26  ;;  %vm1124_vm0 = vcmp.eq.s32.totalorder %v5992_v51, 0 }
 0x1b4   : > { %v1310_v46 = vshrl.u32 %v1292_v13, %v1308_v29  ;;  %v1313_v28 = vadd.s32 127, %v1312_v17  ;;  %vm1127_vm1 = vcmp.eq.s32.totalorder %v5992_v51, 2  ;;  %v1128_v35 = vxor.u32 2147483648, %v5319_v24 }
 0x1b5   : > { %v7458_v56 = vand.u32 4294901760, %v5685_v49  ;;  %vm1016_vm2 = vweird.f32 %v5773_v22  ;;  %v1126_v38 = vsel %vm1124_vm0, %v5319_v24, %v1125_v41  ;;  %v7459_v32 = vand.u32 4294901760, %v5687_v50 }
 0x1b6   : > { %v1311_v44 = vor.u32 %v1310_v46, %v1309_v25  ;;  %v1314_v20 = vshll.u32 %v1313_v28, 23  ;;  %v1187_v31 = vmul.u32 %v5996_v18, %v1171_v42  ;;  %vm1189_vm3 = vc.u32 %v6047_v27, %v6033_v19 }
 0x1b7   : > { %v6055_v57 = vsub.f32 %v5685_v49, %v7458_v56  ;;  %v6061_v4 = vsub.f32 %v5687_v50, %v7459_v32  ;;  %v1018_v62 = vand.u32 3, %v1017_v11  ;;  %v1129_v8 = vsel %vm1127_vm1, %v1128_v35, %v5321_v26 }
 0x1b8   : > { %v1315_v23 = vor.u32 4788187, %v1314_v20  ;;  %v1191_v49 = vsel %vm1189_vm3, %v1190_v45, %v6034_v61  ;;  %vm1120_vm4 = vweird.f32 %v5760_v16  ;;  %v1130_v24 = vsel %vm1123_vm15, %v1126_v38, %v1129_v8  ;;  %v5323_v40 = vpop.eup %5322 }
 0x1b9   : > { %v1318_v36 = vcvt.s32.f32 %v1311_v44  ;;  %v1192_v13 = vadd.s32 %v1191_v49, %v1187_v31  ;;  %v1131_v50 = vsel %vm1120_vm4, nan, %v1130_v24  ;;  %v1501_v29 = vand.u32 4294901760, %v6055_v57  ;;  %v5325_v18 = vpop.eup %5324 }
 0x1ba   : > { %v1316_v17 = vand.u32 2147483647, %v1315_v23  ;;  %v1024_v25 = vxor.u32 2147483648, %v5323_v40  ;;  %v6071_v42 = vand.u32 4294901760, %v1131_v50  ;;  %v1508_v26 = vand.u32 4294901760, %v6061_v4 }
 0x1bb   : > { %v1193_v11 = vadd.s32 536870912, %v1192_v13  ;;  %vm1019_vm5 = vcmp.lt.s32.totalorder %v1018_v62, 2  ;;  %v1021_v61 = vxor.u32 2147483648, %v5325_v18  ;;  %vm1023_vm6 = vcmp.eq.s32.totalorder %v1018_v62, 2 }
 0x1bc   : > { %v1319_v16 = vmul.f32 %v1318_v36, %v1316_v17  ;;  %vm1020_vm7 = vcmp.eq.s32.totalorder %v1018_v62, 0  ;;  %v1025_v51 = vsel %vm1023_vm6, %v1024_v25, %v5325_v18  ;;  %v6075_v6 = vsub.f32 %v1131_v50, %v6071_v42 }
 0x1bd   : > { %v6077_v46 = vshrl.u32 %v1193_v11, 30  ;;  %v1022_v28 = vsel %vm1020_vm7, %v5323_v40, %v1021_v61  ;;  %v1502_v45 = vsub.f32 %v6055_v57, %v1501_v29  ;;  %v7460_v41 = vand.u32 4294901760, %v5699_v54 }
 0x1be   : > { %v1320_v56 = vxor.u32 2147483648, %v1319_v16  ;;  %v1026_v44 = vsel %vm1019_vm5, %v1022_v28, %v1025_v51  ;;  %v1509_v20 = vsub.f32 %v6061_v4, %v1508_v26  ;;  %v7461_v38 = vand.u32 4294901760, %v5701_v55 }
 0x1bf   : > { %v6085_v35 = vsub.f32 %v5699_v54, %v7460_v41  ;;  %vm1238_vm8 = vcmp.lt.s32.totalorder %v5786_v34, 0  ;;  %v1195_v31 = vshll.u32 %v6077_v46, 30  ;;  %v1027_v62 = vsel %vm1016_vm2, nan, %v1026_v44 }
 0x1c0   : > { %v6093_v32 = vsub.f32 %v5701_v55, %v7461_v38  ;;  %v7380_v54 = vand.u32 4294901760, %v6075_v6  ;;  %v1321_v8 = vsel %vm1238_vm8, %v1320_v56, %v1319_v16  ;;  %v6102_v23 = vand.u32 4294901760, %v1027_v62 }
 0x1c1   : > { %v1515_v49 = vand.u32 4294901760, %v6085_v35  ;;  %v1322_v24 = vsub.s32 4, %v5994_v43  ;;  %v6106_v55 = vsub.s32 %v1192_v13, %v1195_v31  ;;  %v7462_v36 = vand.u32 2147483647, %v5786_v34 }
 0x1c2   : > { %v7387_v40 = vand.u32 4294901760, %v6093_v32  ;;  %v6116_v50 = vsub.f32 %v1027_v62, %v6102_v23  ;;  %v1503_v18 = vand.u32 4294901760, %v1502_v45  ;;  %v1510_v17 = vand.u32 4294901760, %v1509_v20 }
 0x1c3   : > { %vm6111_vm9 = vcmp.le.f32.partialorder %v7462_v36, 0.7853982  ;;  %v1198_v13 = vsub.s32 0, %v6106_v55  ;;  %v1457_v11 = vsub.f32 %v6075_v6, %v7380_v54  ;;  %v1516_v61 = vsub.f32 %v6085_v35, %v1515_v49 }
 0x1c4   : > { %v1324_v25 = vsel %vm6111_vm9, %v5786_v34, %v1321_v8  ;;  %v7381_v16 = vand.u32 4294901760, %v6116_v50  ;;  %v1523_v51 = vsub.f32 %v6093_v32, %v7387_v40  ;;  %v7465_v28 = vand.u32 4294901760, %v5713_v59 }
 0x1c5   : > { %v7466_v41 = vand.u32 4294901760, %v5715_v60  ;;  %v1323_v44 = vsel %vm1238_vm8, %v1322_v24, %v5994_v43  ;;  %v3881_v20 = vmin.u32 %v1198_v13, %v6106_v55  ;;  %v7467_v38 = vand.u32 4294901760, %v5721_v63 }
 0x1c6   : > { %v6135_v45 = vsub.f32 %v5713_v59, %v7465_v28  ;;  %v1447_v59 = vsub.f32 %v6116_v50, %v7381_v16  ;;  %v4780_v62 = vpack.c.bf16 %v1510_v17, %v1503_v18  ;;  %5326 = vcosq.f32 %v1324_v25 }
 0x1c7   : > { %v6140_v56 = vsub.f32 %v5715_v60, %v7466_v41  ;;  %v6149_v31 = vsub.f32 %v5721_v63, %v7467_v38  ;;  %v1200_v36 = vclz %v3881_v20  ;;  %v1458_v28 = vand.u32 4294901760, %v1457_v11 }
 0x1c8   : > { %v7386_v8 = vand.u32 4294901760, %v6135_v45  ;;  %v1517_v43 = vand.u32 4294901760, %v1516_v61  ;;  %v1448_v24 = vand.u32 4294901760, %v1447_v59  ;;  %v1524_v13 = vand.u32 4294901760, %v1523_v51 }
 0x1c9   : > { %v7383_v60 = vand.u32 4294901760, %v6140_v56  ;;  %v3882_v38 = vadd.s32 4294967294, %v1200_v36  ;;  %v7382_v18 = vand.u32 4294901760, %v6149_v31  ;;  %v7468_v17 = vand.u32 4294901760, %v5723_v0 }
 0x1ca   : > { %v1530_v63 = vsub.f32 %v6135_v45, %v7386_v8  ;;  %v7469_v11 = vand.u32 4294901760, %v5725_v1  ;;  %v1325_v51 = vsel %vm6111_vm9, 0, %v1323_v44  ;;  %5328 = vsinq.f32 %v1324_v25  ;;  %4296 = vmatprep.mubr.f32.mxu1 %v1448_v24 }
 0x1cb   : > { %v1537_v41 = vsub.f32 %v6140_v56, %v7383_v60  ;;  %v6166_v54 = vsub.f32 %v5723_v0, %v7468_v17  ;;  %v1188_v20 = vadd.s32 %v6033_v19, %v6047_v27  ;;  %v7470_v59 = vand.u32 4294901760, %v5735_v5  ;;  %4297 = vmatmul.mubr.f32.vlgmr.msra.gmra.mrb[0].mxu1 %v1458_v28 }
 0x1cc   : > { %v6171_v61 = vsub.f32 %v5725_v1, %v7469_v11  ;;  %vm3883_vm10 = vcmp.lt.s32.totalorder %v3882_v38, 0  ;;  %v1531_v0 = vand.u32 4294901760, %v1530_v63  ;;  %v7471_v1 = vand.u32 4294901760, %v5742_v9  ;;  %4779 = vmatpush3.bf16.msra.mxu1 %v5905_v3 }
 0x1cd   : > { %v6180_v36 = vsub.f32 %v5735_v5, %v7470_v59  ;;  %v7384_v17 = vand.u32 4294901760, %v6166_v54  ;;  %v1203_v25 = vsel %vm3883_vm10, 0, %v3882_v38  ;;  %v1538_v19 = vand.u32 4294901760, %v1537_v41  ;;  %4781 = vmatprep.subr.bf16.mxu1 %v4780_v62 }
 0x1ce   : > { %v6186_v22 = vsub.f32 %v5742_v9, %v7471_v1  ;;  %v1544_v27 = vsub.f32 %v6149_v31, %v7382_v18  ;;  %v7385_v5 = vand.u32 4294901760, %v6171_v61  ;;  %v1204_v44 = vsub.s32 32, %v1203_v25 }
 0x1cf   : > { %v1208_v28 = vsub.s32 4294967266, %v1203_v25  ;;  %v4784_v24 = vpack.c.bf16 %v1524_v13, %v1517_v43  ;;  %v1564_v63 = vand.u32 4294901760, %v6180_v36  ;;  %v1329_v11 = vadd.s32 3, %v1325_v51 }
 0x1d0   : > { %v1551_v9 = vsub.f32 %v6166_v54, %v7384_v17  ;;  %v1205_v3 = vshll.u32 %v6106_v55, %v1203_v25  ;;  %v1206_v41 = vshrl.u32 %v1188_v20, %v1204_v44  ;;  %v1571_v59 = vand.u32 4294901760, %v6186_v22  ;;  %4783 = vmatpush3.bf16.msra.mxu1 %v4780_v62  ;;  %v5327_v13 = vpop.eup %5326 }
 0x1d1   : > { %v1209_v38 = vadd.s32 127, %v1208_v28  ;;  %v4788_v1 = vpack.c.bf16 %v1538_v19, %v1531_v0  ;;  %v1545_v16 = vand.u32 4294901760, %v1544_v27  ;;  %v1558_v43 = vsub.f32 %v6171_v61, %v7385_v5  ;;  %4785 = vmatprep.subr.bf16.mxu1 %v4784_v24 }
 0x1d2   : > { %v1207_v18 = vor.u32 %v1206_v41, %v1205_v3  ;;  %v1552_v60 = vand.u32 4294901760, %v1551_v9  ;;  %v1565_v17 = vsub.f32 %v6180_v36, %v1564_v63  ;;  %v7472_v55 = vand.u32 4294901760, %v5744_v10 }
 0x1d3   : > { %v1210_v51 = vshll.u32 %v1209_v38, 23  ;;  %v1330_v25 = vand.u32 3, %v1329_v11  ;;  %v1572_v0 = vsub.f32 %v6186_v22, %v1571_v59  ;;  %v1559_v27 = vand.u32 4294901760, %v1558_v43 }
 0x1d4   : > { %v6206_v20 = vsub.f32 %v5744_v10, %v7472_v55  ;;  %v5329_v19 = vpop.eup %5328  ;;  %4787 = vmatpush3.bf16.msra.mxu1 %v4784_v24  ;;  %v7473_v28 = vand.u32 4294901760, %v5756_v14  ;;  %v7474_v3 = vand.u32 4294901760, %v5771_v21  ;;  %v1214_v11 = vcvt.s32.f32 %v1207_v18 }
 0x1d5   : > { %v1211_v62 = vor.u32 4788187, %v1210_v51  ;;  %4789 = vmatprep.subr.bf16.mxu1 %v4788_v1  ;;  %v4792_v38 = vpack.c.bf16 %v1552_v60, %v1545_v16  ;;  %v1566_v51 = vand.u32 4294901760, %v1565_v17  ;;  %v1218_v24 = vsub.s32 4, %v6077_v46 }
 0x1d6   : > { %v1578_v44 = vand.u32 4294901760, %v6206_v20  ;;  %v6213_v9 = vsub.f32 %v5756_v14, %v7473_v28  ;;  %v6218_v41 = vsub.f32 %v5771_v21, %v7474_v3  ;;  %v7475_v14 = vand.u32 2147483647, %v5810_v47 }
 0x1d7   : > { %v1212_v10 = vand.u32 2147483647, %v1211_v62  ;;  %v1573_v62 = vand.u32 4294901760, %v1572_v0  ;;  %vm1134_vm12 = vcmp.lt.s32.totalorder %v5810_v47, 0  ;;  %vm1332_vm13 = vcmp.eq.s32.totalorder %v1330_v25, 0 }
 0x1d8   : > { %v1579_v43 = vsub.f32 %v6206_v20, %v1578_v44  ;;  %v1585_v55 = vand.u32 4294901760, %v6213_v9  ;;  %v1592_v5 = vand.u32 4294901760, %v6218_v41  ;;  %vm6226_vm11 = vcmp.le.f32.partialorder %v7475_v14, 0.7853982  ;;  %4791 = vmatpush3.bf16.msra.mxu1 %v4788_v1 }
 0x1d9   : > { %v1215_v21 = vmul.f32 %v1214_v11, %v1212_v10  ;;  %vm1335_vm14 = vcmp.eq.s32.totalorder %v1330_v25, 2  ;;  %4793 = vmatprep.subr.bf16.mxu1 %v4792_v38  ;;  %v4796_v17 = vpack.c.bf16 %v1566_v51, %v1559_v27  ;;  %v1219_v14 = vsel %vm1134_vm12, %v1218_v24, %v6077_v46 }
 0x1da   : > { %v1580_v16 = vand.u32 4294901760, %v1579_v43  ;;  %v1586_v60 = vsub.f32 %v6213_v9, %v1585_v55  ;;  %v1593_v3 = vsub.f32 %v6218_v41, %v1592_v5  ;;  %v1333_v8 = vxor.u32 2147483648, %v5329_v19 }
 0x1db   : > { %v1216_v18 = vxor.u32 2147483648, %v1215_v21  ;;  %v1336_v40 = vxor.u32 2147483648, %v5327_v13  ;;  %v6238_v0 = vpack.c.bf16 %v1508_v26, %v1501_v29  ;;  %v7478_v11 = vand.u32 4294901760, %v6093_v32 }
 0x1dc   : > { %v4800_v10 = vpack.c.bf16 %v1580_v16, %v1573_v62  ;;  %v7479_v27 = vand.u32 4294901760, %v6135_v45  ;;  %v7480_v46 = vand.u32 4294901760, %v6140_v56  ;;  %4795 = vmatpush3.bf16.msra.mxu1 %v4792_v38  ;;  %v1587_v29 = vand.u32 4294901760, %v1586_v60 }
 0x1dd   : > { %v1217_v1 = vsel %vm1134_vm12, %v1216_v18, %v1215_v21  ;;  %v6244_v43 = vpack.c.bf16 %v7478_v11, %v1515_v49  ;;  %v7481_v26 = vand.u32 4294901760, %v6149_v31  ;;  %v7482_v21 = vand.u32 4294901760, %v6166_v54  ;;  %4797 = vmatprep.subr.bf16.mxu1 %v4796_v17 }
 0x1de   : > { %v6250_v51 = vpack.c.bf16 %v7480_v46, %v7479_v27  ;;  %v1220_v24 = vsel %vm6226_vm11, %v5810_v47, %v1217_v1  ;;  %v7483_v49 = vand.u32 4294901760, %v6171_v61  ;;  %v1594_v18 = vand.u32 4294901760, %v1593_v3 }
 0x1df   : > { %v6259_v62 = vpack.c.bf16 %v7482_v21, %v7481_v26  ;;  %5330 = vcosq.f32 %v1220_v24  ;;  %v6265_v11 = vpack.c.bf16 %v1578_v44, %v1571_v59  ;;  %v6267_v27 = vpack.c.bf16 %v1592_v5, %v1585_v55 }
 0x1e0   : > { %v6263_v16 = vpack.c.bf16 %v1564_v63, %v7483_v49  ;;  %v1221_v38 = vsel %vm6226_vm11, 0, %v1219_v14  ;;  %5332 = vsinq.f32 %v1220_v24  ;;  %v1334_v60 = vsel %vm1332_vm13, %v5327_v13, %v1333_v8  ;;  %4799 = vmatpush3.bf16.msra.mxu1 %v4796_v17 }
 0x1e1   : > { %v1337_v1 = vsel %vm1335_vm14, %v1336_v40, %v5329_v19  ;;  %vm1331_vm15 = vcmp.lt.s32.totalorder %v1330_v25, 2  ;;  %v1225_v46 = vadd.s32 3, %v1221_v38  ;;  %4801 = vmatprep.subr.bf16.mxu1 %v4800_v10  ;;  %v4804_v26 = vpack.c.bf16 %v1594_v18, %v1587_v29 }
 0x1e2   : > { %v1338_v63 = vsel %vm1331_vm15, %v1334_v60, %v1337_v1  ;;  %vm1328_vm0 = vweird.f32 %v5786_v34  ;;  %v4808_v44 = vpack.c.bf16 %v5758_v15, %v5753_v12  ;;  %vm1224_vm4 = vweird.f32 %v5810_v47 }
 0x1e3   : > { %v1339_v59 = vsel %vm1328_vm0, nan, %v1338_v63  ;;  %v1226_v5 = vand.u32 3, %v1225_v46  ;;  %v4812_v47 = vpack.c.bf16 %v6061_v4, %v6055_v57  ;;  %v4816_v60 = vpack.c.bf16 %v6093_v32, %v6085_v35 }
 0x1e4   : > { %4803 = vmatpush3.bf16.msra.mxu1 %v4800_v10  ;;  %v6276_v28 = vand.u32 4294901760, %v1339_v59  ;;  %v4820_v1 = vpack.c.bf16 %v6140_v56, %v6135_v45  ;;  %v4824_v57 = vpack.c.bf16 %v6166_v54, %v6149_v31  ;;  %v4828_v4 = vpack.c.bf16 %v6180_v36, %v6171_v61  ;;  %v7485_v45 = vld [vmem:[#allocation12_spill] sm:$0xff]  ;;  %v7486_v56 = vld [vmem:[#allocation13_spill] sm:$0xff]  ;;  %v7487_v31 = vld [vmem:[#allocation14_spill] sm:$0xff] }
 0x1e5   : > { %4805 = vmatprep.subr.bf16.mxu1 %v4804_v26  ;;  %vm1231_vm1 = vcmp.eq.s32.totalorder %v1226_v5, 2  ;;  %vm1228_vm2 = vcmp.eq.s32.totalorder %v1226_v5, 0  ;;  %vm1227_vm3 = vcmp.lt.s32.totalorder %v1226_v5, 2  ;;  %v4832_v35 = vpack.c.bf16 %v6206_v20, %v6186_v22 }
 0x1e6   : > { %v6279_v19 = vsub.f32 %v1339_v59, %v6276_v28  ;;  %v4836_v32 = vpack.c.bf16 %v6218_v41, %v6213_v9  ;;  %v7484_v54 = vand.u32 4294901760, %v6116_v50  ;;  %v7489_v61 = vand.u32 4294901760, %v5753_v12 }
 0x1e7   : > { %v7490_v36 = vand.u32 4294901760, %v5758_v15  ;;  %v7491_v20 = vand.u32 4294901760, %v6075_v6 }
 0x1e8   : > { %4807 = vmatpush3.bf16.msra.mxu1 %v4804_v26  ;;  %v1476_v10 = vand.u32 4294901760, %v6279_v19 }
 0x1e9   : > { %v5331_v55 = vpop.eup %5330  ;;  %4809 = vmatprep.subr.bf16.mxu1 %v4808_v44  ;;  %v4872_v22 = vpack.c.bf16 %v7490_v36, %v7489_v61 }
 0x1ea   : > { %v5333_v8 = vpop.eup %5332  ;;  %v1232_v40 = vxor.u32 2147483648, %v5331_v55  ;;  %v1477_v21 = vsub.f32 %v6279_v19, %v1476_v10 }
 0x1eb   : > { %v1229_v13 = vxor.u32 2147483648, %v5333_v8 }
 0x1ec   : > { %v1233_v25 = vsel %vm1231_vm1, %v1232_v40, %v5333_v8  ;;  %v1478_v38 = vand.u32 4294901760, %v1477_v21 }
 0x1ed   : > { %v1230_v34 = vsel %vm1228_vm2, %v5331_v55, %v1229_v13 }
 0x1ee   : > { %v1234_v17 = vsel %vm1227_vm3, %v1230_v34, %v1233_v25  ;;  %v6422_v25 = vld [vmem:[#allocation5 + $0x30] sm:$0xff]  ;;  %v6424_v34 = vld [vmem:[#allocation5 + $0x38] sm:$0xff] }
 0x1ef   : > { %v1235_v3 = vsel %vm1224_vm4, nan, %v1234_v17 }
 0x1f0   : > { %v6282_v14 = vand.u32 4294901760, %v1235_v3 }
 0x1f2   : > { %v1465_v24 = vsub.f32 %v1235_v3, %v6282_v14  ;;  %v2591_v3 = vand.u32 4294901760, %v6422_v25 }
 0x1f4   : > { %v1466_v29 = vand.u32 4294901760, %v1465_v24  ;;  %v6431_v21 = vsub.f32 %v6422_v25, %v2591_v3 }
 0x1f6   : > { %v1467_v49 = vsub.f32 %v1465_v24, %v1466_v29 }
 0x1f8   : > { %v1468_v18 = vand.u32 4294901760, %v1467_v49 }
 0x1fa   : > { %4299 = vmatprep.mubr.f32.mxu1 %v1468_v18 }
 0x1fb   : > { %4300 = vmatmul.mubr.f32.gmra.mrb[2].mxu1 %v1478_v38 }
 0x1fc   : > { %4334 = vmatprep.mubr.f32.mxu1 %v6102_v23 }
 0x1ff   : > { %4335 = vmatmul.mubr.f32.vlgmr.msra.gmra.mrb[0].mxu1 %v6071_v42 }
 0x200   : > { %4337 = vmatprep.mubr.f32.mxu1 %v6282_v14  ;;  %4811 = vmatpush3.bf16.msra.mxu1 %v4808_v44 }
 0x201   : > { %4813 = vmatprep.subr.bf16.mxu1 %v4812_v47 }
 0x203   : > { %4338 = vmatmul.mubr.f32.gmra.mrb[2].mxu1 %v6276_v28 }
 0x204   : > { %4815 = vmatpush3.bf16.msra.mxu1 %v4812_v47  ;;  %4372 = vmatprep.mubr.f32.mxu1 %v6116_v50  ;;  %v7488_v50 = vld [vmem:[#allocation15_spill] sm:$0xff]  ;;  %v6442_v47 = vld [vmem:[#allocation5 + $0x40] sm:$0xff] }
 0x205   : > { %4817 = vmatprep.subr.bf16.mxu1 %v4816_v60 }
 0x208   : > { %4819 = vmatpush3.bf16.msra.mxu1 %v4816_v60  ;;  %v6444_v60 = vld [vmem:[#allocation5 + $0x48] sm:$0xff] }
 0x209   : > { %4821 = vmatprep.subr.bf16.mxu1 %v4820_v1 }
 0x20c   : > { %4823 = vmatpush3.bf16.msra.mxu1 %v4820_v1  ;;  %v7396_v1 = vand.u32 4294901760, %v6431_v21 }
 0x20d   : > { %4825 = vmatprep.subr.bf16.mxu1 %v4824_v57 }
 0x210   : > { %4827 = vmatpush3.bf16.msra.mxu1 %v4824_v57 }
 0x211   : > { %4829 = vmatprep.subr.bf16.mxu1 %v4828_v4 }
 0x214   : > { %4831 = vmatpush3.bf16.msra.mxu1 %v4828_v4  ;;  %v2597_v4 = vand.u32 4294901760, %v6442_v47 }
 0x215   : > { %4833 = vmatprep.subr.bf16.mxu1 %v4832_v35 }
 0x218   : > { %4835 = vmatpush3.bf16.msra.mxu1 %v4832_v35  ;;  %v2600_v35 = vand.u32 4294901760, %v6444_v60 }
 0x219   : > { %4837 = vmatprep.subr.bf16.mxu1 %v4836_v32 }
 0x21c   : > { %4839 = vmatpush3.bf16.msra.mxu1 %v4836_v32 }
 0x21d   : > { %4841 = vmatprep.subr.bf16.mxu1 %v5683_v48 }
 0x21f   : > { %4373 = vmatmul.mubr.f32.vlgmr.msra.gmra.mrb[0].mxu1 %v6075_v6  ;;  %v6374_v6 = vld [vmem:[#allocation5 + $0x10] sm:$0xff] }
 0x220   : > { %4375 = vmatprep.mubr.f32.mxu1 %v1465_v24  ;;  %4843 = vmatpush3.bf16.msra.mxu1 %v5683_v48  ;;  %v2579_v41 = vand.u32 4294901760, %v6374_v6 }
 0x221   : > { %4845 = vmatprep.subr.bf16.mxu1 %v5697_v53 }
 0x223   : > { %4376 = vmatmul.mubr.f32.gmra.mrb[2].mxu1 %v6279_v19 }
 0x224   : > { %4847 = vmatpush3.bf16.msra.mxu1 %v5697_v53  ;;  %4410 = vmatprep.mubr.f32.mxu1 %v7484_v54 }
 0x225   : > { %4849 = vmatprep.subr.bf16.mxu1 %v5711_v58 }
 0x228   : > { %4851 = vmatpush3.bf16.msra.mxu1 %v5711_v58 }
 0x229   : > { %4853 = vmatprep.subr.bf16.mxu1 %v5731_v2 }
 0x22c   : > { %4855 = vmatpush3.bf16.msra.mxu1 %v5731_v2 }
 0x22d   : > { %4857 = vmatprep.subr.bf16.mxu1 %v7485_v45 }
 0x230   : > { %4859 = vmatpush3.bf16.msra.mxu1 %v7485_v45 }
 0x231   : > { %4861 = vmatprep.subr.bf16.mxu1 %v7486_v56 }
 0x234   : > { %4863 = vmatpush3.bf16.msra.mxu1 %v7486_v56 }
 0x235   : > { %4865 = vmatprep.subr.bf16.mxu1 %v7487_v31 }
 0x238   : > { %4867 = vmatpush3.bf16.msra.mxu1 %v7487_v31 }
 0x239   : > { %4869 = vmatprep.subr.bf16.mxu1 %v7488_v50 }
 0x23c   : > { %4871 = vmatpush3.bf16.msra.mxu1 %v7488_v50 }
 0x23d   : > { %4873 = vmatprep.subr.bf16.mxu1 %v4872_v22 }
 0x23f   : > { %4411 = vmatmul.mubr.f32.vlgmr.msra.gmra.mrb[0].mxu1 %v7491_v20  ;;  %v6466_v20 = vld [vmem:[#allocation5 + $0x58] sm:$0xff] }
 0x240   : > { %4413 = vmatprep.mubr.f32.mxu1 %v1466_v29  ;;  %4875 = vmatpush3.bf16.msra.mxu1 %v4872_v22  ;;  %v6464_v22 = vld [vmem:[#allocation5 + $0x50] sm:$0xff] }
 0x241   : > { %4877 = vmatprep.subr.bf16.mxu1 %v6238_v0 }
 0x243   : > { %4414 = vmatmul.mubr.f32.gmra.mrb[2].mxu1 %v1476_v10 }
 0x244   : > { %4879 = vmatpush3.bf16.msra.mxu1 %v6238_v0  ;;  %4448 = vmatprep.mubr.f32.mxu1 %v6102_v23 }
 0x245   : > { %4881 = vmatprep.subr.bf16.mxu1 %v6244_v43 }
 0x248   : > { %4883 = vmatpush3.bf16.msra.mxu1 %v6244_v43 }
 0x249   : > { %4885 = vmatprep.subr.bf16.mxu1 %v6250_v51 }
 0x24c   : > { %4887 = vmatpush3.bf16.msra.mxu1 %v6250_v51 }
 0x24d   : > { %4889 = vmatprep.subr.bf16.mxu1 %v6259_v62 }
 0x250   : > { %4891 = vmatpush3.bf16.msra.mxu1 %v6259_v62  ;;  %v6391_v62 = vsub.f32 %v6374_v6, %v2579_v41 }
 0x251   : > { %4893 = vmatprep.subr.bf16.mxu1 %v6263_v16 }
 0x252   : > { %v7400_v26 = vand.u32 4294901760, %v6391_v62 }
 0x254   : > { %4895 = vmatpush3.bf16.msra.mxu1 %v6263_v16 }
 0x255   : > { %4897 = vmatprep.subr.bf16.mxu1 %v6265_v11 }
 0x258   : > { %4899 = vmatpush3.bf16.msra.mxu1 %v6265_v11  ;;  %v6398_v11 = vld [vmem:[#allocation5 + $0x20] sm:$0xff] }
 0x259   : > { %4901 = vmatprep.subr.bf16.mxu1 %v6267_v27  ;;  %v2585_v5 = vand.u32 4294901760, %v6398_v11 }
 0x25b   : > { %v6415_v40 = vsub.f32 %v6398_v11, %v2585_v5 }
 0x25c   : > { %4903 = vmatpush3.bf16.msra.mxu1 %v6267_v27  ;;  %v6400_v27 = vld [vmem:[#allocation5 + $0x28] sm:$0xff] }
 0x25d   : > { %4905 = vmatprep.subr.bf16.mxu1 %v5683_v48  ;;  %v2588_v44 = vand.u32 4294901760, %v6400_v27  ;;  %v7398_v10 = vand.u32 4294901760, %v6415_v40 }
 0x25f   : > { %4449 = vmatmul.mubr.f32.vlgmr.msra.gmra.mrb[0].mxu1 %v6071_v42  ;;  %v6420_v13 = vsub.f32 %v6400_v27, %v2588_v44  ;;  %v2725_v18 = vsub.f32 %v6415_v40, %v7398_v10  ;;  %v2563_v27 = vld [vmem:[#allocation5 + $0x70] sm:$0xff] }
 0x260   : > { %4451 = vmatprep.mubr.f32.mxu1 %v6282_v14  ;;  %4907 = vmatpush3.bf16.msra.mxu1 %v5683_v48  ;;  %v2549_v48 = vld [vmem:[#allocation5] sm:$0xff] }
 0x261   : > { %4909 = vmatprep.subr.bf16.mxu1 %v5697_v53  ;;  %v7397_v24 = vand.u32 4294901760, %v6420_v13  ;;  %v2726_v32 = vand.u32 4294901760, %v2725_v18 }
 0x263   : > { %4452 = vmatmul.mubr.f32.gmra.mrb[2].mxu1 %v6276_v28  ;;  %v2732_v38 = vsub.f32 %v6420_v13, %v7397_v24 }
 0x264   : > { %4911 = vmatpush3.bf16.msra.mxu1 %v5697_v53  ;;  %4486 = vmatprep.mubr.f32.mxu1 %v6102_v23  ;;  %v2550_v53 = vld [vmem:[#allocation5 + $0x8] sm:$0xff]  ;;  %v6376_v23 = vld [vmem:[#allocation5 + $0x18] sm:$0xff] }
 0x265   : > { %4913 = vmatprep.subr.bf16.mxu1 %v5711_v58  ;;  %v2582_v0 = vand.u32 4294901760, %v6376_v23  ;;  %v2733_v54 = vand.u32 4294901760, %v2732_v38 }
 0x267   : > { %v6396_v16 = vsub.f32 %v6376_v23, %v2582_v0  ;;  %v4976_v36 = vpack.c.bf16 %v2733_v54, %v2726_v32 }
 0x268   : > { %4915 = vmatpush3.bf16.msra.mxu1 %v5711_v58  ;;  %v2573_v58 = vand.u32 4294901760, %v2549_v48 }
 0x269   : > { %4917 = vmatprep.subr.bf16.mxu1 %v5731_v2  ;;  %v7399_v59 = vand.u32 4294901760, %v6396_v16 }
 0x26a   : > { %v6370_v12 = vsub.f32 %v2549_v48, %v2573_v58 }
 0x26b   : > { %v2718_v8 = vsub.f32 %v6396_v16, %v7399_v59 }
 0x26c   : > { %4919 = vmatpush3.bf16.msra.mxu1 %v5731_v2  ;;  %v2576_v2 = vand.u32 4294901760, %v2550_v53  ;;  %7492 = vst [vmem:[#allocation12_spill] sm:$0xff] %v6370_v12  ;;  %v7402_v9 = vand.u32 4294901760, %v6370_v12 }
 0x26d   : > { %4921 = vmatprep.subr.bf16.mxu1 %v7485_v45  ;;  %v2719_v17 = vand.u32 4294901760, %v2718_v8 }
 0x26e   : > { %v6372_v15 = vsub.f32 %v2550_v53, %v2576_v2  ;;  %v2697_v43 = vsub.f32 %v6370_v12, %v7402_v9  ;;  %v6462_v61 = vpack.c.bf16 %v2576_v2, %v2573_v58 }
 0x270   : > { %4923 = vmatpush3.bf16.msra.mxu1 %v7485_v45  ;;  %7493 = vst [vmem:[#allocation13_spill] sm:$0xff] %v6372_v15  ;;  %v2698_v46 = vand.u32 4294901760, %v2697_v43  ;;  %v2739_v45 = vsub.f32 %v6431_v21, %v7396_v1  ;;  %7494 = vst [vmem:[#allocation14_spill] sm:$0xff] %v6462_v61 }
 0x271   : > { %4925 = vmatprep.subr.bf16.mxu1 %v7486_v56 }
 0x272   : > { %v2740_v48 = vand.u32 4294901760, %v2739_v45 }
 0x274   : > { %4927 = vmatpush3.bf16.msra.mxu1 %v7486_v56 }
 0x275   : > { %4929 = vmatprep.subr.bf16.mxu1 %v7487_v31 }
 0x278   : > { %4931 = vmatpush3.bf16.msra.mxu1 %v7487_v31  ;;  %v6457_v31 = vsub.f32 %v6442_v47, %v2597_v4 }
 0x279   : > { %4933 = vmatprep.subr.bf16.mxu1 %v7488_v50 }
 0x27a   : > { %v7394_v43 = vand.u32 4294901760, %v6457_v31 }
 0x27c   : > { %4935 = vmatpush3.bf16.msra.mxu1 %v7488_v50  ;;  %v6460_v50 = vsub.f32 %v6444_v60, %v2600_v35  ;;  %v2753_v2 = vsub.f32 %v6457_v31, %v7394_v43  ;;  %v6512_v60 = vpack.c.bf16 %v2588_v44, %v2585_v5  ;;  %v6527_v5 = vpack.c.bf16 %v6372_v15, %v6370_v12 }
 0x27d   : > { %4937 = vmatprep.subr.bf16.mxu1 %v6462_v61 }
 0x27e   : > { %7496 = vst [vmem:[#allocation16_spill] sm:$0xff] %v6512_v60 }
 0x27f   : > { %4487 = vmatmul.mubr.f32.vlgmr.msra.gmra.mrb[0].mxu1 %v6071_v42  ;;  %v7401_v42 = vand.u32 4294901760, %v6372_v15 }
 0x280   : > { %4489 = vmatprep.mubr.f32.mxu1 %v6282_v14  ;;  %v2594_v14 = vand.u32 4294901760, %v6424_v34  ;;  %4939 = vmatpush3.bf16.msra.mxu1 %v6462_v61 }
 0x281   : > { %v2704_v51 = vsub.f32 %v6372_v15, %v7401_v42 }
 0x282   : > { %v6434_v49 = vsub.f32 %v6424_v34, %v2594_v14  ;;  %v6492_v34 = vld [vmem:[#allocation5 + $0x60] sm:$0xff]  ;;  %v6514_v32 = vpack.c.bf16 %v2594_v14, %v2591_v3 }
 0x283   : > { %4490 = vmatmul.mubr.f32.gmra.mrb[2].mxu1 %v6276_v28  ;;  %v2705_v63 = vand.u32 4294901760, %v2704_v51  ;;  %v2711_v28 = vsub.f32 %v6391_v62, %v7400_v26  ;;  %v7392_v51 = vand.u32 4294901760, %v6460_v50  ;;  %v2609_v18 = vand.u32 4294901760, %v6492_v34 }
 0x284   : > { %v7395_v57 = vand.u32 4294901760, %v6434_v49  ;;  %7497 = vst [vmem:[#allocation17_spill] sm:$0xff] %v6514_v32 }
 0x285   : > { %v4968_v55 = vpack.c.bf16 %v2705_v63, %v2698_v46  ;;  %v2712_v19 = vand.u32 4294901760, %v2711_v28  ;;  %v2603_v46 = vand.u32 4294901760, %v6464_v22  ;;  %v2606_v63 = vand.u32 4294901760, %v6466_v20 }
 0x286   : > { %v2746_v56 = vsub.f32 %v6434_v49, %v7395_v57  ;;  %v6484_v28 = vpack.c.bf16 %v2582_v0, %v2579_v41  ;;  %v6503_v38 = vsub.f32 %v6492_v34, %v2609_v18  ;;  %v2564_v34 = vld [vmem:[#allocation5 + $0x78] sm:$0xff] }
 0x287   : > { %4969 = vmatprep.subr.bf16.mxu0 %v4968_v55  ;;  %v4972_v29 = vpack.c.bf16 %v2719_v17, %v2712_v19  ;;  %v6487_v8 = vsub.f32 %v6464_v22, %v2603_v46  ;;  %v6490_v25 = vsub.f32 %v6466_v20, %v2606_v63  ;;  %v6494_v19 = vld [vmem:[#allocation5 + $0x68] sm:$0xff]  ;;  %v2754_v17 = vand.u32 4294901760, %v2753_v2 }
 0x288   : > { %4971 = vmatpush3.bf16.msra.mxu0 %v4968_v55  ;;  %v2747_v53 = vand.u32 4294901760, %v2746_v56  ;;  %v2760_v55 = vsub.f32 %v6460_v50, %v7392_v51  ;;  %7495 = vst [vmem:[#allocation15_spill] sm:$0xff] %v6484_v28  ;;  %v2612_v6 = vand.u32 4294901760, %v6494_v19  ;;  %4941 = vmatprep.subr.bf16.mxu1 %v6484_v28  ;;  %v7389_v56 = vand.u32 4294901760, %v6503_v38 }
 0x289   : > { %4973 = vmatprep.subr.bf16.mxu0 %v4972_v29  ;;  %v7391_v23 = vand.u32 4294901760, %v6487_v8  ;;  %v7390_v41 = vand.u32 4294901760, %v6490_v25  ;;  %4943 = vmatpush3.bf16.msra.mxu1 %v6484_v28  ;;  %v6536_v22 = vpack.c.bf16 %v2600_v35, %v2597_v4  ;;  %v6547_v35 = vpack.c.bf16 %v2606_v63, %v2603_v46 }
 0x28a   : > { %v4980_v58 = vpack.c.bf16 %v2747_v53, %v2740_v48  ;;  %v6506_v47 = vsub.f32 %v6494_v19, %v2612_v6  ;;  %4945 = vmatprep.subr.bf16.mxu1 %v6512_v60  ;;  %v2781_v14 = vsub.f32 %v6503_v38, %v7389_v56 }
 0x28b   : > { %v2767_v54 = vsub.f32 %v6487_v8, %v7391_v23  ;;  %v2774_v45 = vsub.f32 %v6490_v25, %v7390_v41  ;;  %7498 = vst [vmem:[#allocation18_spill] sm:$0xff] %v6536_v22  ;;  %7499 = vst [vmem:[#allocation19_spill] sm:$0xff] %v6547_v35 }
 0x28c   : > { %4975 = vmatpush3.bf16.msra.mxu0 %v4972_v29  ;;  %v2761_v29 = vand.u32 4294901760, %v2760_v55  ;;  %v7388_v11 = vand.u32 4294901760, %v6506_v47  ;;  %v2782_v53 = vand.u32 4294901760, %v2781_v14 }
 0x28d   : > { %4977 = vmatprep.subr.bf16.mxu0 %v4976_v36  ;;  %4947 = vmatpush3.bf16.msra.mxu1 %v6512_v60  ;;  %v2768_v44 = vand.u32 4294901760, %v2767_v54  ;;  %v2775_v3 = vand.u32 4294901760, %v2774_v45  ;;  %v2618_v45 = vand.u32 4294901760, %v2564_v34 }
 0x28e   : > { %v4984_v0 = vpack.c.bf16 %v2761_v29, %v2754_v17  ;;  %4949 = vmatprep.subr.bf16.mxu1 %v6514_v32  ;;  %v2788_v20 = vsub.f32 %v6506_v47, %v7388_v11 }
 0x28f   : > { %v4988_v48 = vpack.c.bf16 %v2775_v3, %v2768_v44  ;;  %v6567_v11 = vsub.f32 %v2564_v34, %v2618_v45 }
 0x290   : > { %4979 = vmatpush3.bf16.msra.mxu0 %v4976_v36  ;;  %v3888_v36 = vld [vmem:[%s7334_s4] ss:$0 sm:$0xff]  ;;  %v2789_v55 = vand.u32 4294901760, %v2788_v20 }
 0x291   : > { %4981 = vmatprep.subr.bf16.mxu0 %v4980_v58  ;;  %4951 = vmatpush3.bf16.msra.mxu1 %v6514_v32  ;;  %7502 = vst [vmem:[#allocation22_spill] sm:$0xff] %v6567_v11 }
 0x292   : > { %v4992_v29 = vpack.c.bf16 %v2789_v55, %v2782_v53  ;;  %4953 = vmatprep.subr.bf16.mxu1 %v6536_v22  ;;  %v6563_v55 = vpack.c.bf16 %v2612_v6, %v2609_v18 }
 0x294   : > { %4983 = vmatpush3.bf16.msra.mxu0 %v4980_v58  ;;  %v2615_v58 = vand.u32 4294901760, %v2563_v27  ;;  %7501 = vst [vmem:[#allocation21_spill] sm:$0xff] %v6563_v55 }
 0x295   : > { %4985 = vmatprep.subr.bf16.mxu0 %v4984_v0  ;;  %4955 = vmatpush3.bf16.msra.mxu1 %v6536_v22 }
 0x296   : > { %v6552_v44 = vsub.f32 %v2563_v27, %v2615_v58  ;;  %4957 = vmatprep.subr.bf16.mxu1 %v6547_v35  ;;  %v6572_v51 = vpack.c.bf16 %v2618_v45, %v2615_v58 }
 0x298   : > { %4987 = vmatpush3.bf16.msra.mxu0 %v4984_v0  ;;  %7500 = vst [vmem:[#allocation20_spill] sm:$0xff] %v6552_v44  ;;  %7503 = vst [vmem:[#allocation23_spill] sm:$0xff] %v6572_v51 }
 0x299   : > { %4989 = vmatprep.subr.bf16.mxu0 %v4988_v48  ;;  %4959 = vmatpush3.bf16.msra.mxu1 %v6547_v35 }
 0x29a   : > { %4961 = vmatprep.subr.bf16.mxu1 %v6563_v55 }
 0x29c   : > { %4991 = vmatpush3.bf16.msra.mxu0 %v4988_v48 }
 0x29d   : > { %4993 = vmatprep.subr.bf16.mxu0 %v4992_v29  ;;  %4963 = vmatpush3.bf16.msra.mxu1 %v6563_v55 }
 0x29e   : > { %4965 = vmatprep.subr.bf16.mxu1 %v6572_v51 }
 0x2a0   : > { %4995 = vmatpush3.bf16.msra.mxu0 %v4992_v29 }
 0x2a1   : > { %4967 = vmatpush3.bf16.msra.mxu1 %v6572_v51 }
 0x352   : > { %v4488_v2 = vpop.f32.mrb[0].mxu1 }
 0x353   : > { %v6542_v19 = vadd.f32 %v4488_v2, %v3888_v36  ;;  %v2111_v17 = vpop.f32.mrb[1].mxu1 }
 0x354   : > { %v6545_v4 = vadd.f32 %v3888_v36, %v2111_v17 }
 0x355   : > { %v7405_v0 = vand.u32 2147483647, %v6542_v19  ;;  %v2240_v54 = vand.u32 2139095040, %v6542_v19  ;;  %vm2239_vm1 = vcmp.lt.s32.totalorder %v6542_v19, 0 }
 0x356   : > { %v7404_v3 = vand.u32 2147483647, %v6545_v4  ;;  %v2136_v14 = vand.u32 2139095040, %v6545_v4  ;;  %v4491_v20 = vpop.f32.mrb[2].mxu1 }
 0x357   : > { %v2241_v2 = vshrl.u32 %v2240_v54, 23  ;;  %v2244_v46 = vand.u32 8388607, %v7405_v0  ;;  %v6558_v63 = vadd.f32 %v4491_v20, %v3888_v36  ;;  %v2123_v48 = vpop.f32.mrb[3].mxu1  ;;  %v7393_v54 = vand.u32 4294901760, %v6552_v44 }
 0x358   : > { %v2137_v53 = vshrl.u32 %v2136_v14, 23  ;;  %v2140_v27 = vand.u32 8388607, %v7404_v3  ;;  %v6570_v41 = vadd.f32 %v3888_v36, %v2123_v48 }
 0x359   : > { %v3893_v17 = vadd.s32 4294967169, %v2241_v2  ;;  %v2448_v20 = vand.u32 2139095040, %v6558_v63  ;;  %v2245_v23 = vor.u32 8388608, %v2244_v46  ;;  %v7403_v29 = vand.u32 2147483647, %v6558_v63 }
 0x35a   : > { %v3889_v56 = vadd.s32 4294967169, %v2137_v53  ;;  %v2141_v18 = vor.u32 8388608, %v2140_v27  ;;  %v6580_v34 = vsub.f32 %v6552_v44, %v7393_v54 }
 0x35b   : > { %v2247_v14 = vadd.s32 1, %v3893_v17  ;;  %v2449_v2 = vshrl.u32 %v2448_v20, 23  ;;  %v6584_v53 = vshll.u32 %v2245_v23, 8  ;;  %v6593_v54 = vand.u32 8388607, %v7403_v29 }
 0x35c   : > { %v2143_v6 = vadd.s32 1, %v3889_v56  ;;  %v6589_v20 = vshll.u32 %v2141_v18, 8 }
 0x35d   : > { %vm2248_vm5 = vcmp.gt.s32.totalorder %v2247_v14, 0  ;;  %v3901_v58 = vadd.s32 4294967169, %v2449_v2 }
 0x35e   : > { %v2249_v46 = vsel %vm2248_vm5, %v2247_v14, 0  ;;  %vm2144_vm6 = vcmp.gt.s32.totalorder %v2143_v6, 0 }
 0x35f   : > { %v2250_v48 = vshrl.u32 %v2249_v46, 5  ;;  %v2251_v56 = vand.u32 31, %v2249_v46  ;;  %v2145_v27 = vsel %vm2144_vm6, %v2143_v6, 0  ;;  %v6598_v43 = vadd.s32 1, %v3901_v58 }
 0x360   : > { %v6587_v17 = vshrl.u32 %v2145_v27, 5  ;;  %v2147_v23 = vand.u32 31, %v2145_v27 }
 0x361   : > { %v2252_v2 = vsub.s32 32, %v2251_v56  ;;  %v2254_v46 = vshll.u32 %v7451_v39, %v2251_v56  ;;  %v2257_v6 = vshll.u32 %v7442_v7, %v2251_v56  ;;  %v2260_v57 = vshll.u32 %v7443_v52, %v2251_v56 }
 0x362   : > { %v2263_v18 = vshll.u32 %v7444_v33, %v2251_v56  ;;  %v2266_v1 = vshll.u32 %v7445_v37, %v2251_v56  ;;  %vm2269_vm7 = vcmp.lt.s32.totalorder %v2250_v48, 1  ;;  %vm2270_vm8 = vcmp.lt.s32.totalorder %v2250_v48, 2 }
 0x363   : > { %v2255_v24 = vshrl.u32 %v7442_v7, %v2252_v2  ;;  %v2258_v10 = vshrl.u32 %v7443_v52, %v2252_v2  ;;  %v2261_v59 = vshrl.u32 %v7444_v33, %v2252_v2  ;;  %v2253_v58 = vshrl.u32 %v7451_v39, %v2252_v2 }
 0x364   : > { %v2264_v27 = vshrl.u32 %v7445_v37, %v2252_v2  ;;  %v2267_v26 = vshrl.u32 %v7450_v30, %v2252_v2  ;;  %v2148_v56 = vsub.s32 32, %v2147_v23  ;;  %vm2271_vm9 = vcmp.lt.s32.totalorder %v2250_v48, 3 }
 0x365   : > { %v2256_v42 = vor.u32 %v2255_v24, %v2254_v46  ;;  %v2259_v9 = vor.u32 %v2258_v10, %v2257_v6  ;;  %v2262_v29 = vor.u32 %v2261_v59, %v2260_v57  ;;  %vm2272_vm10 = vcmp.lt.s32.totalorder %v2250_v48, 4 }
 0x366   : > { %v2265_v3 = vor.u32 %v2264_v27, %v2263_v18  ;;  %v2268_v36 = vor.u32 %v2267_v26, %v2266_v1  ;;  %v2150_v2 = vshll.u32 %v7451_v39, %v2147_v23  ;;  %v2151_v59 = vshrl.u32 %v7442_v7, %v2148_v56 }
 0x367   : > { %v2273_v45 = vsel %vm2269_vm7, %v2253_v58, %v2256_v42  ;;  %v2274_v14 = vsel %vm2272_vm10, %v2262_v29, 2102212464  ;;  %v2277_v0 = vsel %vm2269_vm7, %v2256_v42, %v2259_v9  ;;  %v2281_v15 = vsel %vm2269_vm7, %v2259_v9, %v2262_v29 }
 0x368   : > { %v2275_v12 = vsel %vm2271_vm9, %v2259_v9, %v2274_v14  ;;  %v2278_v51 = vsel %vm2272_vm10, %v2265_v3, 920167782  ;;  %v2282_v55 = vsel %vm2272_vm10, %v2268_v36, 1326507024  ;;  %v2153_v26 = vshll.u32 %v7442_v7, %v2147_v23 }
 0x369   : > { %v2279_v24 = vsel %vm2271_vm9, %v2262_v29, %v2278_v51  ;;  %v2283_v10 = vsel %vm2271_vm9, %v2265_v3, %v2282_v55  ;;  %v2276_v1 = vsel %vm2270_vm8, %v2273_v45, %v2275_v12  ;;  %v2154_v42 = vshrl.u32 %v7443_v52, %v2148_v56 }
 0x36a   : > { %v2280_v57 = vsel %vm2270_vm8, %v2277_v0, %v2279_v24  ;;  %v2284_v46 = vsel %vm2270_vm8, %v2281_v15, %v2283_v10  ;;  %v2152_v3 = vor.u32 %v2151_v59, %v2150_v2  ;;  %v2156_v29 = vshll.u32 %v7443_v52, %v2147_v23 }
 0x36b   : > { %v6622_v9 = vmul.u32.u64.low %v6584_v53, %v2284_v46  ;;  %v6623_v14 = vmul.u32.u64.high %v6584_v53, %v2284_v46, %v6622_v9  ;;  %v6626_v36 = vmul.u32.u64.low %v6584_v53, %v2280_v57  ;;  %v6627_v51 = vmul.u32.u64.high %v6584_v53, %v2280_v57, %v6626_v36 }
 0x36c   : > { %v2155_v55 = vor.u32 %v2154_v42, %v2153_v26  ;;  %v2157_v12 = vshrl.u32 %v7444_v33, %v2148_v56  ;;  %v2149_v0 = vshrl.u32 %v7451_v39, %v2148_v56  ;;  %v2159_v15 = vshll.u32 %v7444_v33, %v2147_v23 }
 0x36d   : > { %v2160_v45 = vshrl.u32 %v7445_v37, %v2148_v56  ;;  %v2163_v48 = vshrl.u32 %v7450_v30, %v2148_v56  ;;  %v2292_v6 = vmul.u32 %v6584_v53, %v2276_v1  ;;  %v2162_v58 = vshll.u32 %v7445_v37, %v2147_v23 }
 0x36e   : > { %v2158_v18 = vor.u32 %v2157_v12, %v2156_v29  ;;  %vm2165_vm11 = vcmp.lt.s32.totalorder %v6587_v17, 1  ;;  %vm2294_vm12 = vc.u32 %v6623_v14, %v6626_v36  ;;  %v2295_v27 = vadd.s32 1, %v6627_v51 }
 0x36f   : > { %v2161_v2 = vor.u32 %v2160_v45, %v2159_v15  ;;  %vm2166_vm13 = vcmp.lt.s32.totalorder %v6587_v17, 2  ;;  %v2164_v24 = vor.u32 %v2163_v48, %v2162_v58  ;;  %vm2167_vm14 = vcmp.lt.s32.totalorder %v6587_v17, 3 }
 0x370   : > { %vm2168_vm15 = vcmp.lt.s32.totalorder %v6587_v17, 4  ;;  %v2173_v56 = vsel %vm2165_vm11, %v2152_v3, %v2155_v55  ;;  %v2296_v53 = vsel %vm2294_vm12, %v2295_v27, %v6627_v51  ;;  %v2177_v23 = vsel %vm2165_vm11, %v2155_v55, %v2158_v18 }
 0x371   : > { %v2170_v10 = vsel %vm2168_vm15, %v2158_v18, 2102212464  ;;  %v2174_v59 = vsel %vm2168_vm15, %v2161_v2, 920167782  ;;  %v2297_v26 = vadd.s32 %v2296_v53, %v2292_v6  ;;  %v2169_v1 = vsel %vm2165_vm11, %v2149_v0, %v2152_v3 }
 0x372   : > { %v2175_v57 = vsel %vm2167_vm14, %v2158_v18, %v2174_v59  ;;  %v2178_v46 = vsel %vm2168_vm15, %v2164_v24, 1326507024  ;;  %v2171_v42 = vsel %vm2167_vm14, %v2155_v55, %v2170_v10  ;;  %vm2456_vm0 = vcmp.gt.s32.totalorder %v6598_v43, 0 }
 0x373   : > { %v2176_v9 = vsel %vm2166_vm13, %v2173_v56, %v2175_v57  ;;  %v2179_v29 = vsel %vm2167_vm14, %v2161_v2, %v2178_v46  ;;  %v2298_v12 = vadd.s32 536870912, %v2297_v26  ;;  %v2453_v55 = vor.u32 8388608, %v6593_v54 }
 0x374   : > { %v2180_v15 = vsel %vm2166_vm13, %v2177_v23, %v2179_v29  ;;  %v6650_v51 = vmul.u32.u64.low %v6589_v20, %v2176_v9  ;;  %v6651_v45 = vmul.u32.u64.high %v6589_v20, %v2176_v9, %v6650_v51  ;;  %v2457_v48 = vsel %vm2456_vm0, %v6598_v43, 0 }
 0x375   : > { %v6655_v3 = vmul.u32.u64.low %v6589_v20, %v2180_v15  ;;  %v6656_v0 = vmul.u32.u64.high %v6589_v20, %v2180_v15, %v6655_v3  ;;  %v2299_v6 = vshrl.u32 %v2298_v12, 30  ;;  %v2172_v18 = vsel %vm2166_vm13, %v2169_v1, %v2171_v42 }
 0x376   : > { %v2459_v58 = vand.u32 31, %v2457_v48  ;;  %v7504_v27 = vand.u32 2147483647, %v6542_v19  ;;  %v7507_v24 = vand.u32 2139095040, %v6570_v41  ;;  %v7508_v54 = vand.u32 2147483647, %v6570_v41 }
 0x377   : > { %v2300_v10 = vshll.u32 %v2299_v6, 30  ;;  %v2323_v59 = vsub.s32 4, %v2299_v6  ;;  %v2191_v17 = vadd.s32 1, %v6651_v45  ;;  %v2293_v1 = vadd.s32 %v6626_v36, %v6623_v14 }
 0x378   : > { %vm6665_vm2 = vcmp.le.f32.partialorder %v7504_v27, 0.7853982  ;;  %v2345_v56 = vshrl.u32 %v7507_v24, 23  ;;  %v6673_v53 = vand.u32 8388607, %v7508_v54  ;;  %v2460_v23 = vsub.s32 32, %v2459_v58 }
 0x379   : > { %v2188_v57 = vmul.u32 %v6589_v20, %v2172_v18  ;;  %vm2190_vm3 = vc.u32 %v6656_v0, %v6650_v51  ;;  %v6681_v46 = vshll.u32 %v2453_v55, 8  ;;  %v6683_v42 = vsub.s32 %v2297_v26, %v2300_v10 }
 0x37a   : > { %v2324_v9 = vsel %vm2239_vm1, %v2323_v59, %v2299_v6  ;;  %v2192_v29 = vsel %vm2190_vm3, %v2191_v17, %v6651_v45  ;;  %v2458_v12 = vshrl.u32 %v2457_v48, 5  ;;  %v2462_v3 = vshll.u32 %v7451_v39, %v2459_v58 }
 0x37b   : > { %v2193_v15 = vadd.s32 %v2192_v29, %v2188_v57  ;;  %v2463_v14 = vshrl.u32 %v7442_v7, %v2460_v23  ;;  %v2466_v20 = vshrl.u32 %v7443_v52, %v2460_v23  ;;  %v2303_v36 = vsub.s32 0, %v6683_v42 }
 0x37c   : > { %v2465_v55 = vshll.u32 %v7442_v7, %v2459_v58  ;;  %v2469_v26 = vshrl.u32 %v7444_v33, %v2460_v23  ;;  %v3897_v18 = vadd.s32 4294967169, %v2345_v56  ;;  %v2326_v6 = vsel %vm6665_vm2, 0, %v2324_v9 }
 0x37d   : > { %v2194_v27 = vadd.s32 536870912, %v2193_v15  ;;  %v2464_v45 = vor.u32 %v2463_v14, %v2462_v3  ;;  %v2468_v48 = vshll.u32 %v7443_v52, %v2459_v58  ;;  %v3894_v24 = vmin.u32 %v2303_v36, %v6683_v42 }
 0x37e   : > { %v2467_v54 = vor.u32 %v2466_v20, %v2465_v55  ;;  %v2471_v10 = vshll.u32 %v7444_v33, %v2459_v58  ;;  %v2472_v59 = vshrl.u32 %v7445_v37, %v2460_v23  ;;  %v2475_v29 = vshrl.u32 %v7450_v30, %v2460_v23 }
 0x37f   : > { %v2195_v17 = vshrl.u32 %v2194_v27, 30  ;;  %v2470_v57 = vor.u32 %v2469_v26, %v2468_v48  ;;  %v2305_v43 = vclz %v3894_v24  ;;  %v2461_v9 = vshrl.u32 %v7451_v39, %v2460_v23 }
 0x380   : > { %v2473_v35 = vor.u32 %v2472_v59, %v2471_v10  ;;  %v7509_v3 = vand.u32 4294901760, %v6567_v11  ;;  %v2330_v36 = vadd.s32 3, %v2326_v6  ;;  %v2474_v55 = vshll.u32 %v7445_v37, %v2459_v58 }
 0x381   : > { %v2196_v20 = vshll.u32 %v2195_v17, 30  ;;  %vm2477_vm4 = vcmp.lt.s32.totalorder %v2458_v12, 1  ;;  %v3895_v22 = vadd.s32 4294967294, %v2305_v43  ;;  %vm2479_vm5 = vcmp.lt.s32.totalorder %v2458_v12, 3 }
 0x382   : > { %v2802_v14 = vsub.f32 %v6567_v11, %v7509_v3  ;;  %vm2480_vm6 = vcmp.lt.s32.totalorder %v2458_v12, 4  ;;  %v2485_v26 = vsel %vm2477_vm4, %v2464_v45, %v2467_v54  ;;  %vm2135_vm7 = vcmp.lt.s32.totalorder %v6545_v4, 0 }
 0x383   : > { %v6709_v27 = vsub.s32 %v2193_v15, %v2196_v20  ;;  %v2476_v23 = vor.u32 %v2475_v29, %v2474_v55  ;;  %v2482_v48 = vsel %vm2480_vm6, %v2470_v57, 2102212464  ;;  %v2486_v24 = vsel %vm2480_vm6, %v2473_v35, 920167782 }
 0x384   : > { %vm3896_vm8 = vcmp.lt.s32.totalorder %v3895_v22, 0  ;;  %v2219_v6 = vsub.s32 4, %v2195_v17  ;;  %vm2478_vm9 = vcmp.lt.s32.totalorder %v2458_v12, 2  ;;  %v2487_v58 = vsel %vm2479_vm5, %v2470_v57, %v2486_v24 }
 0x385   : > { %v2308_v10 = vsel %vm3896_vm8, 0, %v3895_v22  ;;  %v2199_v43 = vsub.s32 0, %v6709_v27  ;;  %v2481_v59 = vsel %vm2477_vm4, %v2461_v9, %v2464_v45  ;;  %v2488_v3 = vsel %vm2478_vm9, %v2485_v26, %v2487_v58 }
 0x386   : > { %v2309_v56 = vsub.s32 32, %v2308_v10  ;;  %v2313_v15 = vsub.s32 4294967266, %v2308_v10  ;;  %v2483_v29 = vsel %vm2479_vm5, %v2467_v54, %v2482_v48  ;;  %v2489_v20 = vsel %vm2477_vm4, %v2467_v54, %v2470_v57 }
 0x387   : > { %v7510_v55 = vand.u32 2147483647, %v6545_v4  ;;  %v3890_v22 = vmin.u32 %v2199_v43, %v6709_v27  ;;  %v2490_v24 = vsel %vm2480_vm6, %v2476_v23, 1326507024  ;;  %v2310_v26 = vshll.u32 %v6683_v42, %v2308_v10 }
 0x388   : > { %v6728_v45 = vmul.u32.u64.low %v6681_v46, %v2488_v3  ;;  %v6729_v9 = vmul.u32.u64.high %v6681_v46, %v2488_v3, %v6728_v45  ;;  %v2311_v48 = vshrl.u32 %v2293_v1, %v2309_v56  ;;  %v2314_v58 = vadd.s32 127, %v2313_v15 }
 0x389   : > { %vm6721_vm10 = vcmp.le.f32.partialorder %v7510_v55, 0.7853982  ;;  %v2491_v54 = vsel %vm2479_vm5, %v2473_v35, %v2490_v24  ;;  %v2201_v57 = vclz %v3890_v22  ;;  %v2484_v55 = vsel %vm2478_vm9, %v2481_v59, %v2483_v29 }
 0x38a   : > { %v2492_v60 = vsel %vm2478_vm9, %v2489_v20, %v2491_v54  ;;  %v2351_v28 = vadd.s32 1, %v3897_v18  ;;  %v2312_v43 = vor.u32 %v2311_v48, %v2310_v26  ;;  %v2315_v61 = vshll.u32 %v2314_v58, 23 }
 0x38b   : > { %v6737_v23 = vmul.u32.u64.low %v6681_v46, %v2492_v60  ;;  %v6738_v11 = vmul.u32.u64.high %v6681_v46, %v2492_v60, %v6737_v23  ;;  %v3891_v3 = vadd.s32 4294967294, %v2201_v57  ;;  %v2503_v44 = vadd.s32 1, %v6729_v9 }
 0x38c   : > { %vm2352_vm11 = vcmp.gt.s32.totalorder %v2351_v28, 0  ;;  %v2803_v1 = vand.u32 4294901760, %v2802_v14  ;;  %v2316_v42 = vor.u32 4788187, %v2315_v61  ;;  %v2189_v35 = vadd.s32 %v6650_v51, %v6656_v0 }
 0x38d   : > { %v6745_v12 = vsel %vm2135_vm7, %v2219_v6, %v2195_v17  ;;  %v2353_v18 = vsel %vm2352_vm11, %v2351_v28, 0  ;;  %vm3892_vm12 = vcmp.lt.s32.totalorder %v3891_v3, 0  ;;  %v2500_v56 = vmul.u32 %v6681_v46, %v2484_v55 }
 0x38e   : > { %v2355_v10 = vand.u32 31, %v2353_v18  ;;  %v7513_v60 = vand.u32 4294901760, %v6580_v34  ;;  %v2317_v15 = vand.u32 2147483647, %v2316_v42  ;;  %v2319_v29 = vcvt.s32.f32 %v2312_v43 }
 0x38f   : > { %v2204_v20 = vsel %vm3892_vm12, 0, %v3891_v3  ;;  %vm2502_vm13 = vc.u32 %v6738_v11, %v6728_v45  ;;  %v6752_v61 = vand.u32 3, %v2330_v36  ;;  %v2222_v46 = vsel %vm6721_vm10, 0, %v6745_v12 }
 0x390   : > { %v4996_v59 = vpack.c.bf16 %v2803_v1, %v7513_v60  ;;  %v2205_v51 = vsub.s32 32, %v2204_v20  ;;  %v2209_v0 = vsub.s32 4294967266, %v2204_v20  ;;  %v2504_v17 = vsel %vm2502_vm13, %v2503_v44, %v6729_v9 }
 0x391   : > { %v2320_v28 = vmul.f32 %v2319_v29, %v2317_v15  ;;  %v2505_v34 = vadd.s32 %v2504_v17, %v2500_v56  ;;  %v2356_v14 = vsub.s32 32, %v2355_v10  ;;  %v2206_v6 = vshll.u32 %v6709_v27, %v2204_v20 }
 0x392   : > { %4997 = vmatprep.subr.bf16.mxu0 %v4996_v59  ;;  %v2207_v22 = vshrl.u32 %v2189_v35, %v2205_v51  ;;  %v2210_v24 = vadd.s32 127, %v2209_v0  ;;  %v7514_v36 = vor.u32 8388608, %v6673_v53  ;;  %v2354_v48 = vshrl.u32 %v2353_v18, 5 }
 0x393   : > { %4999 = vmatpush3.bf16.msra.mxu0 %v4996_v59  ;;  %v2321_v44 = vxor.u32 2147483648, %v2320_v28  ;;  %v2506_v9 = vadd.s32 536870912, %v2505_v34  ;;  %v2359_v58 = vshrl.u32 %v7442_v7, %v2356_v14  ;;  %v2358_v55 = vshll.u32 %v7451_v39, %v2355_v10 }
 0x394   : > { %v6761_v26 = vshll.u32 %v7514_v36, 8  ;;  %5001 = vmatprep.subr.bf16.mxu0 %v6527_v5  ;;  %v2208_v54 = vor.u32 %v2207_v22, %v2206_v6  ;;  %v2211_v57 = vshll.u32 %v2210_v24, 23  ;;  %v2362_v43 = vshrl.u32 %v7443_v52, %v2356_v14 }
 0x395   : > { %v2322_v27 = vsel %vm2239_vm1, %v2321_v44, %v2320_v28  ;;  %v6769_v23 = vshrl.u32 %v2506_v9, 30  ;;  %v2361_v53 = vshll.u32 %v7442_v7, %v2355_v10  ;;  %v2365_v3 = vshrl.u32 %v7444_v33, %v2356_v14 }
 0x396   : > { %v2325_v1 = vsel %vm6665_vm2, %v6542_v19, %v2322_v27  ;;  %v2212_v42 = vor.u32 4788187, %v2211_v57  ;;  %v2360_v35 = vor.u32 %v2359_v58, %v2358_v55  ;;  %v2364_v18 = vshll.u32 %v7443_v52, %v2355_v10 }
 0x397   : > { %5334 = vcosq.f32 %v2325_v1  ;;  %v2215_v56 = vcvt.s32.f32 %v2208_v54  ;;  %v2508_v60 = vshll.u32 %v6769_v23, 30  ;;  %v2367_v59 = vshll.u32 %v7444_v33, %v2355_v10 }
 0x398   : > { %5336 = vsinq.f32 %v2325_v1  ;;  %v2213_v15 = vand.u32 2147483647, %v2212_v42  ;;  %v2363_v29 = vor.u32 %v2362_v43, %v2361_v53  ;;  %v2368_v20 = vshrl.u32 %v7445_v37, %v2356_v14 }
 0x399   : > { %v6780_v51 = vsub.s32 %v2505_v34, %v2508_v60  ;;  %v2366_v0 = vor.u32 %v2365_v3, %v2364_v18  ;;  %v2370_v2 = vshll.u32 %v7445_v37, %v2355_v10  ;;  %v2371_v17 = vshrl.u32 %v7450_v30, %v2356_v14 }
 0x39a   : > { %v2216_v28 = vmul.f32 %v2215_v56, %v2213_v15  ;;  %v2357_v6 = vshrl.u32 %v7451_v39, %v2356_v14  ;;  %v2369_v22 = vor.u32 %v2368_v20, %v2367_v59  ;;  %vm2373_vm14 = vcmp.lt.s32.totalorder %v2354_v48, 1 }
 0x39b   : > { %v2511_v24 = vsub.s32 0, %v6780_v51  ;;  %v2372_v36 = vor.u32 %v2371_v17, %v2370_v2  ;;  %vm2374_vm15 = vcmp.lt.s32.totalorder %v2354_v48, 2  ;;  %vm2375_vm0 = vcmp.lt.s32.totalorder %v2354_v48, 3 }
 0x39c   : > { %v2217_v44 = vxor.u32 2147483648, %v2216_v28  ;;  %vm2376_vm1 = vcmp.lt.s32.totalorder %v2354_v48, 4  ;;  %v2377_v9 = vsel %vm2373_vm14, %v2357_v6, %v2360_v35  ;;  %v2381_v34 = vsel %vm2373_vm14, %v2360_v35, %v2363_v29 }
 0x39d   : > { %v3902_v58 = vmin.u32 %v2511_v24, %v6780_v51  ;;  %v2378_v54 = vsel %vm2376_vm1, %v2366_v0, 2102212464  ;;  %v2382_v10 = vsel %vm2376_vm1, %v2369_v22, 920167782  ;;  %v2385_v57 = vsel %vm2373_vm14, %v2363_v29, %v2366_v0 }
 0x39e   : > { %v2218_v55 = vsel %vm2135_vm7, %v2217_v44, %v2216_v28  ;;  %v2379_v14 = vsel %vm2375_vm0, %v2363_v29, %v2378_v54  ;;  %v2383_v43 = vsel %vm2375_vm0, %v2366_v0, %v2382_v10  ;;  %v2386_v27 = vsel %vm2376_vm1, %v2372_v36, 1326507024 }
 0x39f   : > { %v2221_v53 = vsel %vm6721_vm10, %v6545_v4, %v2218_v55  ;;  %v2513_v3 = vclz %v3902_v58  ;;  %v2380_v1 = vsel %vm2374_vm15, %v2377_v9, %v2379_v14  ;;  %v2384_v42 = vsel %vm2374_vm15, %v2381_v34, %v2383_v43 }
 0x3a0   : > { %5338 = vcosq.f32 %v2221_v53  ;;  %v2387_v35 = vsel %vm2375_vm0, %v2369_v22, %v2386_v27  ;;  %v6798_v18 = vmul.u32.u64.low %v6761_v26, %v2384_v42  ;;  %v6799_v56 = vmul.u32.u64.high %v6761_v26, %v2384_v42, %v6798_v18 }
 0x3a1   : > { %v5335_v60 = vpop.eup %5334  ;;  %5340 = vsinq.f32 %v2221_v53  ;;  %v3903_v59 = vadd.s32 4294967294, %v2513_v3  ;;  %v2388_v15 = vsel %vm2374_vm15, %v2385_v57, %v2387_v35  ;;  %v2226_v2 = vadd.s32 3, %v2222_v46 }
 0x3a2   : > { %v5337_v29 = vpop.eup %5336  ;;  %v6804_v20 = vmul.u32.u64.low %v6761_v26, %v2388_v15  ;;  %v6805_v0 = vmul.u32.u64.high %v6761_v26, %v2388_v15, %v6804_v20  ;;  %v2501_v17 = vadd.s32 %v6728_v45, %v6738_v11  ;;  %v2396_v28 = vmul.u32 %v6761_v26, %v2380_v1 }
 0x3a3   : > { %vm3904_vm2 = vcmp.lt.s32.totalorder %v3903_v59, 0  ;;  %v2399_v48 = vadd.s32 1, %v6799_v56  ;;  %vm2332_vm3 = vcmp.lt.s32.totalorder %v6752_v61, 2  ;;  %v2334_v22 = vxor.u32 2147483648, %v5337_v29 }
 0x3a4   : > { %v2516_v6 = vsel %vm3904_vm2, 0, %v3903_v59  ;;  %vm2333_vm4 = vcmp.eq.s32.totalorder %v6752_v61, 0  ;;  %v2337_v32 = vxor.u32 2147483648, %v5335_v60  ;;  %vm2398_vm5 = vc.u32 %v6805_v0, %v6798_v18 }
 0x3a5   : > { %v2517_v24 = vsub.s32 32, %v2516_v6  ;;  %v2521_v36 = vsub.s32 4294967266, %v2516_v6  ;;  %v2518_v12 = vshll.u32 %v6780_v51, %v2516_v6  ;;  %v2335_v11 = vsel %vm2333_vm4, %v5335_v60, %v2334_v22 }
 0x3a6   : > { %vm2336_vm6 = vcmp.eq.s32.totalorder %v6752_v61, 2  ;;  %v2400_v26 = vsel %vm2398_vm5, %v2399_v48, %v6799_v56  ;;  %vm2329_vm7 = vweird.f32 %v6542_v19  ;;  %v2227_v34 = vand.u32 3, %v2226_v2 }
 0x3a7   : > { %v2519_v45 = vshrl.u32 %v2501_v17, %v2517_v24  ;;  %v2522_v46 = vadd.s32 127, %v2521_v36  ;;  %v2338_v44 = vsel %vm2336_vm6, %v2337_v32, %v5337_v29  ;;  %v2401_v9 = vadd.s32 %v2400_v26, %v2396_v28 }
 0x3a8   : > { %v2339_v58 = vsel %vm2332_vm3, %v2335_v11, %v2338_v44  ;;  %vm2232_vm8 = vcmp.eq.s32.totalorder %v2227_v34, 2  ;;  %vm2229_vm9 = vcmp.eq.s32.totalorder %v2227_v34, 0  ;;  %vm2228_vm10 = vcmp.lt.s32.totalorder %v2227_v34, 2 }
 0x3a9   : > { %v2520_v54 = vor.u32 %v2519_v45, %v2518_v12  ;;  %v2523_v51 = vshll.u32 %v2522_v46, 23  ;;  %v2340_v10 = vsel %vm2329_vm7, nan, %v2339_v58  ;;  %v2402_v55 = vadd.s32 536870912, %v2401_v9 }
 0x3aa   : > { %v5339_v57 = vpop.eup %5338  ;;  %v6825_v14 = vand.u32 4294901760, %v2340_v10  ;;  %vm2225_vm11 = vweird.f32 %v6545_v4  ;;  %v5004_v6 = vpack.c.bf16 %v6396_v16, %v6391_v62  ;;  %vm2447_vm12 = vcmp.lt.s32.totalorder %v6558_v63, 0 }
 0x3ab   : > { %v5341_v43 = vpop.eup %5340  ;;  %v2524_v27 = vor.u32 4788187, %v2523_v51  ;;  %v2233_v53 = vxor.u32 2147483648, %v5339_v57  ;;  %v6827_v3 = vshrl.u32 %v2402_v55, 30  ;;  %v2527_v42 = vcvt.s32.f32 %v2520_v54 }
 0x3ac   : > { %v2230_v1 = vxor.u32 2147483648, %v5341_v43  ;;  %v6831_v60 = vsub.f32 %v2340_v10, %v6825_v14  ;;  %v5008_v12 = vpack.c.bf16 %v6420_v13, %v6415_v40  ;;  %v7515_v45 = vand.u32 2147483647, %v6558_v63 }
 0x3ad   : > { %v2525_v19 = vand.u32 2147483647, %v2524_v27  ;;  %v2234_v35 = vsel %vm2232_vm8, %v2233_v53, %v5341_v43  ;;  %v2404_v61 = vshll.u32 %v6827_v3, 30  ;;  %v5012_v54 = vpack.c.bf16 %v6434_v49, %v6431_v21 }
 0x3ae   : > { %v2231_v56 = vsel %vm2229_vm9, %v5339_v57, %v2230_v1  ;;  %v2665_v48 = vand.u32 4294901760, %v6831_v60  ;;  %vm6856_vm13 = vcmp.le.f32.partialorder %v7515_v45, 0.7853982  ;;  %v2397_v10 = vadd.s32 %v6798_v18, %v6805_v0 }
 0x3af   : > { %v2528_v59 = vmul.f32 %v2527_v42, %v2525_v19  ;;  %v2235_v15 = vsel %vm2228_vm10, %v2231_v56, %v2234_v35  ;;  %v2405_v29 = vsub.s32 %v2401_v9, %v2404_v61  ;;  %v2531_v9 = vsub.s32 4, %v6769_v23 }
 0x3b0   : > { %v2236_v20 = vsel %vm2225_vm11, nan, %v2235_v15  ;;  %v2666_v11 = vsub.f32 %v6831_v60, %v2665_v48  ;;  %v5016_v19 = vpack.c.bf16 %v6460_v50, %v6457_v31  ;;  %v5020_v61 = vpack.c.bf16 %v6490_v25, %v6487_v8 }
 0x3b1   : > { %v2529_v2 = vxor.u32 2147483648, %v2528_v59  ;;  %v6834_v17 = vand.u32 4294901760, %v2236_v20  ;;  %v2407_v28 = vsub.s32 0, %v2405_v29  ;;  %v2532_v43 = vsel %vm2447_vm12, %v2531_v9, %v6769_v23 }
 0x3b2   : > { %v2667_v58 = vand.u32 4294901760, %v2666_v11  ;;  %v2534_v18 = vsel %vm6856_vm13, 0, %v2532_v43  ;;  %vm2343_vm15 = vcmp.lt.s32.totalorder %v6570_v41, 0  ;;  %vm2537_vm4 = vweird.f32 %v6558_v63  ;;  %v7533_v11 = vld [vmem:[#allocation13_spill] sm:$0xff] }
 0x3b3   : > { %4562 = vmatprep.mubr.f32.mxu0 %v6834_v17  ;;  %v6841_v22 = vsub.f32 %v2236_v20, %v6834_v17  ;;  %v3898_v4 = vmin.u32 %v2407_v28, %v2405_v29  ;;  %v2530_v24 = vsel %vm2447_vm12, %v2529_v2, %v2528_v59  ;;  %v2538_v23 = vadd.s32 3, %v2534_v18 }
 0x3b4   : > { %4563 = vmatmul.mubr.f32.vlgmr.msra.gmra.mrb[4].mxu0 %v6825_v14  ;;  %v2533_v26 = vsel %vm6856_vm13, %v6558_v63, %v2530_v24  ;;  %v2427_v2 = vsub.s32 4, %v6827_v3  ;;  %v5024_v28 = vpack.c.bf16 %v6506_v47, %v6503_v38  ;;  %vm2433_vm8 = vweird.f32 %v6570_v41 }
 0x3b5   : > { %5003 = vmatpush3.bf16.msra.mxu0 %v6527_v5  ;;  %v2655_v36 = vand.u32 4294901760, %v6841_v22  ;;  %v2409_v32 = vclz %v3898_v4  ;;  %5342 = vcosq.f32 %v2533_v26  ;;  %v2539_v4 = vand.u32 3, %v2538_v23 }
 0x3b6   : > { %5005 = vmatprep.subr.bf16.mxu0 %v5004_v6  ;;  %5344 = vsinq.f32 %v2533_v26  ;;  %v2428_v46 = vsel %vm2343_vm15, %v2427_v2, %v6827_v3  ;;  %v7522_v26 = vld [vmem:[#allocation22_spill] sm:$0xff]  ;;  %v7524_v2 = vld [vmem:[#allocation15_spill] sm:$0xff] }
 0x3b7   : > { %v2656_v5 = vsub.f32 %v6841_v22, %v2655_v36  ;;  %v3899_v44 = vadd.s32 4294967294, %v2409_v32  ;;  %vm2541_vm1 = vcmp.eq.s32.totalorder %v2539_v4, 0  ;;  %vm2544_vm2 = vcmp.eq.s32.totalorder %v2539_v4, 2 }
 0x3b8   : > { %vm2540_vm3 = vcmp.lt.s32.totalorder %v2539_v4, 2  ;;  %v7527_v4 = vld [vmem:[#allocation18_spill] sm:$0xff] }
 0x3b9   : > { %5007 = vmatpush3.bf16.msra.mxu0 %v5004_v6  ;;  %v2657_v34 = vand.u32 4294901760, %v2656_v5  ;;  %vm3900_vm14 = vcmp.lt.s32.totalorder %v3899_v44, 0  ;;  %v7521_v5 = vld [vmem:[#allocation20_spill] sm:$0xff] }
 0x3ba   : > { %5009 = vmatprep.subr.bf16.mxu0 %v5008_v12  ;;  %v2412_v51 = vsel %vm3900_vm14, 0, %v3899_v44  ;;  %v5028_v44 = vpack.c.bf16 %v7522_v26, %v7521_v5 }
 0x3bb   : > { %4524 = vmatprep.mubr.f32.mxu1 %v2657_v34  ;;  %v2413_v57 = vsub.s32 32, %v2412_v51  ;;  %v2417_v55 = vsub.s32 4294967266, %v2412_v51  ;;  %v2414_v27 = vshll.u32 %v2405_v29, %v2412_v51 }
 0x3bc   : > { %4525 = vmatmul.mubr.f32.vlgmr.msra.gmra.mrb[4].mxu1 %v2667_v58 }
 0x3bd   : > { %5011 = vmatpush3.bf16.msra.mxu0 %v5008_v12  ;;  %v2415_v53 = vshrl.u32 %v2397_v10, %v2413_v57  ;;  %v2418_v1 = vadd.s32 127, %v2417_v55  ;;  %v7518_v12 = vand.u32 2147483647, %v6570_v41  ;;  %v7523_v10 = vld [vmem:[#allocation14_spill] sm:$0xff] }
 0x3be   : > { %5013 = vmatprep.subr.bf16.mxu0 %v5012_v54 }
 0x3bf   : > { %v2416_v42 = vor.u32 %v2415_v53, %v2414_v27  ;;  %v2419_v35 = vshll.u32 %v2418_v1, 23  ;;  %v5343_v15 = vpop.eup %5342  ;;  %vm6886_vm0 = vcmp.le.f32.partialorder %v7518_v12, 0.7853982 }
 0x3c0   : > { %v5345_v29 = vpop.eup %5344  ;;  %v2545_v32 = vxor.u32 2147483648, %v5343_v15  ;;  %v2430_v34 = vsel %vm6886_vm0, 0, %v2428_v46 }
 0x3c1   : > { %5015 = vmatpush3.bf16.msra.mxu0 %v5012_v54  ;;  %v2420_v0 = vor.u32 4788187, %v2419_v35  ;;  %v2423_v59 = vcvt.s32.f32 %v2416_v42  ;;  %v2542_v24 = vxor.u32 2147483648, %v5345_v29  ;;  %v2434_v3 = vadd.s32 3, %v2430_v34 }
 0x3c2   : > { %5017 = vmatprep.subr.bf16.mxu0 %v5016_v19  ;;  %v2546_v54 = vsel %vm2544_vm2, %v2545_v32, %v5345_v29  ;;  %v7529_v32 = vld [vmem:[#allocation21_spill] sm:$0xff] }
 0x3c3   : > { %v2421_v56 = vand.u32 2147483647, %v2420_v0  ;;  %v2543_v58 = vsel %vm2541_vm1, %v5343_v15, %v2542_v24  ;;  %v2435_v55 = vand.u32 3, %v2434_v3  ;;  %v7528_v24 = vld [vmem:[#allocation19_spill] sm:$0xff] }
 0x3c4   : > { %v2547_v51 = vsel %vm2540_vm3, %v2543_v58, %v2546_v54  ;;  %v7537_v58 = vand.u32 4294901760, %v6415_v40  ;;  %v7538_v54 = vand.u32 4294901760, %v6420_v13  ;;  %v7543_v13 = vand.u32 4294901760, %v6487_v8 }
 0x3c5   : > { %5019 = vmatpush3.bf16.msra.mxu0 %v5016_v19  ;;  %v2424_v20 = vmul.f32 %v2423_v59, %v2421_v56  ;;  %v2548_v57 = vsel %vm2537_vm4, nan, %v2547_v51  ;;  %vm2440_vm5 = vcmp.eq.s32.totalorder %v2435_v55, 2  ;;  %vm2437_vm6 = vcmp.eq.s32.totalorder %v2435_v55, 0 }
 0x3c6   : > { %5021 = vmatprep.subr.bf16.mxu0 %v5020_v61  ;;  %v6900_v27 = vand.u32 4294901760, %v2548_v57  ;;  %vm2436_vm7 = vcmp.lt.s32.totalorder %v2435_v55, 2  ;;  %v5072_v3 = vpack.c.bf16 %v7538_v54, %v7537_v58 }
 0x3c7   : > { %v2425_v6 = vxor.u32 2147483648, %v2424_v20 }
 0x3c8   : > { %v2684_v18 = vsub.f32 %v2548_v57, %v6900_v27  ;;  %v7544_v57 = vand.u32 4294901760, %v6490_v25 }
 0x3c9   : > { %5023 = vmatpush3.bf16.msra.mxu0 %v5020_v61  ;;  %v2426_v45 = vsel %vm2343_vm15, %v2425_v6, %v2424_v20  ;;  %v7526_v6 = vld [vmem:[#allocation17_spill] sm:$0xff] }
 0x3ca   : > { %5025 = vmatprep.subr.bf16.mxu0 %v5024_v28  ;;  %v2429_v9 = vsel %vm6886_vm0, %v6570_v41, %v2426_v45  ;;  %v2685_v23 = vand.u32 4294901760, %v2684_v18  ;;  %v7534_v45 = vand.u32 4294901760, %v7533_v11  ;;  %v5084_v55 = vpack.c.bf16 %v7544_v57, %v7543_v13 }
 0x3cb   : > { %5346 = vcosq.f32 %v2429_v9 }
 0x3cc   : > { %5348 = vsinq.f32 %v2429_v9  ;;  %v2686_v15 = vsub.f32 %v2684_v18, %v2685_v23  ;;  %v7536_v9 = vand.u32 4294901760, %v6396_v16  ;;  %v7540_v16 = vand.u32 4294901760, %v6434_v49 }
 0x3cd   : > { %5027 = vmatpush3.bf16.msra.mxu0 %v5024_v28  ;;  %v7525_v28 = vld [vmem:[#allocation16_spill] sm:$0xff]  ;;  %v7546_v49 = vand.u32 4294901760, %v6506_v47 }
 0x3ce   : > { %5029 = vmatprep.subr.bf16.mxu0 %v5028_v44  ;;  %v2687_v41 = vand.u32 4294901760, %v2686_v15 }
 0x3d1   : > { %5031 = vmatpush3.bf16.msra.mxu0 %v5028_v44  ;;  %v7535_v44 = vand.u32 4294901760, %v6391_v62  ;;  %v7539_v62 = vand.u32 4294901760, %v6431_v21  ;;  %v7545_v21 = vand.u32 4294901760, %v6503_v38 }
 0x3d2   : > { %5033 = vmatprep.subr.bf16.mxu0 %v7523_v10 }
 0x3d3   : > { %v5068_v34 = vpack.c.bf16 %v7536_v9, %v7535_v44  ;;  %v5076_v51 = vpack.c.bf16 %v7540_v16, %v7539_v62 }
 0x3d5   : > { %v5347_v43 = vpop.eup %5346 }
 0x3d6   : > { %v5349_v53 = vpop.eup %5348  ;;  %v2441_v1 = vxor.u32 2147483648, %v5347_v43 }
 0x3d7   : > { %v2438_v19 = vxor.u32 2147483648, %v5349_v53 }
 0x3d8   : > { %v2442_v42 = vsel %vm2440_vm5, %v2441_v1, %v5349_v53 }
 0x3d9   : > { %v2439_v35 = vsel %vm2437_vm6, %v5347_v43, %v2438_v19  ;;  %v5088_v43 = vpack.c.bf16 %v7546_v49, %v7545_v21 }
 0x3da   : > { %v2443_v63 = vsel %vm2436_vm7, %v2439_v35, %v2442_v42 }
 0x3db   : > { %v2444_v0 = vsel %vm2433_vm8, nan, %v2443_v63 }
 0x3dc   : > { %v6904_v61 = vand.u32 4294901760, %v2444_v0 }
 0x3de   : > { %4565 = vmatprep.mubr.f32.mxu0 %v6904_v61  ;;  %v2674_v56 = vsub.f32 %v2444_v0, %v6904_v61 }
 0x3df   : > { %4566 = vmatmul.mubr.f32.gmra.mrb[6].mxu0 %v6900_v27 }
 0x3e0   : > { %4600 = vmatprep.mubr.f32.mxu0 %v6841_v22  ;;  %v2675_v59 = vand.u32 4294901760, %v2674_v56  ;;  %v7530_v22 = vld [vmem:[#allocation23_spill] sm:$0xff] }
 0x3e2   : > { %v2676_v29 = vsub.f32 %v2674_v56, %v2675_v59 }
 0x3e3   : > { %4601 = vmatmul.mubr.f32.vlgmr.msra.gmra.mrb[4].mxu0 %v6831_v60  ;;  %v7541_v60 = vand.u32 4294901760, %v6457_v31  ;;  %v7547_v31 = vand.u32 4294901760, %v7521_v5 }
 0x3e4   : > { %v2677_v20 = vand.u32 4294901760, %v2676_v29  ;;  %4603 = vmatprep.mubr.f32.mxu0 %v2674_v56  ;;  %5035 = vmatpush3.bf16.msra.mxu0 %v7523_v10 }
 0x3e5   : > { %5037 = vmatprep.subr.bf16.mxu0 %v7524_v2 }
 0x3e6   : > { %4527 = vmatprep.mubr.f32.mxu1 %v2677_v20 }
 0x3e7   : > { %4528 = vmatmul.mubr.f32.gmra.mrb[6].mxu1 %v2687_v41  ;;  %4604 = vmatmul.mubr.f32.gmra.mrb[6].mxu0 %v2684_v18 }
 0x3e8   : > { %5039 = vmatpush3.bf16.msra.mxu0 %v7524_v2  ;;  %4638 = vmatprep.mubr.f32.mxu0 %v2655_v36  ;;  %v7531_v36 = vld [vmem:[#allocation12_spill] sm:$0xff] }
 0x3e9   : > { %5041 = vmatprep.subr.bf16.mxu0 %v7525_v28  ;;  %v7532_v12 = vand.u32 4294901760, %v7531_v36 }
 0x3eb   : > { %v5064_v46 = vpack.c.bf16 %v7534_v45, %v7532_v12 }
 0x3ec   : > { %5043 = vmatpush3.bf16.msra.mxu0 %v7525_v28 }
 0x3ed   : > { %5045 = vmatprep.subr.bf16.mxu0 %v7526_v6 }
 0x3f0   : > { %5047 = vmatpush3.bf16.msra.mxu0 %v7526_v6 }
 0x3f1   : > { %5049 = vmatprep.subr.bf16.mxu0 %v7527_v4 }
 0x3f4   : > { %5051 = vmatpush3.bf16.msra.mxu0 %v7527_v4 }
 0x3f5   : > { %5053 = vmatprep.subr.bf16.mxu0 %v7528_v24 }
 0x3f8   : > { %5055 = vmatpush3.bf16.msra.mxu0 %v7528_v24 }
 0x3f9   : > { %5057 = vmatprep.subr.bf16.mxu0 %v7529_v32 }
 0x3fc   : > { %5059 = vmatpush3.bf16.msra.mxu0 %v7529_v32 }
 0x3fd   : > { %5061 = vmatprep.subr.bf16.mxu0 %v7530_v22 }
 0x400   : > { %5063 = vmatpush3.bf16.msra.mxu0 %v7530_v22 }
 0x401   : > { %5065 = vmatprep.subr.bf16.mxu0 %v5064_v46 }
 0x403   : > { %4639 = vmatmul.mubr.f32.vlgmr.msra.gmra.mrb[4].mxu0 %v2665_v48  ;;  %v7542_v48 = vand.u32 4294901760, %v6460_v50  ;;  %v7548_v50 = vand.u32 4294901760, %v7522_v26 }
 0x404   : > { %4641 = vmatprep.mubr.f32.mxu0 %v2675_v59  ;;  %5067 = vmatpush3.bf16.msra.mxu0 %v5064_v46 }
 0x405   : > { %5069 = vmatprep.subr.bf16.mxu0 %v5068_v34  ;;  %v5080_v40 = vpack.c.bf16 %v7542_v48, %v7541_v60  ;;  %v5092_v53 = vpack.c.bf16 %v7548_v50, %v7547_v31 }
 0x407   : > { %4642 = vmatmul.mubr.f32.gmra.mrb[6].mxu0 %v2685_v23 }
 0x408   : > { %5071 = vmatpush3.bf16.msra.mxu0 %v5068_v34  ;;  %4676 = vmatprep.mubr.f32.mxu0 %v6834_v17 }
 0x409   : > { %5073 = vmatprep.subr.bf16.mxu0 %v5072_v3 }
 0x40c   : > { %5075 = vmatpush3.bf16.msra.mxu0 %v5072_v3 }
 0x40d   : > { %5077 = vmatprep.subr.bf16.mxu0 %v5076_v51 }
 0x410   : > { %5079 = vmatpush3.bf16.msra.mxu0 %v5076_v51 }
 0x411   : > { %5081 = vmatprep.subr.bf16.mxu0 %v5080_v40 }
 0x414   : > { %5083 = vmatpush3.bf16.msra.mxu0 %v5080_v40 }
 0x415   : > { %5085 = vmatprep.subr.bf16.mxu0 %v5084_v55 }
 0x418   : > { %5087 = vmatpush3.bf16.msra.mxu0 %v5084_v55 }
 0x419   : > { %5089 = vmatprep.subr.bf16.mxu0 %v5088_v43 }
 0x41c   : > { %5091 = vmatpush3.bf16.msra.mxu0 %v5088_v43 }
 0x41d   : > { %5093 = vmatprep.subr.bf16.mxu0 %v5092_v53 }
 0x420   : > { %5095 = vmatpush3.bf16.msra.mxu0 %v5092_v53 }
 0x421   : > { %5097 = vmatprep.subr.bf16.mxu0 %v7523_v10 }
 0x423   : > { %4677 = vmatmul.mubr.f32.vlgmr.msra.gmra.mrb[4].mxu0 %v6825_v14 }
 0x424   : > { %4679 = vmatprep.mubr.f32.mxu0 %v6904_v61  ;;  %5099 = vmatpush3.bf16.msra.mxu0 %v7523_v10 }
 0x425   : > { %5101 = vmatprep.subr.bf16.mxu0 %v7524_v2 }
 0x427   : > { %4680 = vmatmul.mubr.f32.gmra.mrb[6].mxu0 %v6900_v27 }
 0x428   : > { %5103 = vmatpush3.bf16.msra.mxu0 %v7524_v2  ;;  %4714 = vmatprep.mubr.f32.mxu0 %v6834_v17  ;;  %v3905_v17 = vld [vmem:[%s7336_s6] ss:$0 sm:$0xff] }
 0x429   : > { %5105 = vmatprep.subr.bf16.mxu0 %v7525_v28 }
 0x42c   : > { %5107 = vmatpush3.bf16.msra.mxu0 %v7525_v28 }
 0x42d   : > { %5109 = vmatprep.subr.bf16.mxu0 %v7526_v6 }
 0x430   : > { %5111 = vmatpush3.bf16.msra.mxu0 %v7526_v6 }
 0x431   : > { %5113 = vmatprep.subr.bf16.mxu0 %v7527_v4 }
 0x434   : > { %5115 = vmatpush3.bf16.msra.mxu0 %v7527_v4 }
 0x435   : > { %5117 = vmatprep.subr.bf16.mxu0 %v7528_v24 }
 0x438   : > { %5119 = vmatpush3.bf16.msra.mxu0 %v7528_v24 }
 0x439   : > { %5121 = vmatprep.subr.bf16.mxu0 %v7529_v32 }
 0x43c   : > { %5123 = vmatpush3.bf16.msra.mxu0 %v7529_v32 }
 0x43d   : > { %5125 = vmatprep.subr.bf16.mxu0 %v7530_v22 }
 0x440   : > { %5127 = vmatpush3.bf16.msra.mxu0 %v7530_v22 }
 0x443   : > { %4715 = vmatmul.mubr.f32.vlgmr.msra.gmra.mrb[4].mxu0 %v6825_v14 }
 0x444   : > { %4717 = vmatprep.mubr.f32.mxu0 %v6904_v61 }
 0x447   : > { %4718 = vmatmul.mubr.f32.gmra.mrb[6].mxu0 %v6900_v27 }
 0x48f   : > { %v4526_v8 = vpop.f32.mrb[4].mxu1 }
 0x490   : > { %v2659_v25 = vpop.f32.mrb[5].mxu1  ;;  %v2670_v5 = vadd.f32 %v4526_v8, %v3905_v17 }
 0x491   : > { %v2660_v26 = vadd.f32 %v3905_v17, %v2659_v25 }
 0x4ba   : > { %v4529_v38 = vpop.f32.mrb[6].mxu1 }
 0x4bb   : > { %v2679_v47 = vpop.f32.mrb[7].mxu1  ;;  %v2690_v14 = vadd.f32 %v4529_v38, %v3905_v17 }
 0x4bc   : > { %v2680_v18 = vadd.f32 %v3905_v17, %v2679_v47 }
 0x516   : > { %v4716_v10 = vpop.f32.mrb[4].mxu0 }
 0x517   : > { %v6989_v1 = vadd.f32 %v4716_v10, %v2670_v5  ;;  %v3320_v19 = vpop.f32.mrb[5].mxu0 }
 0x518   : > { %v6991_v42 = vadd.f32 %v3320_v19, %v2660_v26 }
 0x519   : > { %v3446_v35 = vand.u32 2147483647, %v6989_v1  ;;  %v3449_v27 = vand.u32 2139095040, %v6989_v1  ;;  %vm3448_vm6 = vcmp.lt.s32.totalorder %v6989_v1, 0 }
 0x51a   : > { %v3342_v63 = vand.u32 2147483647, %v6991_v42  ;;  %v3345_v0 = vand.u32 2139095040, %v6991_v42  ;;  %v4719_v61 = vpop.f32.mrb[6].mxu0 }
 0x51b   : > { %v3450_v23 = vshrl.u32 %v3449_v27, 23  ;;  %v6997_v56 = vadd.f32 %v4719_v61, %v2690_v14  ;;  %v3332_v59 = vpop.f32.mrb[7].mxu0  ;;  %v3453_v15 = vand.u32 8388607, %v3446_v35  ;;  %vm7114_vm8 = vcmp.le.f32.partialorder %v3446_v35, 0.7853982 }
 0x51c   : > { %v3346_v29 = vshrl.u32 %v3345_v0, 23  ;;  %v3349_v20 = vand.u32 8388607, %v3342_v63  ;;  %v7003_v41 = vadd.f32 %v3332_v59, %v2680_v18 }
 0x51d   : > { %v3910_v2 = vadd.s32 4294967169, %v3450_v23  ;;  %v3657_v6 = vand.u32 2139095040, %v6997_v56  ;;  %v3454_v24 = vor.u32 8388608, %v3453_v15  ;;  %v3654_v54 = vand.u32 2147483647, %v6997_v56 }
 0x51e   : > { %v3906_v28 = vadd.s32 4294967169, %v3346_v29  ;;  %v3350_v32 = vor.u32 8388608, %v3349_v20 }
 0x51f   : > { %v3456_v4 = vadd.s32 1, %v3910_v2  ;;  %v3658_v36 = vshrl.u32 %v3657_v6, 23  ;;  %v7006_v9 = vshll.u32 %v3454_v24, 8 }
 0x520   : > { %v3352_v22 = vadd.s32 1, %v3906_v28  ;;  %v7010_v58 = vshll.u32 %v3350_v32, 8 }
 0x521   : > { %vm3457_vm9 = vcmp.gt.s32.totalorder %v3456_v4, 0  ;;  %v3918_v11 = vadd.s32 4294967169, %v3658_v36 }
 0x522   : > { %v3458_v12 = vsel %vm3457_vm9, %v3456_v4, 0  ;;  %vm3353_vm10 = vcmp.gt.s32.totalorder %v3352_v22, 0 }
 0x523   : > { %v3459_v45 = vshrl.u32 %v3458_v12, 5  ;;  %v3460_v46 = vand.u32 31, %v3458_v12  ;;  %v3354_v44 = vsel %vm3353_vm10, %v3352_v22, 0  ;;  %v7014_v51 = vadd.s32 1, %v3918_v11 }
 0x524   : > { %v7008_v34 = vshrl.u32 %v3354_v44, 5  ;;  %v3356_v16 = vand.u32 31, %v3354_v44 }
 0x525   : > { %v3461_v3 = vsub.s32 32, %v3460_v46  ;;  %v3463_v62 = vshll.u32 %v7451_v39, %v3460_v46  ;;  %v3466_v60 = vshll.u32 %v7442_v7, %v3460_v46  ;;  %v3469_v48 = vshll.u32 %v7443_v52, %v3460_v46 }
 0x526   : > { %v3472_v40 = vshll.u32 %v7444_v33, %v3460_v46  ;;  %v3475_v13 = vshll.u32 %v7445_v37, %v3460_v46  ;;  %vm3478_vm11 = vcmp.lt.s32.totalorder %v3459_v45, 1  ;;  %vm3479_vm12 = vcmp.lt.s32.totalorder %v3459_v45, 2 }
 0x527   : > { %v3464_v57 = vshrl.u32 %v7442_v7, %v3461_v3  ;;  %v3467_v55 = vshrl.u32 %v7443_v52, %v3461_v3  ;;  %v3470_v21 = vshrl.u32 %v7444_v33, %v3461_v3  ;;  %v3462_v49 = vshrl.u32 %v7451_v39, %v3461_v3 }
 0x528   : > { %v3473_v43 = vshrl.u32 %v7445_v37, %v3461_v3  ;;  %v3476_v31 = vshrl.u32 %v7450_v30, %v3461_v3  ;;  %v3357_v25 = vsub.s32 32, %v3356_v16  ;;  %vm3480_vm13 = vcmp.lt.s32.totalorder %v3459_v45, 3 }
 0x529   : > { %v3465_v50 = vor.u32 %v3464_v57, %v3463_v62  ;;  %v3468_v53 = vor.u32 %v3467_v55, %v3466_v60  ;;  %v3471_v8 = vor.u32 %v3470_v21, %v3469_v48  ;;  %vm3481_vm14 = vcmp.lt.s32.totalorder %v3459_v45, 4 }
 0x52a   : > { %v3474_v38 = vor.u32 %v3473_v43, %v3472_v40  ;;  %v3477_v47 = vor.u32 %v3476_v31, %v3475_v13  ;;  %v3359_v18 = vshll.u32 %v7451_v39, %v3356_v16  ;;  %v3360_v23 = vshrl.u32 %v7442_v7, %v3357_v25 }
 0x52b   : > { %v3482_v17 = vsel %vm3478_vm11, %v3462_v49, %v3465_v50  ;;  %v3483_v5 = vsel %vm3481_vm14, %v3471_v8, 2102212464  ;;  %v3486_v26 = vsel %vm3478_vm11, %v3465_v50, %v3468_v53  ;;  %v3490_v10 = vsel %vm3478_vm11, %v3468_v53, %v3471_v8 }
 0x52c   : > { %v3484_v19 = vsel %vm3480_vm13, %v3468_v53, %v3483_v5  ;;  %v3487_v14 = vsel %vm3481_vm14, %v3474_v38, 920167782  ;;  %v3491_v27 = vsel %vm3481_vm14, %v3477_v47, 1326507024  ;;  %v3362_v59 = vshll.u32 %v7442_v7, %v3356_v16 }
 0x52d   : > { %v3488_v0 = vsel %vm3480_vm13, %v3471_v8, %v3487_v14  ;;  %v3492_v61 = vsel %vm3480_vm13, %v3474_v38, %v3491_v27  ;;  %v3485_v15 = vsel %vm3479_vm12, %v3482_v17, %v3484_v19  ;;  %v3363_v2 = vshrl.u32 %v7443_v52, %v3357_v25 }
 0x52e   : > { %v3489_v29 = vsel %vm3479_vm12, %v3486_v26, %v3488_v0  ;;  %v3493_v20 = vsel %vm3479_vm12, %v3490_v10, %v3492_v61  ;;  %v3361_v32 = vor.u32 %v3360_v23, %v3359_v18  ;;  %v3365_v36 = vshll.u32 %v7443_v52, %v3356_v16 }
 0x52f   : > { %v7037_v28 = vmul.u32.u64.low %v7006_v9, %v3493_v20  ;;  %v7038_v6 = vmul.u32.u64.high %v7006_v9, %v3493_v20, %v7037_v28  ;;  %v7041_v4 = vmul.u32.u64.low %v7006_v9, %v3489_v29  ;;  %v7042_v24 = vmul.u32.u64.high %v7006_v9, %v3489_v29, %v7041_v4 }
 0x530   : > { %v3364_v22 = vor.u32 %v3363_v2, %v3362_v59  ;;  %v3366_v12 = vshrl.u32 %v7444_v33, %v3357_v25  ;;  %v3358_v11 = vshrl.u32 %v7451_v39, %v3357_v25  ;;  %v3368_v45 = vshll.u32 %v7444_v33, %v3356_v16 }
 0x531   : > { %v3369_v46 = vshrl.u32 %v7445_v37, %v3357_v25  ;;  %v3372_v44 = vshrl.u32 %v7450_v30, %v3357_v25  ;;  %v3501_v3 = vmul.u32 %v7006_v9, %v3485_v15  ;;  %v3371_v60 = vshll.u32 %v7445_v37, %v3356_v16 }
 0x532   : > { %v3367_v62 = vor.u32 %v3366_v12, %v3365_v36  ;;  %vm3374_vm15 = vcmp.lt.s32.totalorder %v7008_v34, 1  ;;  %vm3503_vm0 = vc.u32 %v7038_v6, %v7041_v4  ;;  %v3504_v48 = vadd.s32 1, %v7042_v24 }
 0x533   : > { %v3370_v40 = vor.u32 %v3369_v46, %v3368_v45  ;;  %vm3375_vm1 = vcmp.lt.s32.totalorder %v7008_v34, 2  ;;  %v3373_v13 = vor.u32 %v3372_v44, %v3371_v60  ;;  %vm3376_vm2 = vcmp.lt.s32.totalorder %v7008_v34, 3 }
 0x534   : > { %vm3377_vm3 = vcmp.lt.s32.totalorder %v7008_v34, 4  ;;  %v3382_v57 = vsel %vm3374_vm15, %v3361_v32, %v3364_v22  ;;  %v3505_v9 = vsel %vm3503_vm0, %v3504_v48, %v7042_v24  ;;  %v3386_v21 = vsel %vm3374_vm15, %v3364_v22, %v3367_v62 }
 0x535   : > { %v3379_v55 = vsel %vm3377_vm3, %v3367_v62, 2102212464  ;;  %v3383_v16 = vsel %vm3377_vm3, %v3370_v40, 920167782  ;;  %v3506_v49 = vadd.s32 %v3505_v9, %v3501_v3  ;;  %v3378_v43 = vsel %vm3374_vm15, %v3358_v11, %v3361_v32 }
 0x536   : > { %v3384_v31 = vsel %vm3376_vm2, %v3367_v62, %v3383_v16  ;;  %v3387_v50 = vsel %vm3377_vm3, %v3373_v13, 1326507024  ;;  %v3380_v53 = vsel %vm3376_vm2, %v3364_v22, %v3379_v55  ;;  %vm3665_vm4 = vcmp.gt.s32.totalorder %v7014_v51, 0 }
 0x537   : > { %v3385_v8 = vsel %vm3375_vm1, %v3382_v57, %v3384_v31  ;;  %v3388_v25 = vsel %vm3376_vm2, %v3370_v40, %v3387_v50  ;;  %v3507_v38 = vadd.s32 536870912, %v3506_v49  ;;  %v3661_v19 = vand.u32 8388607, %v3654_v54 }
 0x538   : > { %v3389_v47 = vsel %vm3375_vm1, %v3386_v21, %v3388_v25  ;;  %v7067_v17 = vmul.u32.u64.low %v7010_v58, %v3385_v8  ;;  %v7068_v5 = vmul.u32.u64.high %v7010_v58, %v3385_v8, %v7067_v17  ;;  %v3666_v14 = vsel %vm3665_vm4, %v7014_v51, 0 }
 0x539   : > { %v7072_v26 = vmul.u32.u64.low %v7010_v58, %v3389_v47  ;;  %v7073_v10 = vmul.u32.u64.high %v7010_v58, %v3389_v47, %v7072_v26  ;;  %v7078_v27 = vshrl.u32 %v3507_v38, 30  ;;  %v3381_v18 = vsel %vm3375_vm1, %v3378_v43, %v3380_v53 }
 0x53a   : > { %v3668_v0 = vand.u32 31, %v3666_v14  ;;  %v3400_v23 = vadd.s32 1, %v7068_v5  ;;  %v3397_v59 = vmul.u32 %v7010_v58, %v3381_v18  ;;  %v3662_v15 = vor.u32 8388608, %v3661_v19 }
 0x53b   : > { %v3509_v61 = vshll.u32 %v7078_v27, 30  ;;  %vm3399_vm5 = vc.u32 %v7073_v10, %v7067_v17  ;;  %v3553_v2 = vand.u32 2139095040, %v7003_v41  ;;  %v3550_v24 = vand.u32 2147483647, %v7003_v41 }
 0x53c   : > { %v3669_v29 = vsub.s32 32, %v3668_v0  ;;  %v3401_v51 = vsel %vm3399_vm5, %v3400_v23, %v7068_v5  ;;  %v7092_v58 = vshll.u32 %v3662_v15, 8  ;;  %v3667_v3 = vshrl.u32 %v3666_v14, 5 }
 0x53d   : > { %v3510_v20 = vsub.s32 %v3506_v49, %v3509_v61  ;;  %v3402_v28 = vadd.s32 %v3401_v51, %v3397_v59  ;;  %v3554_v46 = vshrl.u32 %v3553_v2, 23  ;;  %v3671_v62 = vshll.u32 %v7451_v39, %v3668_v0 }
 0x53e   : > { %v3672_v22 = vshrl.u32 %v7442_v7, %v3669_v29  ;;  %v3675_v36 = vshrl.u32 %v7443_v52, %v3669_v29  ;;  %v3678_v11 = vshrl.u32 %v7444_v33, %v3669_v29  ;;  %v3681_v45 = vshrl.u32 %v7445_v37, %v3669_v29 }
 0x53f   : > { %v3512_v34 = vsub.s32 0, %v3510_v20  ;;  %v3403_v32 = vadd.s32 536870912, %v3402_v28  ;;  %v3674_v60 = vshll.u32 %v7442_v7, %v3668_v0  ;;  %v3677_v40 = vshll.u32 %v7443_v52, %v3668_v0 }
 0x540   : > { %v3680_v13 = vshll.u32 %v7444_v33, %v3668_v0  ;;  %v3684_v57 = vshrl.u32 %v7450_v30, %v3669_v29  ;;  %v3502_v9 = vadd.s32 %v7041_v4, %v7038_v6  ;;  %v3673_v16 = vor.u32 %v3672_v22, %v3671_v62 }
 0x541   : > { %v3911_v12 = vmin.u32 %v3512_v34, %v3510_v20  ;;  %v7096_v44 = vshrl.u32 %v3403_v32, 30  ;;  %v3676_v21 = vor.u32 %v3675_v36, %v3674_v60  ;;  %v3679_v43 = vor.u32 %v3678_v11, %v3677_v40 }
 0x542   : > { %v3682_v31 = vor.u32 %v3681_v45, %v3680_v13  ;;  %v3683_v50 = vshll.u32 %v7445_v37, %v3668_v0  ;;  %v3532_v53 = vsub.s32 4, %v7078_v27  ;;  %v3670_v25 = vshrl.u32 %v7451_v39, %v3669_v29 }
 0x543   : > { %v3514_v48 = vclz %v3911_v12  ;;  %v3405_v55 = vshll.u32 %v7096_v44, 30  ;;  %vm3686_vm7 = vcmp.lt.s32.totalorder %v3667_v3, 1  ;;  %vm3687_vm10 = vcmp.lt.s32.totalorder %v3667_v3, 2 }
 0x544   : > { %v3685_v4 = vor.u32 %v3684_v57, %v3683_v50  ;;  %vm3688_vm11 = vcmp.lt.s32.totalorder %v3667_v3, 3  ;;  %vm3689_vm12 = vcmp.lt.s32.totalorder %v3667_v3, 4  ;;  %v3694_v5 = vsel %vm3686_vm7, %v3673_v16, %v3676_v21 }
 0x545   : > { %v3912_v49 = vadd.s32 4294967294, %v3514_v48  ;;  %v7109_v8 = vsub.s32 %v3402_v28, %v3405_v55  ;;  %v3691_v14 = vsel %vm3689_vm12, %v3679_v43, 2102212464  ;;  %v3695_v18 = vsel %vm3689_vm12, %v3682_v31, 920167782 }
 0x546   : > { %v3696_v61 = vsel %vm3688_vm11, %v3679_v43, %v3695_v18  ;;  %v3698_v23 = vsel %vm3686_vm7, %v3676_v21, %v3679_v43  ;;  %v3699_v51 = vsel %vm3689_vm12, %v3685_v4, 1326507024  ;;  %vm3344_vm13 = vcmp.lt.s32.totalorder %v6991_v42, 0 }
 0x547   : > { %vm3913_vm9 = vcmp.lt.s32.totalorder %v3912_v49, 0  ;;  %v3408_v47 = vsub.s32 0, %v7109_v8  ;;  %v3697_v29 = vsel %vm3687_vm10, %v3694_v5, %v3696_v61  ;;  %v3690_v28 = vsel %vm3686_vm7, %v3670_v25, %v3673_v16 }
 0x548   : > { %v3517_v38 = vsel %vm3913_vm9, 0, %v3912_v49  ;;  %v3692_v34 = vsel %vm3688_vm11, %v3676_v21, %v3691_v14  ;;  %v3914_v32 = vadd.s32 4294967169, %v3554_v46  ;;  %v3533_v36 = vsel %vm3448_vm6, %v3532_v53, %v7078_v27 }
 0x549   : > { %v3518_v26 = vsub.s32 32, %v3517_v38  ;;  %v3522_v19 = vsub.s32 4294967266, %v3517_v38  ;;  %v3519_v0 = vshll.u32 %v3510_v20, %v3517_v38  ;;  %v3907_v35 = vmin.u32 %v3408_v47, %v7109_v8 }
 0x54a   : > { %v3700_v12 = vsel %vm3688_vm11, %v3682_v31, %v3699_v51  ;;  %v7133_v62 = vmul.u32.u64.low %v7092_v58, %v3697_v29  ;;  %v7134_v60 = vmul.u32.u64.high %v7092_v58, %v3697_v29, %v7133_v62  ;;  %v3693_v40 = vsel %vm3687_vm10, %v3690_v28, %v3692_v34 }
 0x54b   : > { %v3520_v59 = vshrl.u32 %v3502_v9, %v3518_v26  ;;  %v3523_v15 = vadd.s32 127, %v3522_v19  ;;  %v3410_v2 = vclz %v3907_v35  ;;  %v3701_v45 = vsel %vm3687_vm10, %v3698_v23, %v3700_v12 }
 0x54c   : > { %v7139_v46 = vmul.u32.u64.low %v7092_v58, %v3701_v45  ;;  %v7140_v13 = vmul.u32.u64.high %v7092_v58, %v3701_v45, %v7139_v46  ;;  %v3535_v27 = vsel %vm7114_vm8, 0, %v3533_v36  ;;  %v3398_v57 = vadd.s32 %v7067_v17, %v7073_v10 }
 0x54d   : > { %v3521_v20 = vor.u32 %v3520_v59, %v3519_v0  ;;  %v3524_v22 = vshll.u32 %v3523_v15, 23  ;;  %v3908_v11 = vadd.s32 4294967294, %v3410_v2  ;;  %v3560_v9 = vadd.s32 1, %v3914_v32 }
 0x54e   : > { %v3428_v49 = vsub.s32 4, %v7096_v44  ;;  %v3709_v31 = vmul.u32 %v7092_v58, %v3693_v40  ;;  %v3712_v50 = vadd.s32 1, %v7134_v60  ;;  %vm3711_vm15 = vc.u32 %v7140_v13, %v7133_v62 }
 0x54f   : > { %v3525_v48 = vor.u32 4788187, %v3524_v22  ;;  %vm3909_vm14 = vcmp.lt.s32.totalorder %v3908_v11, 0  ;;  %v3528_v16 = vcvt.s32.f32 %v3521_v20  ;;  %vm3561_vm0 = vcmp.gt.s32.totalorder %v3560_v9, 0 }
 0x550   : > { %v3413_v21 = vsel %vm3909_vm14, 0, %v3908_v11  ;;  %v3713_v4 = vsel %vm3711_vm15, %v3712_v50, %v7134_v60  ;;  %v3562_v38 = vsel %vm3561_vm0, %v3560_v9, 0  ;;  %v3429_v5 = vsel %vm3344_vm13, %v3428_v49, %v7096_v44 }
 0x551   : > { %v3526_v55 = vand.u32 2147483647, %v3525_v48  ;;  %v3414_v43 = vsub.s32 32, %v3413_v21  ;;  %v3418_v3 = vsub.s32 4294967266, %v3413_v21  ;;  %v3415_v25 = vshll.u32 %v7109_v8, %v3413_v21 }
 0x552   : > { %v3714_v58 = vadd.s32 %v3713_v4, %v3709_v31  ;;  %v3564_v26 = vand.u32 31, %v3562_v38  ;;  %v3539_v19 = vadd.s32 3, %v3535_v27  ;;  %vm7160_vm1 = vcmp.le.f32.partialorder %v3342_v63, 0.7853982 }
 0x553   : > { %v3529_v53 = vmul.f32 %v3528_v16, %v3526_v55  ;;  %v3416_v17 = vshrl.u32 %v3398_v57, %v3414_v43  ;;  %v3419_v10 = vadd.s32 127, %v3418_v3  ;;  %v3431_v59 = vsel %vm7160_vm1, 0, %v3429_v5 }
 0x554   : > { %v3715_v35 = vadd.s32 536870912, %v3714_v58  ;;  %v3565_v61 = vsub.s32 32, %v3564_v26  ;;  %v3557_v29 = vand.u32 8388607, %v3550_v24  ;;  %v7173_v63 = vand.u32 3, %v3539_v19 }
 0x555   : > { %v3530_v47 = vxor.u32 2147483648, %v3529_v53  ;;  %v3417_v14 = vor.u32 %v3416_v17, %v3415_v25  ;;  %v3420_v18 = vshll.u32 %v3419_v10, 23  ;;  %v3435_v28 = vadd.s32 3, %v3431_v59 }
 0x556   : > { %v7169_v15 = vshrl.u32 %v3715_v35, 30  ;;  %v3568_v6 = vshrl.u32 %v7442_v7, %v3565_v61  ;;  %v3571_v32 = vshrl.u32 %v7443_v52, %v3565_v61  ;;  %v3574_v22 = vshrl.u32 %v7444_v33, %v3565_v61 }
 0x557   : > { %v3531_v8 = vsel %vm3448_vm6, %v3530_v47, %v3529_v53  ;;  %v3421_v23 = vor.u32 4788187, %v3420_v18  ;;  %v3424_v2 = vcvt.s32.f32 %v3417_v14  ;;  %v3576_v36 = vshll.u32 %v7444_v33, %v3564_v26 }
 0x558   : > { %v3534_v44 = vsel %vm7114_vm8, %v6989_v1, %v3531_v8  ;;  %v3717_v34 = vshll.u32 %v7169_v15, 30  ;;  %v3577_v12 = vshrl.u32 %v7445_v37, %v3565_v61  ;;  %v7183_v45 = vshrl.u32 %v3562_v38, 5 }
 0x559   : > { %5350 = vcosq.f32 %v3534_v44  ;;  %v3422_v51 = vand.u32 2147483647, %v3421_v23  ;;  %v3567_v60 = vshll.u32 %v7451_v39, %v3564_v26  ;;  %v3570_v48 = vshll.u32 %v7442_v7, %v3564_v26 }
 0x55a   : > { %5352 = vsinq.f32 %v3534_v44  ;;  %v7181_v11 = vsub.s32 %v3714_v58, %v3717_v34  ;;  %vm3542_vm2 = vcmp.eq.s32.totalorder %v7173_v63, 0  ;;  %v3573_v46 = vshll.u32 %v7443_v52, %v3564_v26 }
 0x55b   : > { %v3425_v20 = vmul.f32 %v3424_v2, %v3422_v51  ;;  %v3578_v27 = vor.u32 %v3577_v12, %v3576_v36  ;;  %v3580_v57 = vshrl.u32 %v7450_v30, %v3565_v61  ;;  %vm3541_vm3 = vcmp.lt.s32.totalorder %v7173_v63, 2 }
 0x55c   : > { %vm3545_vm4 = vcmp.eq.s32.totalorder %v7173_v63, 2  ;;  %v3720_v33 = vsub.s32 0, %v7181_v11  ;;  %v3558_v9 = vor.u32 8388608, %v3557_v29  ;;  %v3569_v55 = vor.u32 %v3568_v6, %v3567_v60 }
 0x55d   : > { %v3426_v40 = vxor.u32 2147483648, %v3425_v20  ;;  %vm3538_vm5 = vweird.f32 %v6989_v1  ;;  %v3572_v16 = vor.u32 %v3571_v32, %v3570_v48  ;;  %v3575_v21 = vor.u32 %v3574_v22, %v3573_v46 }
 0x55e   : > { %v3579_v52 = vshll.u32 %v7445_v37, %v3564_v26  ;;  %v7201_v49 = vand.u32 3, %v3435_v28  ;;  %v3919_v43 = vmin.u32 %v3720_v33, %v7181_v11  ;;  %vm3585_vm6 = vcmp.lt.s32.totalorder %v7183_v45, 4 }
 0x55f   : > { %v3427_v7 = vsel %vm3344_vm13, %v3426_v40, %v3425_v20  ;;  %v3710_v3 = vadd.s32 %v7133_v62, %v7140_v13  ;;  %v3591_v37 = vsel %vm3585_vm6, %v3578_v27, 920167782  ;;  %vm3582_vm7 = vcmp.lt.s32.totalorder %v7183_v45, 1 }
 0x560   : > { %v3430_v30 = vsel %vm7160_vm1, %v6991_v42, %v3427_v7  ;;  %v3581_v31 = vor.u32 %v3580_v57, %v3579_v52  ;;  %v3722_v53 = vclz %v3919_v43  ;;  %vm3584_vm8 = vcmp.lt.s32.totalorder %v7183_v45, 3 }
 0x561   : > { %5354 = vcosq.f32 %v3430_v30  ;;  %v3590_v10 = vsel %vm3582_vm7, %v3569_v55, %v3572_v16  ;;  %v3592_v62 = vsel %vm3584_vm8, %v3575_v21, %v3591_v37  ;;  %v3598_v13 = vshll.u32 %v3558_v9, 8 }
 0x562   : > { %5356 = vsinq.f32 %v3430_v30  ;;  %v3920_v38 = vadd.s32 4294967294, %v3722_v53  ;;  %v3566_v47 = vshrl.u32 %v7451_v39, %v3565_v61  ;;  %vm3583_vm9 = vcmp.lt.s32.totalorder %v7183_v45, 2 }
 0x563   : > { %v5351_v50 = vpop.eup %5350  ;;  %v3587_v58 = vsel %vm3585_vm6, %v3575_v21, 2102212464  ;;  %v3594_v26 = vsel %vm3582_vm7, %v3572_v16, %v3575_v21  ;;  %v3595_v19 = vsel %vm3585_vm6, %v3581_v31, 1326507024  ;;  %v3593_v39 = vsel %vm3583_vm9, %v3590_v10, %v3592_v62 }
 0x564   : > { %v5353_v25 = vpop.eup %5352  ;;  %v3546_v17 = vxor.u32 2147483648, %v5351_v50  ;;  %vm3921_vm10 = vcmp.lt.s32.totalorder %v3920_v38, 0  ;;  %v3596_v18 = vsel %vm3584_vm8, %v3578_v27, %v3595_v19  ;;  %v3586_v35 = vsel %vm3582_vm7, %v3566_v47, %v3569_v55 }
 0x565   : > { %v3543_v4 = vxor.u32 2147483648, %v5353_v25  ;;  %v3725_v0 = vsel %vm3921_vm10, 0, %v3920_v38  ;;  %v3597_v61 = vsel %vm3583_vm9, %v3594_v26, %v3596_v18  ;;  %v3588_v29 = vsel %vm3584_vm8, %v3572_v16, %v3587_v58 }
 0x566   : > { %v3547_v5 = vsel %vm3545_vm4, %v3546_v17, %v5353_v25  ;;  %v3726_v23 = vsub.s32 32, %v3725_v0  ;;  %v3730_v59 = vsub.s32 4294967266, %v3725_v0  ;;  %v3727_v34 = vshll.u32 %v7181_v11, %v3725_v0 }
 0x567   : > { %v3544_v14 = vsel %vm3542_vm2, %v5351_v50, %v3543_v4  ;;  %v7246_v63 = vmul.u32.u64.low %v3598_v13, %v3597_v61  ;;  %v7247_v51 = vmul.u32.u64.high %v3598_v13, %v3597_v61, %v7246_v63  ;;  %v3589_v20 = vsel %vm3583_vm9, %v3586_v35, %v3588_v29 }
 0x568   : > { %v3548_v8 = vsel %vm3541_vm3, %v3544_v14, %v3547_v5  ;;  %v7249_v2 = vmul.u32.u64.low %v3598_v13, %v3593_v39  ;;  %v7250_v28 = vmul.u32.u64.high %v3598_v13, %v3593_v39, %v7249_v2  ;;  %v3728_v6 = vshrl.u32 %v3710_v3, %v3726_v23 }
 0x569   : > { %v3549_v44 = vsel %vm3538_vm5, nan, %v3548_v8  ;;  %v3731_v1 = vadd.s32 127, %v3730_v59  ;;  %vm3441_vm11 = vcmp.eq.s32.totalorder %v7201_v49, 2  ;;  %vm3438_vm13 = vcmp.eq.s32.totalorder %v7201_v49, 0 }
 0x56a   : > { %3759 = vst [vmem:[%s7243_s13 + $0x8] sm:$0xff] %v3549_v44  ;;  %v3729_v12 = vor.u32 %v3728_v6, %v3727_v34  ;;  %vm3607_vm12 = vc.u32 %v7247_v51, %v7249_v2  ;;  %v3608_v40 = vadd.s32 1, %v7250_v28  ;;  %v3605_v27 = vmul.u32 %v3598_v13, %v3589_v20 }
 0x56b   : > { %v5355_v32 = vpop.eup %5354  ;;  %v3732_v60 = vshll.u32 %v3731_v1, 23  ;;  %vm3434_vm14 = vweird.f32 %v6991_v42  ;;  %vm3437_vm15 = vcmp.lt.s32.totalorder %v7201_v49, 2  ;;  %v3740_v21 = vsub.s32 4, %v7169_v15 }
 0x56c   : > { %v5357_v22 = vpop.eup %5356  ;;  %v3442_v36 = vxor.u32 2147483648, %v5355_v32  ;;  %v3609_v57 = vsel %vm3607_vm12, %v3608_v40, %v7250_v28  ;;  %v3736_v55 = vcvt.s32.f32 %v3729_v12  ;;  %vm3656_vm0 = vcmp.lt.s32.totalorder %v6997_v56, 0 }
 0x56d   : > { %v3439_v48 = vxor.u32 2147483648, %v5357_v22  ;;  %v3733_v46 = vor.u32 4788187, %v3732_v60  ;;  %v3610_v7 = vadd.s32 %v3609_v57, %v3605_v27  ;;  %v3741_v42 = vsel %vm3656_vm0, %v3740_v21, %v7169_v15 }
 0x56e   : > { %v3443_v11 = vsel %vm3441_vm11, %v3442_v36, %v5357_v22  ;;  %vm3655_vm1 = vcmp.le.f32.partialorder %v3654_v54, 0.7853982  ;;  %v3606_v58 = vadd.s32 %v7249_v2, %v7247_v51  ;;  %vm3746_vm6 = vweird.f32 %v6997_v56 }
 0x56f   : > { %v3440_v45 = vsel %vm3438_vm13, %v5355_v32, %v3439_v48  ;;  %v3734_v9 = vand.u32 2147483647, %v3733_v46  ;;  %v3611_v30 = vadd.s32 536870912, %v3610_v7  ;;  %v3743_v50 = vsel %vm3655_vm1, 0, %v3741_v42 }
 0x570   : > { %v3444_v33 = vsel %vm3437_vm15, %v3440_v45, %v3443_v11  ;;  %v3747_v17 = vadd.s32 3, %v3743_v50  ;;  %vm3552_vm7 = vcmp.lt.s32.totalorder %v7003_v41, 0  ;;  %vm3551_vm8 = vcmp.le.f32.partialorder %v3550_v24, 0.7853982 }
 0x571   : > { %v3445_v16 = vsel %vm3434_vm14, nan, %v3444_v33  ;;  %v3737_v52 = vmul.f32 %v3736_v55, %v3734_v9  ;;  %v3612_v3 = vshrl.u32 %v3611_v30, 30  ;;  %vm3642_vm12 = vweird.f32 %v7003_v41 }
 0x572   : > { %3758 = vst [vmem:[%s7243_s13] sm:$0xff] %v3445_v16  ;;  %v3748_v13 = vand.u32 3, %v3747_v17 }
 0x573   : > { %v3738_v43 = vxor.u32 2147483648, %v3737_v52  ;;  %v3613_v31 = vshll.u32 %v3612_v3, 30  ;;  %v3636_v2 = vsub.s32 4, %v3612_v3 }
 0x574   : > { %vm3753_vm3 = vcmp.eq.s32.totalorder %v3748_v13, 2  ;;  %vm3749_vm4 = vcmp.lt.s32.totalorder %v3748_v13, 2  ;;  %vm3750_vm5 = vcmp.eq.s32.totalorder %v3748_v13, 0 }
 0x575   : > { %v3739_v49 = vsel %vm3656_vm0, %v3738_v43, %v3737_v52  ;;  %v3614_v53 = vsub.s32 %v3610_v7, %v3613_v31 }
 0x576   : > { %v3742_v37 = vsel %vm3655_vm1, %v6997_v56, %v3739_v49  ;;  %v3637_v56 = vsel %vm3552_vm7, %v3636_v2, %v3612_v3 }
 0x577   : > { %5358 = vcosq.f32 %v3742_v37  ;;  %v3616_v25 = vsub.s32 0, %v3614_v53  ;;  %v3639_v1 = vsel %vm3551_vm8, 0, %v3637_v56 }
 0x578   : > { %5360 = vsinq.f32 %v3742_v37  ;;  %v3643_v32 = vadd.s32 3, %v3639_v1 }
 0x579   : > { %v3915_v10 = vmin.u32 %v3616_v25, %v3614_v53 }
 0x57a   : > { %v3644_v20 = vand.u32 3, %v3643_v32 }
 0x57b   : > { %v3618_v62 = vclz %v3915_v10 }
 0x57c   : > { %vm3649_vm9 = vcmp.eq.s32.totalorder %v3644_v20, 2  ;;  %vm3646_vm10 = vcmp.eq.s32.totalorder %v3644_v20, 0  ;;  %vm3645_vm11 = vcmp.lt.s32.totalorder %v3644_v20, 2 }
 0x57d   : > { %v3916_v4 = vadd.s32 4294967294, %v3618_v62 }
 0x57f   : > { %vm3917_vm2 = vcmp.lt.s32.totalorder %v3916_v4, 0 }
 0x580   : > { %v3621_v54 = vsel %vm3917_vm2, 0, %v3916_v4 }
 0x581   : > { %v5359_v38 = vpop.eup %5358  ;;  %v3622_v26 = vsub.s32 32, %v3621_v54  ;;  %v3626_v19 = vsub.s32 4294967266, %v3621_v54  ;;  %v3623_v18 = vshll.u32 %v3614_v53, %v3621_v54 }
 0x582   : > { %v5361_v15 = vpop.eup %5360  ;;  %v3754_v47 = vxor.u32 2147483648, %v5359_v38 }
 0x583   : > { %v3751_v5 = vxor.u32 2147483648, %v5361_v15  ;;  %v3624_v8 = vshrl.u32 %v3606_v58, %v3622_v26  ;;  %v3627_v0 = vadd.s32 127, %v3626_v19 }
 0x584   : > { %v3755_v14 = vsel %vm3753_vm3, %v3754_v47, %v5361_v15 }
 0x585   : > { %v3752_v39 = vsel %vm3750_vm5, %v5359_v38, %v3751_v5  ;;  %v3625_v44 = vor.u32 %v3624_v8, %v3623_v18  ;;  %v3628_v23 = vshll.u32 %v3627_v0, 23 }
 0x586   : > { %v3756_v35 = vsel %vm3749_vm4, %v3752_v39, %v3755_v14 }
 0x587   : > { %v3757_v61 = vsel %vm3746_vm6, nan, %v3756_v35  ;;  %v3629_v59 = vor.u32 4788187, %v3628_v23  ;;  %v3632_v63 = vcvt.s32.f32 %v3625_v44 }
 0x588   : > { %3761 = vst [vmem:[%s7243_s13 + $0x18] sm:$0xff] %v3757_v61 }
 0x589   : > { %v3630_v29 = vand.u32 2147483647, %v3629_v59 }
 0x58b   : > { %v3633_v51 = vmul.f32 %v3632_v63, %v3630_v29 }
 0x58d   : > { %v3634_v28 = vxor.u32 2147483648, %v3633_v51 }
 0x58f   : > { %v3635_v34 = vsel %vm3552_vm7, %v3634_v28, %v3633_v51 }
 0x590   : > { %v3638_v6 = vsel %vm3551_vm8, %v7003_v41, %v3635_v34 }
 0x591   : > { %5362 = vcosq.f32 %v3638_v6 }
 0x592   : > { %5364 = vsinq.f32 %v3638_v6 }
 0x59b   : > { %v5363_v22 = vpop.eup %5362 }
 0x59c   : > { %v5365_v36 = vpop.eup %5364  ;;  %v3650_v12 = vxor.u32 2147483648, %v5363_v22 }
 0x59d   : > { %v3647_v60 = vxor.u32 2147483648, %v5365_v36 }
 0x59e   : > { %v3651_v24 = vsel %vm3649_vm9, %v3650_v12, %v5365_v36 }
 0x59f   : > { %v3648_v48 = vsel %vm3646_vm10, %v5363_v22, %v3647_v60 }
 0x5a0   : > { %v3652_v40 = vsel %vm3645_vm11, %v3648_v48, %v3651_v24 }
 0x5a1   : > { %v3653_v11 = vsel %vm3642_vm12, nan, %v3652_v40 }
 0x5a2   : > { %3760 = vst [vmem:[%s7243_s13 + $0x10] sm:$0xff] %v3653_v11 }
 0x5a3   : > { %5435 = shalt.err (!%p5432_p11)
}
 0x5a4   : > { %s5436_s15 = scalar_lea.hbm %s7281_s22, 512  ;;  %s5440_s16 = scalar_lea.hbm %s7337_s7, 1024 }
 0x5a5   : > { %p5437_p13 = scmp.ne.s32.totalorder %s7281_s22, %s5436_s15  ;;  %p5441_p6 = scmp.lt.u32.totalorder %s7281_s22, %s7337_s7 }
 0x5a6   : > { %p5442_p9 = scmp.lt.u32.totalorder %s5440_s16, %s5436_s15  ;;  %p5444_p12 = scmp.lt.u32.totalorder %s5436_s15, %s7281_s22 }
 0x5a7   : > { %p5438_p5 = pnand %p5437_p13, %p7553_p1 }
 0x5a8   : > { %p5443_p10 = por %p5442_p9, %p5441_p6 }
 0x5a9   : > { %p5439_p0 = pneg %p5438_p5 }
 0x5aa   : > { %p5445_p2 = por %p5444_p12, %p5443_p10 }
 0x5ac   : > { %p5446_p3 = pnand %p5445_p2, %p5439_p0 }
 0x5ae   : > { %5449 = shalt.err (!%p5446_p3)
}
 0x5af   : > { %s5505_s14 = smov 128   ;;  %s5506_s20 = smov 8  }
 0x5b0   : > { %5256 = dma.vmem_to_hbm [thread:$0]  (%p7553_p1), %s7283_s17, 512, %s7281_s22, %s7289_s28, %s5505_s14, %s5505_s14, %s5506_s20  }
 0x5b1 PF: > { %p5273_p4 = scmp.ge.s32.totalorder %s5492_s27, 2  ;;  %s3791_s21 = sand.u32 1, %s5480_s24  }
 0x5b2   : > { %p7554_p7 = scmp.ne.s32.totalorder %s7430_s12, 0  ;;  %s3792_s23 = scalar_lea.sflag [#allocation4], %s3791_s21 }
 0x5b4   : > { %p5266_p8 = pnand %p5273_p4, %p7554_p7 }
 0x5b6   : > { %5475 = dma.done.wait (!%p5266_p8), %s3792_s23, 512  }
 0x5b7   : > { %5477 = vsyncadd (!%p5266_p8), %s3792_s23, 4294966784  ;;  %s7555_s29 = sld [smem:[#allocation11_spill]]  ;;  %p19_p11 = scmp.ge.s32.totalorder %s5572_s30, 4  }
 0x5b8   : > { %s7556_s24 = smov %s5484_s25  ;;  %s7557_s25 = smov %s5488_s26 }
 0x5b9   : > { %s7559_s27 = smov %s5572_s30  ;;  %21 = sbr.rel (!%p19_p11) target bundleno = 5 (0x5), region = 92 }
 0x5bd   : > { %s7558_s26 = smov %s7555_s29 }
 0x5c0   :  { %3797 = vsyncpa [#allocation3], 1 }
 0x5c1   :  { %3799 = vsyncpa [#allocation3 + $0x1], 1 }
 0x5c2   :  { %3800 = vsyncpa [#allocation6], 1 }
 0x5c3   :  { %3801 = vsyncpa [#allocation4], 1 }
 0x5c4   :  { %3803 = vsyncpa [#allocation4 + $0x1], 1 }

</bundles_post_ra>
